<compile_context>
chip_gen: v6e
topology: v6e:2x2x1
jax: 0.10.0
libtpu: 0.0.40
codegen_flags: <defaults>
</compile_context>

<pallas_src>
import jax
import jax.numpy as jnp
from jax.experimental import pallas as pl
from jax.experimental.pallas import tpu as pltpu


MXU_DTYPE = jnp.bfloat16          # MXU input dtype (accumulation stays f32)
VMEM_LIMIT = 16 * 1024 * 1024     # actual footprint ~1.5 MiB; modest headroom


def _make_lstm_cell(H):
    """PyTorch gate order i, f, g, o.  Gates arrive as f32 [N, 4H]."""
    def cell(gates, c_prev):
        i_g = jax.nn.sigmoid(gates[:, 0 * H:1 * H])
        f_g = jax.nn.sigmoid(gates[:, 1 * H:2 * H])
        g_g = jnp.tanh(gates[:, 2 * H:3 * H])
        o_g = jax.nn.sigmoid(gates[:, 3 * H:4 * H])
        c_new = f_g * c_prev + i_g * g_g
        h_new = o_g * jnp.tanh(c_new)
        return h_new, c_new
    return cell


# ----------------------------------------------------------------------------
# Intermediate BiLSTM layer (used only when num_layers > 1):
#   x     : [T*N, D]   time-major flattened sequence (bf16)
#   wih_p : [D, 8H]    [w_ih_fwd^T | w_ih_bwd^T]                     (bf16)
#   whh_f : [H, 4H]    w_hh_fwd^T                                    (bf16)
#   whh_b : [H, 4H]    w_hh_bwd^T                                    (bf16)
#   b_p   : [1, 8H]    [b_ih_f+b_hh_f | b_ih_b+b_hh_b]               (f32)
# Output:
#   h_seq : [T*N, 2H]  per-step [h_fwd(t) | h_bwd(t)]                (bf16)
# ----------------------------------------------------------------------------
def _bilstm_seq_kernel(H, T, N):
    G = 4 * H
    cell = _make_lstm_cell(H)

    def kernel(x_ref, wih_ref, whhf_ref, whhb_ref, b_ref, hseq_ref, gx_sc):
        # Hoisted input projection for BOTH directions (bias folded in once).
        gx_sc[...] = (
            jnp.dot(x_ref[...], wih_ref[...], preferred_element_type=jnp.float32)
            + b_ref[...]
        )
        whh_f = whhf_ref[...]
        whh_b = whhb_ref[...]

        # State lives in registers across the unrolled recurrence.
        h_f_bf = jnp.zeros((N, H), MXU_DTYPE)
        h_b_bf = jnp.zeros((N, H), MXU_DTYPE)
        c_f = jnp.zeros((N, H), jnp.float32)
        c_b = jnp.zeros((N, H), jnp.float32)

        for t in range(T):
            tb = T - 1 - t
            gh_f = jnp.dot(h_f_bf, whh_f, preferred_element_type=jnp.float32)
            gh_b = jnp.dot(h_b_bf, whh_b, preferred_element_type=jnp.float32)
            gates_f = gx_sc[t * N:(t + 1) * N, 0:G] + gh_f
            gates_b = gx_sc[tb * N:(tb + 1) * N, G:2 * G] + gh_b
            h_f, c_f = cell(gates_f, c_f)
            h_b, c_b = cell(gates_b, c_b)
            h_f_bf = h_f.astype(MXU_DTYPE)
            h_b_bf = h_b.astype(MXU_DTYPE)
            hseq_ref[t * N:(t + 1) * N, 0:H] = h_f_bf        # fwd hidden at time t
            hseq_ref[tb * N:(tb + 1) * N, H:2 * H] = h_b_bf  # bwd hidden at time tb

    return kernel


def bilstm_seq_layer(x2d, wih_p, whh_f, whh_b, b_p, H, T, N):
    vmem = pl.BlockSpec(memory_space=pltpu.MemorySpace.VMEM)
    return pl.pallas_call(
        _bilstm_seq_kernel(H, T, N),
        out_shape=jax.ShapeDtypeStruct((T * N, 2 * H), MXU_DTYPE),
        in_specs=[vmem] * 5,
        out_specs=vmem,
        scratch_shapes=[pltpu.VMEM((T * N, 8 * H), jnp.float32)],
        compiler_params=pltpu.CompilerParams(vmem_limit_bytes=VMEM_LIMIT),
    )(x2d, wih_p, whh_f, whh_b, b_p)


# ----------------------------------------------------------------------------
# Final BiLSTM layer fused with the 2-layer GCN epilogue:
#   out = A2 @ relu(A1 @ (cat(h_fwd_final, h_bwd_final) @ W1)) @ W2_pad
# matches conv2(relu(conv1(cat(hidden[-2],hidden[-1]), ei1)), ei2) with PyG
# GCNConv(normalize=True, add_self_loops=False, bias=False).
# Output lane-padded to a multiple of 128; wrapper slices [:, :nclass].
# ----------------------------------------------------------------------------
def _bilstm_gcn_kernel(H, T, N):
    G = 4 * H
    cell = _make_lstm_cell(H)

    def kernel(x_ref, wih_ref, whhf_ref, whhb_ref, b_ref,
               a1_ref, w1_ref, a2_ref, w2_ref, o_ref, gx_sc):
        gx_sc[...] = (
            jnp.dot(x_ref[...], wih_ref[...], preferred_element_type=jnp.float32)
            + b_ref[...]
        )
        whh_f = whhf_ref[...]
        whh_b = whhb_ref[...]

        h_f_bf = jnp.zeros((N, H), MXU_DTYPE)
        h_b_bf = jnp.zeros((N, H), MXU_DTYPE)
        c_f = jnp.zeros((N, H), jnp.float32)
        c_b = jnp.zeros((N, H), jnp.float32)

        for t in range(T):
            tb = T - 1 - t
            gh_f = jnp.dot(h_f_bf, whh_f, preferred_element_type=jnp.float32)
            gh_b = jnp.dot(h_b_bf, whh_b, preferred_element_type=jnp.float32)
            gates_f = gx_sc[t * N:(t + 1) * N, 0:G] + gh_f
            gates_b = gx_sc[tb * N:(tb + 1) * N, G:2 * G] + gh_b
            h_f, c_f = cell(gates_f, c_f)
            h_b, c_b = cell(gates_b, c_b)
            h_f_bf = h_f.astype(MXU_DTYPE)
            h_b_bf = h_b.astype(MXU_DTYPE)

        # ---- fused GCN epilogue (h_fin never leaves VMEM) ----
        # cat(hidden[-2], hidden[-1]) @ W1, split into two K=H dots (avoids a
        # lane concat and never multiplies against a zero block).
        g = (jnp.dot(h_f_bf, w1_ref[0:H, :], preferred_element_type=jnp.float32)
             + jnp.dot(h_b_bf, w1_ref[H:2 * H, :], preferred_element_type=jnp.float32))
        g = jnp.dot(a1_ref[...], g.astype(MXU_DTYPE),
                    preferred_element_type=jnp.float32)          # conv1 propagate
        g = jnp.maximum(g, 0.0)                                   # ReLU; dropout(eval)->id
        g = jnp.dot(g.astype(MXU_DTYPE), w2_ref[...],
                    preferred_element_type=jnp.float32)           # conv2 lin
        o_ref[...] = jnp.dot(a2_ref[...], g.astype(MXU_DTYPE),
                             preferred_element_type=jnp.float32)  # conv2 propagate

    return kernel


def bilstm_gcn_layer(x2d, wih_p, whh_f, whh_b, b_p, a1, w1, a2, w2_pad, H, T, N):
    c_pad = w2_pad.shape[1]
    vmem = pl.BlockSpec(memory_space=pltpu.MemorySpace.VMEM)
    return pl.pallas_call(
        _bilstm_gcn_kernel(H, T, N),
        out_shape=jax.ShapeDtypeStruct((N, c_pad), jnp.float32),
        in_specs=[vmem] * 9,
        out_specs=vmem,
        scratch_shapes=[pltpu.VMEM((T * N, 8 * H), jnp.float32)],
        compiler_params=pltpu.CompilerParams(vmem_limit_bytes=VMEM_LIMIT),
    )(x2d, wih_p, whh_f, whh_b, b_p, a1, w1, a2, w2_pad)


# ----------------------------------------------------------------------------
# JAX glue: GCN symmetric normalization (dense adjacency), embedding lookup.
# ----------------------------------------------------------------------------
def gcn_norm_dense(edge_index, num_nodes):
    """PyG gcn_norm with add_self_loops=False, as dense A_hat s.t. propagate(x)==A_hat@x.
    Computed once per graph (hoisted out of the forward path); returned as bf16."""
    row, col = edge_index[0], edge_index[1]               # row = src j, col = tgt i
    ones = jnp.ones(row.shape[0], dtype=jnp.float32)
    deg = jnp.zeros((num_nodes,), jnp.float32).at[col].add(ones)
    dinv = jnp.where(deg > 0, 1.0 / jnp.sqrt(deg), 0.0)
    norm = dinv[row] * dinv[col]
    a_hat = jnp.zeros((num_nodes, num_nodes), jnp.float32).at[col, row].add(norm)
    return a_hat.astype(MXU_DTYPE)


def net_forward(sentence, a1, a2, params):
    glove = params["glove"]          # [V, D] bf16
    H = params["hidden"]

    # Embedding lookup (glue) + dropout (eval -> identity).  Tokens transposed
    # first so the gather directly yields the time-major layout.
    x_tnd = jnp.take(glove, sentence.T, axis=0)            # [T, N, D] bf16
    T, N, D = x_tnd.shape
    inp = x_tnd.reshape(T * N, D)

    layers = params["lstm"]
    for (wih_p, whh_f, whh_b, b_p) in layers[:-1]:
        inp = bilstm_seq_layer(inp, wih_p, whh_f, whh_b, b_p, H, T, N)  # bf16 [T*N,2H]

    wih_p, whh_f, whh_b, b_p = layers[-1]
    logits_pad = bilstm_gcn_layer(inp, wih_p, whh_f, whh_b, b_p,
                                  a1, params["w1"], a2, params["w2"], H, T, N)
    return logits_pad[:, :params["nclass"]]


# ----------------------------------------------------------------------------
# Deterministic parameter construction + test driver.
# ----------------------------------------------------------------------------
def make_params(key, vocab, embed_dim, hidden, nhid, nclass, num_layers):
    n_keys = 1 + 8 * num_layers + 2
    keys = iter(jax.random.split(key, n_keys))
    params = {"hidden": hidden, "nclass": nclass}
    params["glove"] = (jax.random.normal(next(keys), (vocab, embed_dim),
                                         jnp.float32) * 0.1).astype(MXU_DTYPE)

    H = hidden
    layers = []
    for layer in range(num_layers):
        d_in = embed_dim if layer == 0 else 2 * H

        def draw(shape):
            return jax.random.normal(next(keys), shape, jnp.float32) * 0.1

        # PyTorch layout: weight_ih [4H, D], weight_hh [4H, H], gate order i,f,g,o.
        w_ih_f, w_hh_f = draw((4 * H, d_in)), draw((4 * H, H))
        b_f = draw((4 * H,)) + draw((4 * H,))          # b_ih + b_hh
        w_ih_b, w_hh_b = draw((4 * H, d_in)), draw((4 * H, H))
        b_b = draw((4 * H,)) + draw((4 * H,))

        # Packed input projections side by side; recurrent weights per-direction.
        wih_p = jnp.concatenate([w_ih_f.T, w_ih_b.T], axis=1).astype(MXU_DTYPE)  # [D, 8H]
        whh_f_p = w_hh_f.T.astype(MXU_DTYPE)                                     # [H, 4H]
        whh_b_p = w_hh_b.T.astype(MXU_DTYPE)                                     # [H, 4H]
        b_p = jnp.concatenate([b_f, b_b])[None, :].astype(jnp.float32)           # [1, 8H]
        layers.append((wih_p, whh_f_p, whh_b_p, b_p))
    params["lstm"] = layers

    # GCNConv weights stored [in, out] (PyG lin uses x @ W^T with W [out, in]).
    c_pad = ((nclass + 127) // 128) * 128
    w1 = jax.random.normal(next(keys), (2 * nhid, nhid), jnp.float32) * 0.1
    w2 = jax.random.normal(next(keys), (nhid, nclass), jnp.float32) * 0.1
    w2_pad = jnp.zeros((nhid, c_pad), jnp.float32).at[:, :nclass].set(w2)
    params["w1"] = w1.astype(MXU_DTYPE)
    params["w2"] = w2_pad.astype(MXU_DTYPE)
    return params


if __name__ == "__main__":
    # Small deterministic config.  nhid == args.hidden is required by the module
    # (conv1 input is nhid*2 == 2*hidden from the BiLSTM concat).  hidden=128 keeps
    # every gate / state slice lane-dense (multiples of 128).
    N, T = 8, 8                  # graph nodes (sentences), sequence length
    vocab, embed_dim = 64, 128
    hidden = nhid = 128
    nclass = 4
    num_layers = 1
    n_edges = 16

    key = jax.random.PRNGKey(0)
    k_par, k_tok, k_e1, k_e2 = jax.random.split(key, 4)

    params = make_params(k_par, vocab, embed_dim, hidden, nhid, nclass, num_layers)

    sentence = jax.random.randint(k_tok, (N, T), 0, vocab, dtype=jnp.int32)
    edge_index_1 = jax.random.randint(k_e1, (2, n_edges), 0, N, dtype=jnp.int32)
    edge_index_2 = jax.random.randint(k_e2, (2, n_edges), 0, N, dtype=jnp.int32)

    # Normalized dense adjacencies hoisted out of the forward path (static graph).
    a1 = gcn_norm_dense(edge_index_1, N)
    a2 = gcn_norm_dense(edge_index_2, N)

    out = net_forward(sentence, a1, a2, params)
    out = jax.block_until_ready(out)
    assert out.shape == (N, nclass), out.shape
    print("KERNEL_OK")
</pallas_src>

<mosaic_0001>
module attributes {stable_mosaic.version = 11 : i64} {
  func.func @kernel(%arg0: memref<64x128xbf16, #tpu.memory_space<vmem>>, %arg1: memref<128x1024xbf16, #tpu.memory_space<vmem>>, %arg2: memref<128x512xbf16, #tpu.memory_space<vmem>>, %arg3: memref<128x512xbf16, #tpu.memory_space<vmem>>, %arg4: memref<1x1024xf32, #tpu.memory_space<vmem>>, %arg5: memref<8x8xbf16, #tpu.memory_space<vmem>>, %arg6: memref<256x128xbf16, #tpu.memory_space<vmem>>, %arg7: memref<8x8xbf16, #tpu.memory_space<vmem>>, %arg8: memref<128x128xbf16, #tpu.memory_space<vmem>>, %arg9: memref<8x128xf32, #tpu.memory_space<vmem>>, %arg10: memref<64x1024xf32, #tpu.memory_space<vmem>>) attributes {dimension_semantics = [], scalar_prefetch = 0 : i64, scratch_operands = 1 : i64, tpu.core_type = #tpu.core_type<tc>} {
    %c0 = arith.constant 0 : index
    %c0_0 = arith.constant 0 : index
    %0 = vector.load %arg0[%c0, %c0_0] : memref<64x128xbf16, #tpu.memory_space<vmem>>, vector<64x128xbf16>
    %c0_1 = arith.constant 0 : index
    %c0_2 = arith.constant 0 : index
    %1 = vector.load %arg1[%c0_1, %c0_2] : memref<128x1024xbf16, #tpu.memory_space<vmem>>, vector<128x1024xbf16>
    %cst = arith.constant dense<0.000000e+00> : vector<64x1024xf32>
    %2 = tpu.matmul %0, %1, %cst {dimension_numbers = #tpu.dot_dimension_numbers<[1], [0], [0], [1], [0, 0, 1, 1], [], []>} : vector<64x128xbf16>, vector<128x1024xbf16>, vector<64x1024xf32> -> vector<64x1024xf32>
    %c0_3 = arith.constant 0 : index
    %c0_4 = arith.constant 0 : index
    %3 = vector.load %arg4[%c0_3, %c0_4] : memref<1x1024xf32, #tpu.memory_space<vmem>>, vector<1x1024xf32>
    %4 = vector.broadcast %3 : vector<1x1024xf32> to vector<64x1024xf32>
    %5 = arith.addf %2, %4 : vector<64x1024xf32>
    %c0_5 = arith.constant 0 : index
    %c0_6 = arith.constant 0 : index
    %6 = vector.load %arg10[%c0_5, %c0_6] : memref<64x1024xf32, #tpu.memory_space<vmem>>, vector<64x1024xf32>
    tpu.vector_store %arg10[%c0_5, %c0_6], %5 {strides = array<i32>} : memref<64x1024xf32, #tpu.memory_space<vmem>>, vector<64x1024xf32>,
    %c0_7 = arith.constant 0 : index
    %c0_8 = arith.constant 0 : index
    %7 = vector.load %arg2[%c0_7, %c0_8] : memref<128x512xbf16, #tpu.memory_space<vmem>>, vector<128x512xbf16>
    %c0_9 = arith.constant 0 : index
    %c0_10 = arith.constant 0 : index
    %8 = vector.load %arg3[%c0_9, %c0_10] : memref<128x512xbf16, #tpu.memory_space<vmem>>, vector<128x512xbf16>
    %cst_11 = arith.constant 0.000000e+00 : bf16
    %9 = vector.broadcast %cst_11 : bf16 to vector<8x128xbf16>
    %cst_12 = arith.constant 0.000000e+00 : bf16
    %10 = vector.broadcast %cst_12 : bf16 to vector<8x128xbf16>
    %cst_13 = arith.constant 0.000000e+00 : f32
    %11 = vector.broadcast %cst_13 : f32 to vector<8x128xf32>
    %cst_14 = arith.constant 0.000000e+00 : f32
    %12 = vector.broadcast %cst_14 : f32 to vector<8x128xf32>
    %cst_15 = arith.constant dense<0.000000e+00> : vector<8x512xf32>
    %13 = tpu.matmul %9, %7, %cst_15 {dimension_numbers = #tpu.dot_dimension_numbers<[1], [0], [0], [1], [0, 0, 1, 1], [], []>} : vector<8x128xbf16>, vector<128x512xbf16>, vector<8x512xf32> -> vector<8x512xf32>
    %cst_16 = arith.constant dense<0.000000e+00> : vector<8x512xf32>
    %14 = tpu.matmul %10, %8, %cst_16 {dimension_numbers = #tpu.dot_dimension_numbers<[1], [0], [0], [1], [0, 0, 1, 1], [], []>} : vector<8x128xbf16>, vector<128x512xbf16>, vector<8x512xf32> -> vector<8x512xf32>
    %c0_17 = arith.constant 0 : index
    %c0_18 = arith.constant 0 : index
    %15 = vector.load %arg10[%c0_17, %c0_18] : memref<64x1024xf32, #tpu.memory_space<vmem>>, vector<8x512xf32>
    %16 = arith.addf %15, %13 : vector<8x512xf32>
    %c56 = arith.constant 56 : index
    %c512 = arith.constant 512 : index
    %17 = vector.load %arg10[%c56, %c512] : memref<64x1024xf32, #tpu.memory_space<vmem>>, vector<8x512xf32>
    %18 = arith.addf %17, %14 : vector<8x512xf32>
    %19 = vector.extract_strided_slice %16 {offsets = [0, 0], sizes = [8, 128], strides = [1, 1]} : vector<8x512xf32> to vector<8x128xf32>
    %20 = arith.negf %19 : vector<8x128xf32>
    %21 = math.exp %20 : vector<8x128xf32>
    %cst_19 = arith.constant 1.000000e+00 : f32
    %22 = vector.broadcast %cst_19 : f32 to vector<8x128xf32>
    %23 = arith.addf %22, %21 : vector<8x128xf32>
    %24 = arith.divf %22, %23 : vector<8x128xf32>
    %25 = vector.extract_strided_slice %16 {offsets = [0, 128], sizes = [8, 128], strides = [1, 1]} : vector<8x512xf32> to vector<8x128xf32>
    %26 = arith.negf %25 : vector<8x128xf32>
    %27 = math.exp %26 : vector<8x128xf32>
    %cst_20 = arith.constant 1.000000e+00 : f32
    %28 = vector.broadcast %cst_20 : f32 to vector<8x128xf32>
    %29 = arith.addf %28, %27 : vector<8x128xf32>
    %30 = arith.divf %28, %29 : vector<8x128xf32>
    %31 = vector.extract_strided_slice %16 {offsets = [0, 256], sizes = [8, 128], strides = [1, 1]} : vector<8x512xf32> to vector<8x128xf32>
    %32 = math.tanh %31 : vector<8x128xf32>
    %33 = vector.extract_strided_slice %16 {offsets = [0, 384], sizes = [8, 128], strides = [1, 1]} : vector<8x512xf32> to vector<8x128xf32>
    %34 = arith.negf %33 : vector<8x128xf32>
    %35 = math.exp %34 : vector<8x128xf32>
    %cst_21 = arith.constant 1.000000e+00 : f32
    %36 = vector.broadcast %cst_21 : f32 to vector<8x128xf32>
    %37 = arith.addf %36, %35 : vector<8x128xf32>
    %38 = arith.divf %36, %37 : vector<8x128xf32>
    %39 = arith.mulf %30, %11 : vector<8x128xf32>
    %40 = arith.mulf %24, %32 : vector<8x128xf32>
    %41 = arith.addf %39, %40 : vector<8x128xf32>
    %42 = math.tanh %41 : vector<8x128xf32>
    %43 = arith.mulf %38, %42 : vector<8x128xf32>
    %44 = vector.extract_strided_slice %18 {offsets = [0, 0], sizes = [8, 128], strides = [1, 1]} : vector<8x512xf32> to vector<8x128xf32>
    %45 = arith.negf %44 : vector<8x128xf32>
    %46 = math.exp %45 : vector<8x128xf32>
    %cst_22 = arith.constant 1.000000e+00 : f32
    %47 = vector.broadcast %cst_22 : f32 to vector<8x128xf32>
    %48 = arith.addf %47, %46 : vector<8x128xf32>
    %49 = arith.divf %47, %48 : vector<8x128xf32>
    %50 = vector.extract_strided_slice %18 {offsets = [0, 128], sizes = [8, 128], strides = [1, 1]} : vector<8x512xf32> to vector<8x128xf32>
    %51 = arith.negf %50 : vector<8x128xf32>
    %52 = math.exp %51 : vector<8x128xf32>
    %cst_23 = arith.constant 1.000000e+00 : f32
    %53 = vector.broadcast %cst_23 : f32 to vector<8x128xf32>
    %54 = arith.addf %53, %52 : vector<8x128xf32>
    %55 = arith.divf %53, %54 : vector<8x128xf32>
    %56 = vector.extract_strided_slice %18 {offsets = [0, 256], sizes = [8, 128], strides = [1, 1]} : vector<8x512xf32> to vector<8x128xf32>
    %57 = math.tanh %56 : vector<8x128xf32>
    %58 = vector.extract_strided_slice %18 {offsets = [0, 384], sizes = [8, 128], strides = [1, 1]} : vector<8x512xf32> to vector<8x128xf32>
    %59 = arith.negf %58 : vector<8x128xf32>
    %60 = math.exp %59 : vector<8x128xf32>
    %cst_24 = arith.constant 1.000000e+00 : f32
    %61 = vector.broadcast %cst_24 : f32 to vector<8x128xf32>
    %62 = arith.addf %61, %60 : vector<8x128xf32>
    %63 = arith.divf %61, %62 : vector<8x128xf32>
    %64 = arith.mulf %55, %12 : vector<8x128xf32>
    %65 = arith.mulf %49, %57 : vector<8x128xf32>
    %66 = arith.addf %64, %65 : vector<8x128xf32>
    %67 = math.tanh %66 : vector<8x128xf32>
    %68 = arith.mulf %63, %67 : vector<8x128xf32>
    %69 = arith.truncf %43 : vector<8x128xf32> to vector<8x128xbf16>
    %70 = arith.truncf %68 : vector<8x128xf32> to vector<8x128xbf16>
    %cst_25 = arith.constant dense<0.000000e+00> : vector<8x512xf32>
    %71 = tpu.matmul %69, %7, %cst_25 {dimension_numbers = #tpu.dot_dimension_numbers<[1], [0], [0], [1], [0, 0, 1, 1], [], []>} : vector<8x128xbf16>, vector<128x512xbf16>, vector<8x512xf32> -> vector<8x512xf32>
    %cst_26 = arith.constant dense<0.000000e+00> : vector<8x512xf32>
    %72 = tpu.matmul %70, %8, %cst_26 {dimension_numbers = #tpu.dot_dimension_numbers<[1], [0], [0], [1], [0, 0, 1, 1], [], []>} : vector<8x128xbf16>, vector<128x512xbf16>, vector<8x512xf32> -> vector<8x512xf32>
    %c8 = arith.constant 8 : index
    %c0_27 = arith.constant 0 : index
    %73 = vector.load %arg10[%c8, %c0_27] : memref<64x1024xf32, #tpu.memory_space<vmem>>, vector<8x512xf32>
    %74 = arith.addf %73, %71 : vector<8x512xf32>
    %c48 = arith.constant 48 : index
    %c512_28 = arith.constant 512 : index
    %75 = vector.load %arg10[%c48, %c512_28] : memref<64x1024xf32, #tpu.memory_space<vmem>>, vector<8x512xf32>
    %76 = arith.addf %75, %72 : vector<8x512xf32>
    %77 = vector.extract_strided_slice %74 {offsets = [0, 0], sizes = [8, 128], strides = [1, 1]} : vector<8x512xf32> to vector<8x128xf32>
    %78 = arith.negf %77 : vector<8x128xf32>
    %79 = math.exp %78 : vector<8x128xf32>
    %cst_29 = arith.constant 1.000000e+00 : f32
    %80 = vector.broadcast %cst_29 : f32 to vector<8x128xf32>
    %81 = arith.addf %80, %79 : vector<8x128xf32>
    %82 = arith.divf %80, %81 : vector<8x128xf32>
    %83 = vector.extract_strided_slice %74 {offsets = [0, 128], sizes = [8, 128], strides = [1, 1]} : vector<8x512xf32> to vector<8x128xf32>
    %84 = arith.negf %83 : vector<8x128xf32>
    %85 = math.exp %84 : vector<8x128xf32>
    %cst_30 = arith.constant 1.000000e+00 : f32
    %86 = vector.broadcast %cst_30 : f32 to vector<8x128xf32>
    %87 = arith.addf %86, %85 : vector<8x128xf32>
    %88 = arith.divf %86, %87 : vector<8x128xf32>
    %89 = vector.extract_strided_slice %74 {offsets = [0, 256], sizes = [8, 128], strides = [1, 1]} : vector<8x512xf32> to vector<8x128xf32>
    %90 = math.tanh %89 : vector<8x128xf32>
    %91 = vector.extract_strided_slice %74 {offsets = [0, 384], sizes = [8, 128], strides = [1, 1]} : vector<8x512xf32> to vector<8x128xf32>
    %92 = arith.negf %91 : vector<8x128xf32>
    %93 = math.exp %92 : vector<8x128xf32>
    %cst_31 = arith.constant 1.000000e+00 : f32
    %94 = vector.broadcast %cst_31 : f32 to vector<8x128xf32>
    %95 = arith.addf %94, %93 : vector<8x128xf32>
    %96 = arith.divf %94, %95 : vector<8x128xf32>
    %97 = arith.mulf %88, %41 : vector<8x128xf32>
    %98 = arith.mulf %82, %90 : vector<8x128xf32>
    %99 = arith.addf %97, %98 : vector<8x128xf32>
    %100 = math.tanh %99 : vector<8x128xf32>
    %101 = arith.mulf %96, %100 : vector<8x128xf32>
    %102 = vector.extract_strided_slice %76 {offsets = [0, 0], sizes = [8, 128], strides = [1, 1]} : vector<8x512xf32> to vector<8x128xf32>
    %103 = arith.negf %102 : vector<8x128xf32>
    %104 = math.exp %103 : vector<8x128xf32>
    %cst_32 = arith.constant 1.000000e+00 : f32
    %105 = vector.broadcast %cst_32 : f32 to vector<8x128xf32>
    %106 = arith.addf %105, %104 : vector<8x128xf32>
    %107 = arith.divf %105, %106 : vector<8x128xf32>
    %108 = vector.extract_strided_slice %76 {offsets = [0, 128], sizes = [8, 128], strides = [1, 1]} : vector<8x512xf32> to vector<8x128xf32>
    %109 = arith.negf %108 : vector<8x128xf32>
    %110 = math.exp %109 : vector<8x128xf32>
    %cst_33 = arith.constant 1.000000e+00 : f32
    %111 = vector.broadcast %cst_33 : f32 to vector<8x128xf32>
    %112 = arith.addf %111, %110 : vector<8x128xf32>
    %113 = arith.divf %111, %112 : vector<8x128xf32>
    %114 = vector.extract_strided_slice %76 {offsets = [0, 256], sizes = [8, 128], strides = [1, 1]} : vector<8x512xf32> to vector<8x128xf32>
    %115 = math.tanh %114 : vector<8x128xf32>
    %116 = vector.extract_strided_slice %76 {offsets = [0, 384], sizes = [8, 128], strides = [1, 1]} : vector<8x512xf32> to vector<8x128xf32>
    %117 = arith.negf %116 : vector<8x128xf32>
    %118 = math.exp %117 : vector<8x128xf32>
    %cst_34 = arith.constant 1.000000e+00 : f32
    %119 = vector.broadcast %cst_34 : f32 to vector<8x128xf32>
    %120 = arith.addf %119, %118 : vector<8x128xf32>
    %121 = arith.divf %119, %120 : vector<8x128xf32>
    %122 = arith.mulf %113, %66 : vector<8x128xf32>
    %123 = arith.mulf %107, %115 : vector<8x128xf32>
    %124 = arith.addf %122, %123 : vector<8x128xf32>
    %125 = math.tanh %124 : vector<8x128xf32>
    %126 = arith.mulf %121, %125 : vector<8x128xf32>
    %127 = arith.truncf %101 : vector<8x128xf32> to vector<8x128xbf16>
    %128 = arith.truncf %126 : vector<8x128xf32> to vector<8x128xbf16>
    %cst_35 = arith.constant dense<0.000000e+00> : vector<8x512xf32>
    %129 = tpu.matmul %127, %7, %cst_35 {dimension_numbers = #tpu.dot_dimension_numbers<[1], [0], [0], [1], [0, 0, 1, 1], [], []>} : vector<8x128xbf16>, vector<128x512xbf16>, vector<8x512xf32> -> vector<8x512xf32>
    %cst_36 = arith.constant dense<0.000000e+00> : vector<8x512xf32>
    %130 = tpu.matmul %128, %8, %cst_36 {dimension_numbers = #tpu.dot_dimension_numbers<[1], [0], [0], [1], [0, 0, 1, 1], [], []>} : vector<8x128xbf16>, vector<128x512xbf16>, vector<8x512xf32> -> vector<8x512xf32>
    %c16 = arith.constant 16 : index
    %c0_37 = arith.constant 0 : index
    %131 = vector.load %arg10[%c16, %c0_37] : memref<64x1024xf32, #tpu.memory_space<vmem>>, vector<8x512xf32>
    %132 = arith.addf %131, %129 : vector<8x512xf32>
    %c40 = arith.constant 40 : index
    %c512_38 = arith.constant 512 : index
    %133 = vector.load %arg10[%c40, %c512_38] : memref<64x1024xf32, #tpu.memory_space<vmem>>, vector<8x512xf32>
    %134 = arith.addf %133, %130 : vector<8x512xf32>
    %135 = vector.extract_strided_slice %132 {offsets = [0, 0], sizes = [8, 128], strides = [1, 1]} : vector<8x512xf32> to vector<8x128xf32>
    %136 = arith.negf %135 : vector<8x128xf32>
    %137 = math.exp %136 : vector<8x128xf32>
    %cst_39 = arith.constant 1.000000e+00 : f32
    %138 = vector.broadcast %cst_39 : f32 to vector<8x128xf32>
    %139 = arith.addf %138, %137 : vector<8x128xf32>
    %140 = arith.divf %138, %139 : vector<8x128xf32>
    %141 = vector.extract_strided_slice %132 {offsets = [0, 128], sizes = [8, 128], strides = [1, 1]} : vector<8x512xf32> to vector<8x128xf32>
    %142 = arith.negf %141 : vector<8x128xf32>
    %143 = math.exp %142 : vector<8x128xf32>
    %cst_40 = arith.constant 1.000000e+00 : f32
    %144 = vector.broadcast %cst_40 : f32 to vector<8x128xf32>
    %145 = arith.addf %144, %143 : vector<8x128xf32>
    %146 = arith.divf %144, %145 : vector<8x128xf32>
    %147 = vector.extract_strided_slice %132 {offsets = [0, 256], sizes = [8, 128], strides = [1, 1]} : vector<8x512xf32> to vector<8x128xf32>
    %148 = math.tanh %147 : vector<8x128xf32>
    %149 = vector.extract_strided_slice %132 {offsets = [0, 384], sizes = [8, 128], strides = [1, 1]} : vector<8x512xf32> to vector<8x128xf32>
    %150 = arith.negf %149 : vector<8x128xf32>
    %151 = math.exp %150 : vector<8x128xf32>
    %cst_41 = arith.constant 1.000000e+00 : f32
    %152 = vector.broadcast %cst_41 : f32 to vector<8x128xf32>
    %153 = arith.addf %152, %151 : vector<8x128xf32>
    %154 = arith.divf %152, %153 : vector<8x128xf32>
    %155 = arith.mulf %146, %99 : vector<8x128xf32>
    %156 = arith.mulf %140, %148 : vector<8x128xf32>
    %157 = arith.addf %155, %156 : vector<8x128xf32>
    %158 = math.tanh %157 : vector<8x128xf32>
    %159 = arith.mulf %154, %158 : vector<8x128xf32>
    %160 = vector.extract_strided_slice %134 {offsets = [0, 0], sizes = [8, 128], strides = [1, 1]} : vector<8x512xf32> to vector<8x128xf32>
    %161 = arith.negf %160 : vector<8x128xf32>
    %162 = math.exp %161 : vector<8x128xf32>
    %cst_42 = arith.constant 1.000000e+00 : f32
    %163 = vector.broadcast %cst_42 : f32 to vector<8x128xf32>
    %164 = arith.addf %163, %162 : vector<8x128xf32>
    %165 = arith.divf %163, %164 : vector<8x128xf32>
    %166 = vector.extract_strided_slice %134 {offsets = [0, 128], sizes = [8, 128], strides = [1, 1]} : vector<8x512xf32> to vector<8x128xf32>
    %167 = arith.negf %166 : vector<8x128xf32>
    %168 = math.exp %167 : vector<8x128xf32>
    %cst_43 = arith.constant 1.000000e+00 : f32
    %169 = vector.broadcast %cst_43 : f32 to vector<8x128xf32>
    %170 = arith.addf %169, %168 : vector<8x128xf32>
    %171 = arith.divf %169, %170 : vector<8x128xf32>
    %172 = vector.extract_strided_slice %134 {offsets = [0, 256], sizes = [8, 128], strides = [1, 1]} : vector<8x512xf32> to vector<8x128xf32>
    %173 = math.tanh %172 : vector<8x128xf32>
    %174 = vector.extract_strided_slice %134 {offsets = [0, 384], sizes = [8, 128], strides = [1, 1]} : vector<8x512xf32> to vector<8x128xf32>
    %175 = arith.negf %174 : vector<8x128xf32>
    %176 = math.exp %175 : vector<8x128xf32>
    %cst_44 = arith.constant 1.000000e+00 : f32
    %177 = vector.broadcast %cst_44 : f32 to vector<8x128xf32>
    %178 = arith.addf %177, %176 : vector<8x128xf32>
    %179 = arith.divf %177, %178 : vector<8x128xf32>
    %180 = arith.mulf %171, %124 : vector<8x128xf32>
    %181 = arith.mulf %165, %173 : vector<8x128xf32>
    %182 = arith.addf %180, %181 : vector<8x128xf32>
    %183 = math.tanh %182 : vector<8x128xf32>
    %184 = arith.mulf %179, %183 : vector<8x128xf32>
    %185 = arith.truncf %159 : vector<8x128xf32> to vector<8x128xbf16>
    %186 = arith.truncf %184 : vector<8x128xf32> to vector<8x128xbf16>
    %cst_45 = arith.constant dense<0.000000e+00> : vector<8x512xf32>
    %187 = tpu.matmul %185, %7, %cst_45 {dimension_numbers = #tpu.dot_dimension_numbers<[1], [0], [0], [1], [0, 0, 1, 1], [], []>} : vector<8x128xbf16>, vector<128x512xbf16>, vector<8x512xf32> -> vector<8x512xf32>
    %cst_46 = arith.constant dense<0.000000e+00> : vector<8x512xf32>
    %188 = tpu.matmul %186, %8, %cst_46 {dimension_numbers = #tpu.dot_dimension_numbers<[1], [0], [0], [1], [0, 0, 1, 1], [], []>} : vector<8x128xbf16>, vector<128x512xbf16>, vector<8x512xf32> -> vector<8x512xf32>
    %c24 = arith.constant 24 : index
    %c0_47 = arith.constant 0 : index
    %189 = vector.load %arg10[%c24, %c0_47] : memref<64x1024xf32, #tpu.memory_space<vmem>>, vector<8x512xf32>
    %190 = arith.addf %189, %187 : vector<8x512xf32>
    %c32 = arith.constant 32 : index
    %c512_48 = arith.constant 512 : index
    %191 = vector.load %arg10[%c32, %c512_48] : memref<64x1024xf32, #tpu.memory_space<vmem>>, vector<8x512xf32>
    %192 = arith.addf %191, %188 : vector<8x512xf32>
    %193 = vector.extract_strided_slice %190 {offsets = [0, 0], sizes = [8, 128], strides = [1, 1]} : vector<8x512xf32> to vector<8x128xf32>
    %194 = arith.negf %193 : vector<8x128xf32>
    %195 = math.exp %194 : vector<8x128xf32>
    %cst_49 = arith.constant 1.000000e+00 : f32
    %196 = vector.broadcast %cst_49 : f32 to vector<8x128xf32>
    %197 = arith.addf %196, %195 : vector<8x128xf32>
    %198 = arith.divf %196, %197 : vector<8x128xf32>
    %199 = vector.extract_strided_slice %190 {offsets = [0, 128], sizes = [8, 128], strides = [1, 1]} : vector<8x512xf32> to vector<8x128xf32>
    %200 = arith.negf %199 : vector<8x128xf32>
    %201 = math.exp %200 : vector<8x128xf32>
    %cst_50 = arith.constant 1.000000e+00 : f32
    %202 = vector.broadcast %cst_50 : f32 to vector<8x128xf32>
    %203 = arith.addf %202, %201 : vector<8x128xf32>
    %204 = arith.divf %202, %203 : vector<8x128xf32>
    %205 = vector.extract_strided_slice %190 {offsets = [0, 256], sizes = [8, 128], strides = [1, 1]} : vector<8x512xf32> to vector<8x128xf32>
    %206 = math.tanh %205 : vector<8x128xf32>
    %207 = vector.extract_strided_slice %190 {offsets = [0, 384], sizes = [8, 128], strides = [1, 1]} : vector<8x512xf32> to vector<8x128xf32>
    %208 = arith.negf %207 : vector<8x128xf32>
    %209 = math.exp %208 : vector<8x128xf32>
    %cst_51 = arith.constant 1.000000e+00 : f32
    %210 = vector.broadcast %cst_51 : f32 to vector<8x128xf32>
    %211 = arith.addf %210, %209 : vector<8x128xf32>
    %212 = arith.divf %210, %211 : vector<8x128xf32>
    %213 = arith.mulf %204, %157 : vector<8x128xf32>
    %214 = arith.mulf %198, %206 : vector<8x128xf32>
    %215 = arith.addf %213, %214 : vector<8x128xf32>
    %216 = math.tanh %215 : vector<8x128xf32>
    %217 = arith.mulf %212, %216 : vector<8x128xf32>
    %218 = vector.extract_strided_slice %192 {offsets = [0, 0], sizes = [8, 128], strides = [1, 1]} : vector<8x512xf32> to vector<8x128xf32>
    %219 = arith.negf %218 : vector<8x128xf32>
    %220 = math.exp %219 : vector<8x128xf32>
    %cst_52 = arith.constant 1.000000e+00 : f32
    %221 = vector.broadcast %cst_52 : f32 to vector<8x128xf32>
    %222 = arith.addf %221, %220 : vector<8x128xf32>
    %223 = arith.divf %221, %222 : vector<8x128xf32>
    %224 = vector.extract_strided_slice %192 {offsets = [0, 128], sizes = [8, 128], strides = [1, 1]} : vector<8x512xf32> to vector<8x128xf32>
    %225 = arith.negf %224 : vector<8x128xf32>
    %226 = math.exp %225 : vector<8x128xf32>
    %cst_53 = arith.constant 1.000000e+00 : f32
    %227 = vector.broadcast %cst_53 : f32 to vector<8x128xf32>
    %228 = arith.addf %227, %226 : vector<8x128xf32>
    %229 = arith.divf %227, %228 : vector<8x128xf32>
    %230 = vector.extract_strided_slice %192 {offsets = [0, 256], sizes = [8, 128], strides = [1, 1]} : vector<8x512xf32> to vector<8x128xf32>
    %231 = math.tanh %230 : vector<8x128xf32>
    %232 = vector.extract_strided_slice %192 {offsets = [0, 384], sizes = [8, 128], strides = [1, 1]} : vector<8x512xf32> to vector<8x128xf32>
    %233 = arith.negf %232 : vector<8x128xf32>
    %234 = math.exp %233 : vector<8x128xf32>
    %cst_54 = arith.constant 1.000000e+00 : f32
    %235 = vector.broadcast %cst_54 : f32 to vector<8x128xf32>
    %236 = arith.addf %235, %234 : vector<8x128xf32>
    %237 = arith.divf %235, %236 : vector<8x128xf32>
    %238 = arith.mulf %229, %182 : vector<8x128xf32>
    %239 = arith.mulf %223, %231 : vector<8x128xf32>
    %240 = arith.addf %238, %239 : vector<8x128xf32>
    %241 = math.tanh %240 : vector<8x128xf32>
    %242 = arith.mulf %237, %241 : vector<8x128xf32>
    %243 = arith.truncf %217 : vector<8x128xf32> to vector<8x128xbf16>
    %244 = arith.truncf %242 : vector<8x128xf32> to vector<8x128xbf16>
    %cst_55 = arith.constant dense<0.000000e+00> : vector<8x512xf32>
    %245 = tpu.matmul %243, %7, %cst_55 {dimension_numbers = #tpu.dot_dimension_numbers<[1], [0], [0], [1], [0, 0, 1, 1], [], []>} : vector<8x128xbf16>, vector<128x512xbf16>, vector<8x512xf32> -> vector<8x512xf32>
    %cst_56 = arith.constant dense<0.000000e+00> : vector<8x512xf32>
    %246 = tpu.matmul %244, %8, %cst_56 {dimension_numbers = #tpu.dot_dimension_numbers<[1], [0], [0], [1], [0, 0, 1, 1], [], []>} : vector<8x128xbf16>, vector<128x512xbf16>, vector<8x512xf32> -> vector<8x512xf32>
    %c32_57 = arith.constant 32 : index
    %c0_58 = arith.constant 0 : index
    %247 = vector.load %arg10[%c32_57, %c0_58] : memref<64x1024xf32, #tpu.memory_space<vmem>>, vector<8x512xf32>
    %248 = arith.addf %247, %245 : vector<8x512xf32>
    %c24_59 = arith.constant 24 : index
    %c512_60 = arith.constant 512 : index
    %249 = vector.load %arg10[%c24_59, %c512_60] : memref<64x1024xf32, #tpu.memory_space<vmem>>, vector<8x512xf32>
    %250 = arith.addf %249, %246 : vector<8x512xf32>
    %251 = vector.extract_strided_slice %248 {offsets = [0, 0], sizes = [8, 128], strides = [1, 1]} : vector<8x512xf32> to vector<8x128xf32>
    %252 = arith.negf %251 : vector<8x128xf32>
    %253 = math.exp %252 : vector<8x128xf32>
    %cst_61 = arith.constant 1.000000e+00 : f32
    %254 = vector.broadcast %cst_61 : f32 to vector<8x128xf32>
    %255 = arith.addf %254, %253 : vector<8x128xf32>
    %256 = arith.divf %254, %255 : vector<8x128xf32>
    %257 = vector.extract_strided_slice %248 {offsets = [0, 128], sizes = [8, 128], strides = [1, 1]} : vector<8x512xf32> to vector<8x128xf32>
    %258 = arith.negf %257 : vector<8x128xf32>
    %259 = math.exp %258 : vector<8x128xf32>
    %cst_62 = arith.constant 1.000000e+00 : f32
    %260 = vector.broadcast %cst_62 : f32 to vector<8x128xf32>
    %261 = arith.addf %260, %259 : vector<8x128xf32>
    %262 = arith.divf %260, %261 : vector<8x128xf32>
    %263 = vector.extract_strided_slice %248 {offsets = [0, 256], sizes = [8, 128], strides = [1, 1]} : vector<8x512xf32> to vector<8x128xf32>
    %264 = math.tanh %263 : vector<8x128xf32>
    %265 = vector.extract_strided_slice %248 {offsets = [0, 384], sizes = [8, 128], strides = [1, 1]} : vector<8x512xf32> to vector<8x128xf32>
    %266 = arith.negf %265 : vector<8x128xf32>
    %267 = math.exp %266 : vector<8x128xf32>
    %cst_63 = arith.constant 1.000000e+00 : f32
    %268 = vector.broadcast %cst_63 : f32 to vector<8x128xf32>
    %269 = arith.addf %268, %267 : vector<8x128xf32>
    %270 = arith.divf %268, %269 : vector<8x128xf32>
    %271 = arith.mulf %262, %215 : vector<8x128xf32>
    %272 = arith.mulf %256, %264 : vector<8x128xf32>
    %273 = arith.addf %271, %272 : vector<8x128xf32>
    %274 = math.tanh %273 : vector<8x128xf32>
    %275 = arith.mulf %270, %274 : vector<8x128xf32>
    %276 = vector.extract_strided_slice %250 {offsets = [0, 0], sizes = [8, 128], strides = [1, 1]} : vector<8x512xf32> to vector<8x128xf32>
    %277 = arith.negf %276 : vector<8x128xf32>
    %278 = math.exp %277 : vector<8x128xf32>
    %cst_64 = arith.constant 1.000000e+00 : f32
    %279 = vector.broadcast %cst_64 : f32 to vector<8x128xf32>
    %280 = arith.addf %279, %278 : vector<8x128xf32>
    %281 = arith.divf %279, %280 : vector<8x128xf32>
    %282 = vector.extract_strided_slice %250 {offsets = [0, 128], sizes = [8, 128], strides = [1, 1]} : vector<8x512xf32> to vector<8x128xf32>
    %283 = arith.negf %282 : vector<8x128xf32>
    %284 = math.exp %283 : vector<8x128xf32>
    %cst_65 = arith.constant 1.000000e+00 : f32
    %285 = vector.broadcast %cst_65 : f32 to vector<8x128xf32>
    %286 = arith.addf %285, %284 : vector<8x128xf32>
    %287 = arith.divf %285, %286 : vector<8x128xf32>
    %288 = vector.extract_strided_slice %250 {offsets = [0, 256], sizes = [8, 128], strides = [1, 1]} : vector<8x512xf32> to vector<8x128xf32>
    %289 = math.tanh %288 : vector<8x128xf32>
    %290 = vector.extract_strided_slice %250 {offsets = [0, 384], sizes = [8, 128], strides = [1, 1]} : vector<8x512xf32> to vector<8x128xf32>
    %291 = arith.negf %290 : vector<8x128xf32>
    %292 = math.exp %291 : vector<8x128xf32>
    %cst_66 = arith.constant 1.000000e+00 : f32
    %293 = vector.broadcast %cst_66 : f32 to vector<8x128xf32>
    %294 = arith.addf %293, %292 : vector<8x128xf32>
    %295 = arith.divf %293, %294 : vector<8x128xf32>
    %296 = arith.mulf %287, %240 : vector<8x128xf32>
    %297 = arith.mulf %281, %289 : vector<8x128xf32>
    %298 = arith.addf %296, %297 : vector<8x128xf32>
    %299 = math.tanh %298 : vector<8x128xf32>
    %300 = arith.mulf %295, %299 : vector<8x128xf32>
    %301 = arith.truncf %275 : vector<8x128xf32> to vector<8x128xbf16>
    %302 = arith.truncf %300 : vector<8x128xf32> to vector<8x128xbf16>
    %cst_67 = arith.constant dense<0.000000e+00> : vector<8x512xf32>
    %303 = tpu.matmul %301, %7, %cst_67 {dimension_numbers = #tpu.dot_dimension_numbers<[1], [0], [0], [1], [0, 0, 1, 1], [], []>} : vector<8x128xbf16>, vector<128x512xbf16>, vector<8x512xf32> -> vector<8x512xf32>
    %cst_68 = arith.constant dense<0.000000e+00> : vector<8x512xf32>
    %304 = tpu.matmul %302, %8, %cst_68 {dimension_numbers = #tpu.dot_dimension_numbers<[1], [0], [0], [1], [0, 0, 1, 1], [], []>} : vector<8x128xbf16>, vector<128x512xbf16>, vector<8x512xf32> -> vector<8x512xf32>
    %c40_69 = arith.constant 40 : index
    %c0_70 = arith.constant 0 : index
    %305 = vector.load %arg10[%c40_69, %c0_70] : memref<64x1024xf32, #tpu.memory_space<vmem>>, vector<8x512xf32>
    %306 = arith.addf %305, %303 : vector<8x512xf32>
    %c16_71 = arith.constant 16 : index
    %c512_72 = arith.constant 512 : index
    %307 = vector.load %arg10[%c16_71, %c512_72] : memref<64x1024xf32, #tpu.memory_space<vmem>>, vector<8x512xf32>
    %308 = arith.addf %307, %304 : vector<8x512xf32>
    %309 = vector.extract_strided_slice %306 {offsets = [0, 0], sizes = [8, 128], strides = [1, 1]} : vector<8x512xf32> to vector<8x128xf32>
    %310 = arith.negf %309 : vector<8x128xf32>
    %311 = math.exp %310 : vector<8x128xf32>
    %cst_73 = arith.constant 1.000000e+00 : f32
    %312 = vector.broadcast %cst_73 : f32 to vector<8x128xf32>
    %313 = arith.addf %312, %311 : vector<8x128xf32>
    %314 = arith.divf %312, %313 : vector<8x128xf32>
    %315 = vector.extract_strided_slice %306 {offsets = [0, 128], sizes = [8, 128], strides = [1, 1]} : vector<8x512xf32> to vector<8x128xf32>
    %316 = arith.negf %315 : vector<8x128xf32>
    %317 = math.exp %316 : vector<8x128xf32>
    %cst_74 = arith.constant 1.000000e+00 : f32
    %318 = vector.broadcast %cst_74 : f32 to vector<8x128xf32>
    %319 = arith.addf %318, %317 : vector<8x128xf32>
    %320 = arith.divf %318, %319 : vector<8x128xf32>
    %321 = vector.extract_strided_slice %306 {offsets = [0, 256], sizes = [8, 128], strides = [1, 1]} : vector<8x512xf32> to vector<8x128xf32>
    %322 = math.tanh %321 : vector<8x128xf32>
    %323 = vector.extract_strided_slice %306 {offsets = [0, 384], sizes = [8, 128], strides = [1, 1]} : vector<8x512xf32> to vector<8x128xf32>
    %324 = arith.negf %323 : vector<8x128xf32>
    %325 = math.exp %324 : vector<8x128xf32>
    %cst_75 = arith.constant 1.000000e+00 : f32
    %326 = vector.broadcast %cst_75 : f32 to vector<8x128xf32>
    %327 = arith.addf %326, %325 : vector<8x128xf32>
    %328 = arith.divf %326, %327 : vector<8x128xf32>
    %329 = arith.mulf %320, %273 : vector<8x128xf32>
    %330 = arith.mulf %314, %322 : vector<8x128xf32>
    %331 = arith.addf %329, %330 : vector<8x128xf32>
    %332 = math.tanh %331 : vector<8x128xf32>
    %333 = arith.mulf %328, %332 : vector<8x128xf32>
    %334 = vector.extract_strided_slice %308 {offsets = [0, 0], sizes = [8, 128], strides = [1, 1]} : vector<8x512xf32> to vector<8x128xf32>
    %335 = arith.negf %334 : vector<8x128xf32>
    %336 = math.exp %335 : vector<8x128xf32>
    %cst_76 = arith.constant 1.000000e+00 : f32
    %337 = vector.broadcast %cst_76 : f32 to vector<8x128xf32>
    %338 = arith.addf %337, %336 : vector<8x128xf32>
    %339 = arith.divf %337, %338 : vector<8x128xf32>
    %340 = vector.extract_strided_slice %308 {offsets = [0, 128], sizes = [8, 128], strides = [1, 1]} : vector<8x512xf32> to vector<8x128xf32>
    %341 = arith.negf %340 : vector<8x128xf32>
    %342 = math.exp %341 : vector<8x128xf32>
    %cst_77 = arith.constant 1.000000e+00 : f32
    %343 = vector.broadcast %cst_77 : f32 to vector<8x128xf32>
    %344 = arith.addf %343, %342 : vector<8x128xf32>
    %345 = arith.divf %343, %344 : vector<8x128xf32>
    %346 = vector.extract_strided_slice %308 {offsets = [0, 256], sizes = [8, 128], strides = [1, 1]} : vector<8x512xf32> to vector<8x128xf32>
    %347 = math.tanh %346 : vector<8x128xf32>
    %348 = vector.extract_strided_slice %308 {offsets = [0, 384], sizes = [8, 128], strides = [1, 1]} : vector<8x512xf32> to vector<8x128xf32>
    %349 = arith.negf %348 : vector<8x128xf32>
    %350 = math.exp %349 : vector<8x128xf32>
    %cst_78 = arith.constant 1.000000e+00 : f32
    %351 = vector.broadcast %cst_78 : f32 to vector<8x128xf32>
    %352 = arith.addf %351, %350 : vector<8x128xf32>
    %353 = arith.divf %351, %352 : vector<8x128xf32>
    %354 = arith.mulf %345, %298 : vector<8x128xf32>
    %355 = arith.mulf %339, %347 : vector<8x128xf32>
    %356 = arith.addf %354, %355 : vector<8x128xf32>
    %357 = math.tanh %356 : vector<8x128xf32>
    %358 = arith.mulf %353, %357 : vector<8x128xf32>
    %359 = arith.truncf %333 : vector<8x128xf32> to vector<8x128xbf16>
    %360 = arith.truncf %358 : vector<8x128xf32> to vector<8x128xbf16>
    %cst_79 = arith.constant dense<0.000000e+00> : vector<8x512xf32>
    %361 = tpu.matmul %359, %7, %cst_79 {dimension_numbers = #tpu.dot_dimension_numbers<[1], [0], [0], [1], [0, 0, 1, 1], [], []>} : vector<8x128xbf16>, vector<128x512xbf16>, vector<8x512xf32> -> vector<8x512xf32>
    %cst_80 = arith.constant dense<0.000000e+00> : vector<8x512xf32>
    %362 = tpu.matmul %360, %8, %cst_80 {dimension_numbers = #tpu.dot_dimension_numbers<[1], [0], [0], [1], [0, 0, 1, 1], [], []>} : vector<8x128xbf16>, vector<128x512xbf16>, vector<8x512xf32> -> vector<8x512xf32>
    %c48_81 = arith.constant 48 : index
    %c0_82 = arith.constant 0 : index
    %363 = vector.load %arg10[%c48_81, %c0_82] : memref<64x1024xf32, #tpu.memory_space<vmem>>, vector<8x512xf32>
    %364 = arith.addf %363, %361 : vector<8x512xf32>
    %c8_83 = arith.constant 8 : index
    %c512_84 = arith.constant 512 : index
    %365 = vector.load %arg10[%c8_83, %c512_84] : memref<64x1024xf32, #tpu.memory_space<vmem>>, vector<8x512xf32>
    %366 = arith.addf %365, %362 : vector<8x512xf32>
    %367 = vector.extract_strided_slice %364 {offsets = [0, 0], sizes = [8, 128], strides = [1, 1]} : vector<8x512xf32> to vector<8x128xf32>
    %368 = arith.negf %367 : vector<8x128xf32>
    %369 = math.exp %368 : vector<8x128xf32>
    %cst_85 = arith.constant 1.000000e+00 : f32
    %370 = vector.broadcast %cst_85 : f32 to vector<8x128xf32>
    %371 = arith.addf %370, %369 : vector<8x128xf32>
    %372 = arith.divf %370, %371 : vector<8x128xf32>
    %373 = vector.extract_strided_slice %364 {offsets = [0, 128], sizes = [8, 128], strides = [1, 1]} : vector<8x512xf32> to vector<8x128xf32>
    %374 = arith.negf %373 : vector<8x128xf32>
    %375 = math.exp %374 : vector<8x128xf32>
    %cst_86 = arith.constant 1.000000e+00 : f32
    %376 = vector.broadcast %cst_86 : f32 to vector<8x128xf32>
    %377 = arith.addf %376, %375 : vector<8x128xf32>
    %378 = arith.divf %376, %377 : vector<8x128xf32>
    %379 = vector.extract_strided_slice %364 {offsets = [0, 256], sizes = [8, 128], strides = [1, 1]} : vector<8x512xf32> to vector<8x128xf32>
    %380 = math.tanh %379 : vector<8x128xf32>
    %381 = vector.extract_strided_slice %364 {offsets = [0, 384], sizes = [8, 128], strides = [1, 1]} : vector<8x512xf32> to vector<8x128xf32>
    %382 = arith.negf %381 : vector<8x128xf32>
    %383 = math.exp %382 : vector<8x128xf32>
    %cst_87 = arith.constant 1.000000e+00 : f32
    %384 = vector.broadcast %cst_87 : f32 to vector<8x128xf32>
    %385 = arith.addf %384, %383 : vector<8x128xf32>
    %386 = arith.divf %384, %385 : vector<8x128xf32>
    %387 = arith.mulf %378, %331 : vector<8x128xf32>
    %388 = arith.mulf %372, %380 : vector<8x128xf32>
    %389 = arith.addf %387, %388 : vector<8x128xf32>
    %390 = math.tanh %389 : vector<8x128xf32>
    %391 = arith.mulf %386, %390 : vector<8x128xf32>
    %392 = vector.extract_strided_slice %366 {offsets = [0, 0], sizes = [8, 128], strides = [1, 1]} : vector<8x512xf32> to vector<8x128xf32>
    %393 = arith.negf %392 : vector<8x128xf32>
    %394 = math.exp %393 : vector<8x128xf32>
    %cst_88 = arith.constant 1.000000e+00 : f32
    %395 = vector.broadcast %cst_88 : f32 to vector<8x128xf32>
    %396 = arith.addf %395, %394 : vector<8x128xf32>
    %397 = arith.divf %395, %396 : vector<8x128xf32>
    %398 = vector.extract_strided_slice %366 {offsets = [0, 128], sizes = [8, 128], strides = [1, 1]} : vector<8x512xf32> to vector<8x128xf32>
    %399 = arith.negf %398 : vector<8x128xf32>
    %400 = math.exp %399 : vector<8x128xf32>
    %cst_89 = arith.constant 1.000000e+00 : f32
    %401 = vector.broadcast %cst_89 : f32 to vector<8x128xf32>
    %402 = arith.addf %401, %400 : vector<8x128xf32>
    %403 = arith.divf %401, %402 : vector<8x128xf32>
    %404 = vector.extract_strided_slice %366 {offsets = [0, 256], sizes = [8, 128], strides = [1, 1]} : vector<8x512xf32> to vector<8x128xf32>
    %405 = math.tanh %404 : vector<8x128xf32>
    %406 = vector.extract_strided_slice %366 {offsets = [0, 384], sizes = [8, 128], strides = [1, 1]} : vector<8x512xf32> to vector<8x128xf32>
    %407 = arith.negf %406 : vector<8x128xf32>
    %408 = math.exp %407 : vector<8x128xf32>
    %cst_90 = arith.constant 1.000000e+00 : f32
    %409 = vector.broadcast %cst_90 : f32 to vector<8x128xf32>
    %410 = arith.addf %409, %408 : vector<8x128xf32>
    %411 = arith.divf %409, %410 : vector<8x128xf32>
    %412 = arith.mulf %403, %356 : vector<8x128xf32>
    %413 = arith.mulf %397, %405 : vector<8x128xf32>
    %414 = arith.addf %412, %413 : vector<8x128xf32>
    %415 = math.tanh %414 : vector<8x128xf32>
    %416 = arith.mulf %411, %415 : vector<8x128xf32>
    %417 = arith.truncf %391 : vector<8x128xf32> to vector<8x128xbf16>
    %418 = arith.truncf %416 : vector<8x128xf32> to vector<8x128xbf16>
    %cst_91 = arith.constant dense<0.000000e+00> : vector<8x512xf32>
    %419 = tpu.matmul %417, %7, %cst_91 {dimension_numbers = #tpu.dot_dimension_numbers<[1], [0], [0], [1], [0, 0, 1, 1], [], []>} : vector<8x128xbf16>, vector<128x512xbf16>, vector<8x512xf32> -> vector<8x512xf32>
    %cst_92 = arith.constant dense<0.000000e+00> : vector<8x512xf32>
    %420 = tpu.matmul %418, %8, %cst_92 {dimension_numbers = #tpu.dot_dimension_numbers<[1], [0], [0], [1], [0, 0, 1, 1], [], []>} : vector<8x128xbf16>, vector<128x512xbf16>, vector<8x512xf32> -> vector<8x512xf32>
    %c56_93 = arith.constant 56 : index
    %c0_94 = arith.constant 0 : index
    %421 = vector.load %arg10[%c56_93, %c0_94] : memref<64x1024xf32, #tpu.memory_space<vmem>>, vector<8x512xf32>
    %422 = arith.addf %421, %419 : vector<8x512xf32>
    %c0_95 = arith.constant 0 : index
    %c512_96 = arith.constant 512 : index
    %423 = vector.load %arg10[%c0_95, %c512_96] : memref<64x1024xf32, #tpu.memory_space<vmem>>, vector<8x512xf32>
    %424 = arith.addf %423, %420 : vector<8x512xf32>
    %425 = vector.extract_strided_slice %422 {offsets = [0, 0], sizes = [8, 128], strides = [1, 1]} : vector<8x512xf32> to vector<8x128xf32>
    %426 = arith.negf %425 : vector<8x128xf32>
    %427 = math.exp %426 : vector<8x128xf32>
    %cst_97 = arith.constant 1.000000e+00 : f32
    %428 = vector.broadcast %cst_97 : f32 to vector<8x128xf32>
    %429 = arith.addf %428, %427 : vector<8x128xf32>
    %430 = arith.divf %428, %429 : vector<8x128xf32>
    %431 = vector.extract_strided_slice %422 {offsets = [0, 128], sizes = [8, 128], strides = [1, 1]} : vector<8x512xf32> to vector<8x128xf32>
    %432 = arith.negf %431 : vector<8x128xf32>
    %433 = math.exp %432 : vector<8x128xf32>
    %cst_98 = arith.constant 1.000000e+00 : f32
    %434 = vector.broadcast %cst_98 : f32 to vector<8x128xf32>
    %435 = arith.addf %434, %433 : vector<8x128xf32>
    %436 = arith.divf %434, %435 : vector<8x128xf32>
    %437 = vector.extract_strided_slice %422 {offsets = [0, 256], sizes = [8, 128], strides = [1, 1]} : vector<8x512xf32> to vector<8x128xf32>
    %438 = math.tanh %437 : vector<8x128xf32>
    %439 = vector.extract_strided_slice %422 {offsets = [0, 384], sizes = [8, 128], strides = [1, 1]} : vector<8x512xf32> to vector<8x128xf32>
    %440 = arith.negf %439 : vector<8x128xf32>
    %441 = math.exp %440 : vector<8x128xf32>
    %cst_99 = arith.constant 1.000000e+00 : f32
    %442 = vector.broadcast %cst_99 : f32 to vector<8x128xf32>
    %443 = arith.addf %442, %441 : vector<8x128xf32>
    %444 = arith.divf %442, %443 : vector<8x128xf32>
    %445 = arith.mulf %436, %389 : vector<8x128xf32>
    %446 = arith.mulf %430, %438 : vector<8x128xf32>
    %447 = arith.addf %445, %446 : vector<8x128xf32>
    %448 = math.tanh %447 : vector<8x128xf32>
    %449 = arith.mulf %444, %448 : vector<8x128xf32>
    %450 = vector.extract_strided_slice %424 {offsets = [0, 0], sizes = [8, 128], strides = [1, 1]} : vector<8x512xf32> to vector<8x128xf32>
    %451 = arith.negf %450 : vector<8x128xf32>
    %452 = math.exp %451 : vector<8x128xf32>
    %cst_100 = arith.constant 1.000000e+00 : f32
    %453 = vector.broadcast %cst_100 : f32 to vector<8x128xf32>
    %454 = arith.addf %453, %452 : vector<8x128xf32>
    %455 = arith.divf %453, %454 : vector<8x128xf32>
    %456 = vector.extract_strided_slice %424 {offsets = [0, 128], sizes = [8, 128], strides = [1, 1]} : vector<8x512xf32> to vector<8x128xf32>
    %457 = arith.negf %456 : vector<8x128xf32>
    %458 = math.exp %457 : vector<8x128xf32>
    %cst_101 = arith.constant 1.000000e+00 : f32
    %459 = vector.broadcast %cst_101 : f32 to vector<8x128xf32>
    %460 = arith.addf %459, %458 : vector<8x128xf32>
    %461 = arith.divf %459, %460 : vector<8x128xf32>
    %462 = vector.extract_strided_slice %424 {offsets = [0, 256], sizes = [8, 128], strides = [1, 1]} : vector<8x512xf32> to vector<8x128xf32>
    %463 = math.tanh %462 : vector<8x128xf32>
    %464 = vector.extract_strided_slice %424 {offsets = [0, 384], sizes = [8, 128], strides = [1, 1]} : vector<8x512xf32> to vector<8x128xf32>
    %465 = arith.negf %464 : vector<8x128xf32>
    %466 = math.exp %465 : vector<8x128xf32>
    %cst_102 = arith.constant 1.000000e+00 : f32
    %467 = vector.broadcast %cst_102 : f32 to vector<8x128xf32>
    %468 = arith.addf %467, %466 : vector<8x128xf32>
    %469 = arith.divf %467, %468 : vector<8x128xf32>
    %470 = arith.mulf %461, %414 : vector<8x128xf32>
    %471 = arith.mulf %455, %463 : vector<8x128xf32>
    %472 = arith.addf %470, %471 : vector<8x128xf32>
    %473 = math.tanh %472 : vector<8x128xf32>
    %474 = arith.mulf %469, %473 : vector<8x128xf32>
    %475 = arith.truncf %449 : vector<8x128xf32> to vector<8x128xbf16>
    %476 = arith.truncf %474 : vector<8x128xf32> to vector<8x128xbf16>
    %c0_103 = arith.constant 0 : index
    %c0_104 = arith.constant 0 : index
    %477 = vector.load %arg6[%c0_103, %c0_104] : memref<256x128xbf16, #tpu.memory_space<vmem>>, vector<128x128xbf16>
    %cst_105 = arith.constant dense<0.000000e+00> : vector<8x128xf32>
    %478 = tpu.matmul %475, %477, %cst_105 {dimension_numbers = #tpu.dot_dimension_numbers<[1], [0], [0], [1], [0, 0, 1, 1], [], []>} : vector<8x128xbf16>, vector<128x128xbf16>, vector<8x128xf32> -> vector<8x128xf32>
    %c128 = arith.constant 128 : index
    %c0_106 = arith.constant 0 : index
    %479 = vector.load %arg6[%c128, %c0_106] : memref<256x128xbf16, #tpu.memory_space<vmem>>, vector<128x128xbf16>
    %cst_107 = arith.constant dense<0.000000e+00> : vector<8x128xf32>
    %480 = tpu.matmul %476, %479, %cst_107 {dimension_numbers = #tpu.dot_dimension_numbers<[1], [0], [0], [1], [0, 0, 1, 1], [], []>} : vector<8x128xbf16>, vector<128x128xbf16>, vector<8x128xf32> -> vector<8x128xf32>
    %481 = arith.addf %478, %480 : vector<8x128xf32>
    %c0_108 = arith.constant 0 : index
    %c0_109 = arith.constant 0 : index
    %482 = vector.load %arg5[%c0_108, %c0_109] : memref<8x8xbf16, #tpu.memory_space<vmem>>, vector<8x8xbf16>
    %483 = arith.truncf %481 : vector<8x128xf32> to vector<8x128xbf16>
    %cst_110 = arith.constant dense<0.000000e+00> : vector<8x128xf32>
    %484 = tpu.matmul %482, %483, %cst_110 {dimension_numbers = #tpu.dot_dimension_numbers<[1], [0], [0], [1], [0, 0, 1, 1], [], []>} : vector<8x8xbf16>, vector<8x128xbf16>, vector<8x128xf32> -> vector<8x128xf32>
    %cst_111 = arith.constant 0.000000e+00 : f32
    %485 = vector.broadcast %cst_111 : f32 to vector<8x128xf32>
    %486 = arith.maximumf %484, %485 : vector<8x128xf32>
    %487 = arith.truncf %486 : vector<8x128xf32> to vector<8x128xbf16>
    %c0_112 = arith.constant 0 : index
    %c0_113 = arith.constant 0 : index
    %488 = vector.load %arg8[%c0_112, %c0_113] : memref<128x128xbf16, #tpu.memory_space<vmem>>, vector<128x128xbf16>
    %cst_114 = arith.constant dense<0.000000e+00> : vector<8x128xf32>
    %489 = tpu.matmul %487, %488, %cst_114 {dimension_numbers = #tpu.dot_dimension_numbers<[1], [0], [0], [1], [0, 0, 1, 1], [], []>} : vector<8x128xbf16>, vector<128x128xbf16>, vector<8x128xf32> -> vector<8x128xf32>
    %c0_115 = arith.constant 0 : index
    %c0_116 = arith.constant 0 : index
    %490 = vector.load %arg7[%c0_115, %c0_116] : memref<8x8xbf16, #tpu.memory_space<vmem>>, vector<8x8xbf16>
    %491 = arith.truncf %489 : vector<8x128xf32> to vector<8x128xbf16>
    %cst_117 = arith.constant dense<0.000000e+00> : vector<8x128xf32>
    %492 = tpu.matmul %490, %491, %cst_117 {dimension_numbers = #tpu.dot_dimension_numbers<[1], [0], [0], [1], [0, 0, 1, 1], [], []>} : vector<8x8xbf16>, vector<8x128xbf16>, vector<8x128xf32> -> vector<8x128xf32>
    %c0_118 = arith.constant 0 : index
    %c0_119 = arith.constant 0 : index
    %493 = vector.load %arg9[%c0_118, %c0_119] : memref<8x128xf32, #tpu.memory_space<vmem>>, vector<8x128xf32>
    tpu.vector_store %arg9[%c0_118, %c0_119], %492 {strides = array<i32>} : memref<8x128xf32, #tpu.memory_space<vmem>>, vector<8x128xf32>,
    return
  }
}

</mosaic_0001>

<bundles_post_ra>
// kernel: tpu_custom_call.1
= control target key start
LH: loop header
LB: loop body
LE: loop exit
PB: predicated region body
PF: predicated region fallthrough
CT: control target
= control target key end

     0   :  { %14 = vsyncpa [#allocation4], 0  ;;  %s5868_s0 = inlined_call_operand.hbm [shape: bf16[64,128], index: 0, kind: input, shape index: {}]   ;;  %s5869_s1 = inlined_call_operand.hbm [shape: bf16[128,1024], index: 1, kind: input, shape index: {}]   ;;  %s5870_s2 = inlined_call_operand.hbm [shape: bf16[128,512], index: 2, kind: input, shape index: {}]   ;;  %s5871_s3 = inlined_call_operand.hbm [shape: bf16[128,512], index: 3, kind: input, shape index: {}]   ;;  %s5872_s4 = inlined_call_operand.hbm [shape: f32[1,1024], index: 4, kind: input, shape index: {}]   ;;  %s5873_s5 = inlined_call_operand.vmem [shape: bf16[8,8], index: 5, kind: input, shape index: {}]   ;;  %s5874_s6 = inlined_call_operand.hbm [shape: bf16[256,128], index: 6, kind: input, shape index: {}]   ;;  %s5875_s7 = inlined_call_operand.vmem [shape: bf16[8,8], index: 7, kind: input, shape index: {}]   ;;  %s5876_s8 = inlined_call_operand.hbm [shape: bf16[128,128], index: 8, kind: input, shape index: {}]   ;;  %s5877_s9 = inlined_call_operand.hbm [shape: f32[8,128], index: 9, kind: output, shape index: {}]  }
   0x1   :  { %15 = vsyncpa [#allocation7], 0 }
   0x2   :  { %16 = vsyncpa [#allocation10], 0 }
   0x3   :  { %17 = vsyncpa [#allocation13], 0 }
   0x4   :  { %18 = vsyncpa [#allocation5], 0  ;;  %s4600_s30 = smov [#allocation6]  }
   0x5   :  { %s36_s10 = sshll.u32 %s4600_s30, 4  ;;  %s37_s10 = int_to_ptr.vmem [resolvable:$true] %s36_s10 }
   0x6   :  { %s4438_s11 = scalar_lea.vmem %s37_s10, 8192  ;;  %p4443_p1 = scmp.lt.s32.totalorder %s37_s10, %s37_s10 }
   0x7   :  { %p4439_p0 = scmp.ne.s32.totalorder %s37_s10, %s4438_s11  ;;  %p4444_p2 = scmp.lt.s32.totalorder %s4438_s11, %s4438_s11 }
   0x9   :  { %p4445_p3 = por %p4444_p2, %p4443_p1 }
   0xb   :  { %p4446_p4 = pnand %p4445_p3, %p4439_p0 }
   0xd   :  { %4449 = shalt.err (!%p4446_p4)
}
   0xe   :  { %s4601_s12 = smov 512   ;;  %s4602_s13 = smov 32  }
   0xf   :  { %42 = dma.hbm_to_vmem [thread:$0]  %s5869_s1, 8192, %s37_s10, [#allocation7], %s4601_s12, %s4601_s12, %s4602_s13  }
  0x10   :  { %s4603_s16 = smov [#allocation9]  }
  0x11   :  { %s60_s17 = sshll.u32 %s4603_s16, 4  ;;  %s61_s17 = int_to_ptr.vmem [resolvable:$true] %s60_s17 }
  0x12   :  { %s4458_s18 = scalar_lea.vmem %s61_s17, 4096  ;;  %p4463_p6 = scmp.lt.s32.totalorder %s61_s17, %s61_s17 }
  0x13   :  { %p4459_p5 = scmp.ne.s32.totalorder %s61_s17, %s4458_s18  ;;  %p4464_p7 = scmp.lt.s32.totalorder %s4458_s18, %s4458_s18 }
  0x15   :  { %p4465_p8 = por %p4464_p7, %p4463_p6 }
  0x17   :  { %p4466_p9 = pnand %p4465_p8, %p4459_p5 }
  0x19   :  { %4469 = shalt.err (!%p4466_p9)
}
  0x1a   :  { %s4604_s19 = smov 256   ;;  %s4605_s20 = smov 16  }
  0x1b   :  { %66 = dma.hbm_to_vmem [thread:$0]  %s5871_s3, 4096, %s61_s17, [#allocation10], %s4604_s19, %s4604_s19, %s4605_s20  }
  0x1c   :  { %s4606_s1 = smov [#allocation12]   ;;  %s4607_s24 = smov [#allocation3]  }
  0x1d   :  { %s84_s23 = sshll.u32 %s4606_s1, 4  ;;  %s24_s25 = sshll.u32 %s4607_s24, 4  ;;  %s85_s23 = int_to_ptr.vmem [resolvable:$true] %s84_s23  ;;  %s25_s25 = int_to_ptr.vmem [resolvable:$true] %s24_s25 }
  0x1e   :  { %s4478_s26 = scalar_lea.vmem %s85_s23, 2048  ;;  %p4483_p11 = scmp.lt.s32.totalorder %s85_s23, %s85_s23 }
  0x1f   :  { %p4479_p10 = scmp.ne.s32.totalorder %s85_s23, %s4478_s26  ;;  %p4484_p12 = scmp.lt.s32.totalorder %s4478_s26, %s4478_s26 }
  0x21   :  { %p4485_p13 = por %p4484_p12, %p4483_p11 }
  0x23   :  { %p4486_p0 = pnand %p4485_p13, %p4479_p10 }
  0x25   :  { %4489 = shalt.err (!%p4486_p0)
}
  0x26   :  { %s4608_s27 = smov 64   ;;  %s4609_s28 = smov 4  }
  0x27   :  { %90 = dma.hbm_to_vmem [thread:$0]  %s5874_s6, 2048, %s85_s23, [#allocation13], %s4608_s27, %s4608_s27, %s4609_s28  }
  0x28   :  { %s4498_s30 = scalar_lea.vmem %s25_s25, 512  ;;  %p4503_p2 = scmp.lt.s32.totalorder %s25_s25, %s25_s25 }
  0x29   :  { %p4499_p1 = scmp.ne.s32.totalorder %s25_s25, %s4498_s30  ;;  %p4504_p3 = scmp.lt.s32.totalorder %s4498_s30, %s4498_s30 }
  0x2b   :  { %p4505_p4 = por %p4504_p3, %p4503_p2 }
  0x2d   :  { %p4506_p5 = pnand %p4505_p4, %p4499_p1 }
  0x2f   :  { %4509 = shalt.err (!%p4506_p5)
}
  0x30   :  { %30 = dma.hbm_to_vmem [thread:$0]  %s5868_s0, 512, %s25_s25, [#allocation4], %s4608_s27, %s4608_s27, %s4609_s28  }
  0x31   :  { %s4610_s12 = smov [#allocation8]   ;;  %s4611_s14 = smov [#allocation11]  }
  0x32   :  { %s48_s13 = sshll.u32 %s4610_s12, 4  ;;  %s73_s15 = sshll.u32 %s4611_s14, 4  ;;  %s49_s13 = int_to_ptr.vmem [resolvable:$true] %s48_s13  ;;  %s74_s15 = int_to_ptr.vmem [resolvable:$true] %s73_s15 }
  0x33   :  { %s4518_s6 = scalar_lea.vmem %s49_s13, 4096  ;;  %p4523_p7 = scmp.lt.s32.totalorder %s49_s13, %s49_s13 }
  0x34   :  { %p4519_p6 = scmp.ne.s32.totalorder %s49_s13, %s4518_s6  ;;  %p4524_p8 = scmp.lt.s32.totalorder %s4518_s6, %s4518_s6 }
  0x36   :  { %p4525_p9 = por %p4524_p8, %p4523_p7 }
  0x38   :  { %p4526_p10 = pnand %p4525_p9, %p4519_p6 }
  0x3a   :  { %4529 = shalt.err (!%p4526_p10)
}
  0x3b   :  { %54 = dma.hbm_to_vmem [thread:$0]  %s5870_s2, 4096, %s49_s13, [#allocation7], %s4604_s19, %s4604_s19, %s4605_s20  }
  0x3c   :  { %s4538_s0 = scalar_lea.vmem %s74_s15, 128  ;;  %p4543_p12 = scmp.lt.s32.totalorder %s74_s15, %s74_s15 }
  0x3d   :  { %p4539_p11 = scmp.ne.s32.totalorder %s74_s15, %s4538_s0  ;;  %p4544_p13 = scmp.lt.s32.totalorder %s4538_s0, %s4538_s0 }
  0x3f   :  { %p4545_p0 = por %p4544_p13, %p4543_p12 }
  0x41   :  { %p4546_p1 = pnand %p4545_p0, %p4539_p11 }
  0x43   :  { %4549 = shalt.err (!%p4546_p1)
}
  0x44   :  { %76 = dma.hbm_to_vmem [thread:$0]  %s5872_s4, 128, %s74_s15, [#allocation10]  }
  0x45   :  { %s4612_s22 = smov [#allocation14]  }
  0x46   :  { %s98_s1 = sshll.u32 %s4612_s22, 4  ;;  %s99_s1 = int_to_ptr.vmem [resolvable:$true] %s98_s1 }
  0x47   :  { %s4558_s23 = scalar_lea.vmem %s99_s1, 1024  ;;  %p4563_p3 = scmp.lt.s32.totalorder %s99_s1, %s99_s1 }
  0x48   :  { %p4559_p2 = scmp.ne.s32.totalorder %s99_s1, %s4558_s23  ;;  %p4564_p4 = scmp.lt.s32.totalorder %s4558_s23, %s4558_s23 }
  0x4a   :  { %p4565_p5 = por %p4564_p4, %p4563_p3 }
  0x4c   :  { %p4566_p6 = pnand %p4565_p5, %p4559_p2 }
  0x4e   :  { %4569 = shalt.err (!%p4566_p6)
}
  0x4f   :  { %104 = dma.hbm_to_vmem [thread:$0]  %s5876_s8, 1024, %s99_s1, [#allocation13], %s4608_s27, %s4608_s27, %s4609_s28  }
  0x50   :  { %4590 = dma.done.wait [#allocation4], 512  }
  0x51   :  { %4591 = vsyncadd [#allocation4], 4294966784 }
  0x52   :  { %4592 = dma.done.wait [#allocation7], 12288  }
  0x53   :  { %4593 = vsyncadd [#allocation7], 4294955008 }
  0x54   :  { %4594 = dma.done.wait [#allocation10], 4224  }
  0x55   :  { %4595 = vsyncadd [#allocation10], 4294963072 }
  0x56   :  { %4596 = dma.done.wait [#allocation13], 3072  }
  0x57   :  { %4597 = vsyncadd [#allocation13], 4294964224  ;;  %v5878_v0 = vmov 0   ;;  %v191_v1 = vld [vmem:[#allocation6 + $0x1c0] sm:$0xff]  ;;  %v192_v3 = vld [vmem:[#allocation6 + $0x1c8] sm:$0xff]  ;;  %vm4615_vm0 = vmmov 0  }
  0x58   :  { %617 = vmatprep.mubr.bf16.mxu0 %v5878_v0  ;;  %690 = vmatprep.mubr.bf16.mxu1 %v5878_v0  ;;  %v195_v2 = vld [vmem:[#allocation6 + $0x1e0] sm:$0xff]  ;;  %v196_v5 = vld [vmem:[#allocation6 + $0x1e8] sm:$0xff]  ;;  %v193_v62 = vld [vmem:[#allocation6 + $0x1d0] sm:$0xff]  ;;  %vm3379_vm1 = vcmask 1043456   ;;  %vm3375_vm2 = vcmask 64512   ;;  %s4616_s24 = smov [#allocation15]  }
  0x59   :  { %v3657_v4 = vcombine.high %v191_v1, %v195_v2  ;;  %v3656_v6 = vcombine.low %v191_v1, %v195_v2  ;;  %v183_v7 = vld [vmem:[#allocation6 + $0x180] sm:$0xff]  ;;  %v3659_v9 = vcombine.high %v192_v3, %v196_v5  ;;  %v3658_v10 = vcombine.low %v192_v3, %v196_v5  ;;  %v184_v12 = vld [vmem:[#allocation6 + $0x188] sm:$0xff]  ;;  %v197_v1 = vld [vmem:[#allocation6 + $0x1f0] sm:$0xff]  ;;  %s3584_s25 = sshll.u32 %s4616_s24, 4  ;;  %s3585_s25 = int_to_ptr.vmem [resolvable:$true] %s3584_s25 }
  0x5a   :  { %v187_v8 = vld [vmem:[#allocation6 + $0x1a0] sm:$0xff]  ;;  %v188_v13 = vld [vmem:[#allocation6 + $0x1a8] sm:$0xff]  ;;  %v194_v2 = vld [vmem:[#allocation6 + $0x1d8] sm:$0xff]  ;;  %s4570_s26 = scalar_lea.vmem %s3585_s25, 128  ;;  %p4575_p8 = scmp.lt.s32.totalorder %s3585_s25, %s3585_s25 }
  0x5b   :  { %v3649_v11 = vcombine.high %v183_v7, %v187_v8  ;;  %v175_v14 = vld [vmem:[#allocation6 + $0x140] sm:$0xff]  ;;  %585 = vmatprep.subr.bf16.mxu0 %v3657_v4  ;;  %v3651_v15 = vcombine.high %v184_v12, %v188_v13  ;;  %v176_v17 = vld [vmem:[#allocation6 + $0x148] sm:$0xff]  ;;  %658 = vmatprep.subr.bf16.mxu1 %v3659_v9  ;;  %v3648_v19 = vcombine.low %v183_v7, %v187_v8  ;;  %v198_v3 = vld [vmem:[#allocation6 + $0x1f8] sm:$0xff]  ;;  %p4571_p7 = scmp.ne.s32.totalorder %s3585_s25, %s4570_s26  ;;  %p4576_p9 = scmp.lt.s32.totalorder %s4570_s26, %s4570_s26 }
  0x5c   :  { %v179_v16 = vld [vmem:[#allocation6 + $0x160] sm:$0xff]  ;;  %v180_v18 = vld [vmem:[#allocation6 + $0x168] sm:$0xff]  ;;  %586 = vmatpush1.bf16.msra.mxu0 %v3656_v6  ;;  %659 = vmatpush1.bf16.msra.mxu1 %v3658_v10  ;;  %v3650_v20 = vcombine.low %v184_v12, %v188_v13  ;;  %v3661_v7 = vcombine.high %v193_v62, %v197_v1  ;;  %v185_v8 = vld [vmem:[#allocation6 + $0x190] sm:$0xff]  ;;  %v3663_v9 = vcombine.high %v194_v2, %v198_v3 }
  0x5d   :  { %587 = vmatprep.subr.bf16.mxu0 %v3649_v11  ;;  %v3641_v21 = vcombine.high %v175_v14, %v179_v16  ;;  %660 = vmatprep.subr.bf16.mxu1 %v3651_v15  ;;  %v3643_v22 = vcombine.high %v176_v17, %v180_v18  ;;  %v167_v23 = vld [vmem:[#allocation6 + $0x100] sm:$0xff]  ;;  %v168_v25 = vld [vmem:[#allocation6 + $0x108] sm:$0xff]  ;;  %v3640_v27 = vcombine.low %v175_v14, %v179_v16  ;;  %v189_v10 = vld [vmem:[#allocation6 + $0x1b0] sm:$0xff]  ;;  %p4577_p10 = por %p4576_p9, %p4575_p8 }
  0x5e   :  { %v171_v24 = vld [vmem:[#allocation6 + $0x120] sm:$0xff]  ;;  %v172_v26 = vld [vmem:[#allocation6 + $0x128] sm:$0xff]  ;;  %v3642_v28 = vcombine.low %v176_v17, %v180_v18  ;;  %v186_v11 = vld [vmem:[#allocation6 + $0x198] sm:$0xff]  ;;  %v3660_v13 = vcombine.low %v193_v62, %v197_v1  ;;  %v3662_v14 = vcombine.low %v194_v2, %v198_v3  ;;  %v3653_v15 = vcombine.high %v185_v8, %v189_v10 }
  0x5f   :  { %v3633_v29 = vcombine.high %v167_v23, %v171_v24  ;;  %v3635_v30 = vcombine.high %v168_v25, %v172_v26  ;;  %v159_v31 = vld [vmem:[#allocation6 + $0xc0] sm:$0xff]  ;;  %v160_v33 = vld [vmem:[#allocation6 + $0xc8] sm:$0xff]  ;;  %v3632_v35 = vcombine.low %v167_v23, %v171_v24  ;;  %v3634_v36 = vcombine.low %v168_v25, %v172_v26  ;;  %v190_v12 = vld [vmem:[#allocation6 + $0x1b8] sm:$0xff]  ;;  %p4578_p11 = pnand %p4577_p10, %p4571_p7 }
  0x60   :  { %588 = vmatpush1.bf16.msra.mxu0 %v3648_v19  ;;  %661 = vmatpush1.bf16.msra.mxu1 %v3650_v20  ;;  %v163_v32 = vld [vmem:[#allocation6 + $0xe0] sm:$0xff]  ;;  %v164_v34 = vld [vmem:[#allocation6 + $0xe8] sm:$0xff]  ;;  %v177_v16 = vld [vmem:[#allocation6 + $0x150] sm:$0xff]  ;;  %v3655_v17 = vcombine.high %v186_v11, %v190_v12 }
  0x61   :  { %589 = vmatprep.subr.bf16.mxu0 %v3641_v21  ;;  %662 = vmatprep.subr.bf16.mxu1 %v3643_v22  ;;  %v3625_v37 = vcombine.high %v159_v31, %v163_v32  ;;  %v151_v38 = vld [vmem:[#allocation6 + $0x80] sm:$0xff]  ;;  %v3627_v39 = vcombine.high %v160_v33, %v164_v34  ;;  %v152_v41 = vld [vmem:[#allocation6 + $0x88] sm:$0xff]  ;;  %v3624_v43 = vcombine.low %v159_v31, %v163_v32  ;;  %v181_v18 = vld [vmem:[#allocation6 + $0x170] sm:$0xff] }
  0x62   :  { %v155_v40 = vld [vmem:[#allocation6 + $0xa0] sm:$0xff]  ;;  %v156_v42 = vld [vmem:[#allocation6 + $0xa8] sm:$0xff]  ;;  %v3626_v44 = vcombine.low %v160_v33, %v164_v34  ;;  %v178_v19 = vld [vmem:[#allocation6 + $0x158] sm:$0xff]  ;;  %v3652_v21 = vcombine.low %v185_v8, %v189_v10  ;;  %v3654_v22 = vcombine.low %v186_v11, %v190_v12  ;;  %v3645_v24 = vcombine.high %v177_v16, %v181_v18 }
  0x63   :  { %v3617_v45 = vcombine.high %v151_v38, %v155_v40  ;;  %v143_v46 = vld [vmem:[#allocation6 + $0x40] sm:$0xff]  ;;  %v3619_v47 = vcombine.high %v152_v41, %v156_v42  ;;  %v144_v49 = vld [vmem:[#allocation6 + $0x48] sm:$0xff]  ;;  %v3616_v51 = vcombine.low %v151_v38, %v155_v40  ;;  %v3618_v52 = vcombine.low %v152_v41, %v156_v42  ;;  %v182_v20 = vld [vmem:[#allocation6 + $0x178] sm:$0xff] }
  0x64   :  { %590 = vmatpush1.bf16.msra.mxu0 %v3640_v27  ;;  %663 = vmatpush1.bf16.msra.mxu1 %v3642_v28  ;;  %v147_v48 = vld [vmem:[#allocation6 + $0x60] sm:$0xff]  ;;  %v148_v50 = vld [vmem:[#allocation6 + $0x68] sm:$0xff]  ;;  %v169_v25 = vld [vmem:[#allocation6 + $0x110] sm:$0xff]  ;;  %v3647_v26 = vcombine.high %v178_v19, %v182_v20  ;;  %v3646_v31 = vcombine.low %v178_v19, %v182_v20 }
  0x65   :  { %591 = vmatprep.subr.bf16.mxu0 %v3633_v29  ;;  %664 = vmatprep.subr.bf16.mxu1 %v3635_v30  ;;  %v3609_v53 = vcombine.high %v143_v46, %v147_v48  ;;  %v3611_v54 = vcombine.high %v144_v49, %v148_v50  ;;  %v135_v55 = vld [vmem:[#allocation6] sm:$0xff]  ;;  %v136_v57 = vld [vmem:[#allocation6 + $0x8] sm:$0xff]  ;;  %v3608_v59 = vcombine.low %v143_v46, %v147_v48  ;;  %v173_v27 = vld [vmem:[#allocation6 + $0x130] sm:$0xff] }
  0x66   :  { %v139_v56 = vld [vmem:[#allocation6 + $0x20] sm:$0xff]  ;;  %v140_v58 = vld [vmem:[#allocation6 + $0x28] sm:$0xff]  ;;  %v3610_v60 = vcombine.low %v144_v49, %v148_v50  ;;  %v170_v28 = vld [vmem:[#allocation6 + $0x118] sm:$0xff]  ;;  %v3644_v30 = vcombine.low %v177_v16, %v181_v18  ;;  %v3637_v32 = vcombine.high %v169_v25, %v173_v27  ;;  %v3636_v38 = vcombine.low %v169_v25, %v173_v27 }
  0x67   :  { %v3601_v61 = vcombine.high %v135_v55, %v139_v56  ;;  %v3603_v63 = vcombine.high %v136_v57, %v140_v58  ;;  %v3600_v4 = vcombine.low %v135_v55, %v139_v56  ;;  %v3602_v5 = vcombine.low %v136_v57, %v140_v58  ;;  %v4705_v6 = vld [vmem:[#allocation3] sm:$0xff]   ;;  %v4709_v23 = vld [vmem:[#allocation3 + $0x8] sm:$0xff]   ;;  %v174_v29 = vld [vmem:[#allocation6 + $0x138] sm:$0xff] }
  0x68   :  { %592 = vmatpush1.bf16.msra.mxu0 %v3632_v35  ;;  %665 = vmatpush1.bf16.msra.mxu1 %v3634_v36  ;;  %v161_v33 = vld [vmem:[#allocation6 + $0xd0] sm:$0xff]  ;;  %v3639_v34 = vcombine.high %v170_v28, %v174_v29  ;;  %v162_v36 = vld [vmem:[#allocation6 + $0xd8] sm:$0xff] }
  0x69   :  { %593 = vmatprep.subr.bf16.mxu0 %v3625_v37  ;;  %666 = vmatprep.subr.bf16.mxu1 %v3627_v39  ;;  %v165_v35 = vld [vmem:[#allocation6 + $0xf0] sm:$0xff]  ;;  %v166_v37 = vld [vmem:[#allocation6 + $0xf8] sm:$0xff]  ;;  %v3638_v39 = vcombine.low %v170_v28, %v174_v29 }
  0x6a   :  { %v4715_v40 = vld [vmem:[#allocation3 + $0x10] sm:$0xff]   ;;  %v3629_v41 = vcombine.high %v161_v33, %v165_v35  ;;  %v158_v46 = vld [vmem:[#allocation6 + $0xb8] sm:$0xff]  ;;  %v3630_v48 = vcombine.low %v162_v36, %v166_v37 }
  0x6b   :  { %v153_v42 = vld [vmem:[#allocation6 + $0x90] sm:$0xff]  ;;  %v4721_v57 = vld [vmem:[#allocation3 + $0x18] sm:$0xff]  }
  0x6c   :  { %594 = vmatpush1.bf16.msra.mxu0 %v3624_v43  ;;  %667 = vmatpush1.bf16.msra.mxu1 %v3626_v44  ;;  %v3631_v43 = vcombine.high %v162_v36, %v166_v37  ;;  %v157_v44 = vld [vmem:[#allocation6 + $0xb0] sm:$0xff]  ;;  %v138_v62 = vld [vmem:[#allocation6 + $0x18] sm:$0xff] }
  0x6d   :  { %595 = vmatprep.subr.bf16.mxu0 %v3617_v45  ;;  %668 = vmatprep.subr.bf16.mxu1 %v3619_v47  ;;  %v154_v45 = vld [vmem:[#allocation6 + $0x98] sm:$0xff]  ;;  %v3628_v47 = vcombine.low %v161_v33, %v165_v35  ;;  %v3621_v49 = vcombine.high %v153_v42, %v157_v44  ;;  %v145_v50 = vld [vmem:[#allocation6 + $0x50] sm:$0xff]  ;;  %v3620_v55 = vcombine.low %v153_v42, %v157_v44 }
  0x6e   :  { %v3622_v56 = vcombine.low %v154_v45, %v158_v46  ;;  %v4727_v8 = vld [vmem:[#allocation8 + $0xe4] ss:$16 sps:$4 sm:$0xff]   ;;  %v4733_v10 = vld [vmem:[#allocation8 + $0xe0] ss:$16 sps:$4 sm:$0xff]   ;;  %v4735_v11 = vld [vmem:[#allocation8 + $0xe8] ss:$16 sps:$4 sm:$0xff]  }
  0x6f   :  { %v4738_v12 = vld [vmem:[#allocation8 + $0xc4] ss:$16 sps:$4 sm:$0xff]   ;;  %v4758_v18 = vld [vmem:[#allocation8 + $0xa0] ss:$16 sps:$4 sm:$0xff]   ;;  %v4761_v19 = vld [vmem:[#allocation8 + $0xa8] ss:$16 sps:$4 sm:$0xff]  }
  0x70   :  { %596 = vmatpush1.bf16.msra.mxu0 %v3616_v51  ;;  %669 = vmatpush1.bf16.msra.mxu1 %v3618_v52  ;;  %v3623_v51 = vcombine.high %v154_v45, %v158_v46  ;;  %v149_v52 = vld [vmem:[#allocation6 + $0x70] sm:$0xff]  ;;  %5969 = vst [vmem:[#allocation21_spill] sm:$0xff] %v4738_v12  ;;  %5975 = vst [vmem:[#allocation27_spill] sm:$0xff] %v4758_v18  ;;  %v4780_v25 = vld [vmem:[#allocation8 + $0x6c] ss:$16 sps:$4 sm:$0xff]  }
  0x71   :  { %597 = vmatprep.subr.bf16.mxu0 %v3609_v53  ;;  %670 = vmatprep.subr.bf16.mxu1 %v3611_v54  ;;  %v146_v53 = vld [vmem:[#allocation6 + $0x58] sm:$0xff]  ;;  %v3613_v58 = vcombine.high %v145_v50, %v149_v52  ;;  %v3612_v1 = vcombine.low %v145_v50, %v149_v52  ;;  %v4748_v16 = vld [vmem:[#allocation8 + $0xa4] ss:$16 sps:$4 sm:$0xff]   ;;  %5976 = vst [vmem:[#allocation28_spill] sm:$0xff] %v4761_v19  ;;  %5982 = vst [vmem:[#allocation34_spill] sm:$0xff] %v4780_v25 }
  0x72   :  { %v150_v54 = vld [vmem:[#allocation6 + $0x78] sm:$0xff]  ;;  %5973 = vst [vmem:[#allocation25_spill] sm:$0xff] %v4748_v16  ;;  %v4763_v20 = vld [vmem:[#allocation8 + $0x84] ss:$16 sps:$4 sm:$0xff]   ;;  %v4802_v29 = vld [vmem:[#allocation8 + $0x40] ss:$16 sps:$4 sm:$0xff]  }
  0x73   :  { %v3614_v2 = vcombine.low %v146_v53, %v150_v54  ;;  %5977 = vst [vmem:[#allocation29_spill] sm:$0xff] %v4763_v20  ;;  %v4789_v27 = vld [vmem:[#allocation8 + $0x68] ss:$16 sps:$4 sm:$0xff]   ;;  %v4791_v28 = vld [vmem:[#allocation8 + $0x44] ss:$16 sps:$4 sm:$0xff]   ;;  %5987 = vst [vmem:[#allocation39_spill] sm:$0xff] %v4802_v29 }
  0x74   :  { %598 = vmatpush1.bf16.msra.mxu0 %v3608_v59  ;;  %671 = vmatpush1.bf16.msra.mxu1 %v3610_v60  ;;  %v137_v59 = vld [vmem:[#allocation6 + $0x10] sm:$0xff]  ;;  %v3615_v60 = vcombine.high %v146_v53, %v150_v54  ;;  %5984 = vst [vmem:[#allocation36_spill] sm:$0xff] %v4789_v27  ;;  %5985 = vst [vmem:[#allocation37_spill] sm:$0xff] %v4791_v28  ;;  %v4825_v36 = vld [vmem:[#allocation8 + $0xc] ss:$16 sps:$4 sm:$0xff]  }
  0x75   :  { %599 = vmatprep.subr.bf16.mxu0 %v3601_v61  ;;  %672 = vmatprep.subr.bf16.mxu1 %v3603_v63  ;;  %v141_v61 = vld [vmem:[#allocation6 + $0x30] sm:$0xff]  ;;  %v142_v63 = vld [vmem:[#allocation6 + $0x38] sm:$0xff]  ;;  %5994 = vst [vmem:[#allocation46_spill] sm:$0xff] %v4825_v36 }
  0x76   :  { %v3605_v3 = vcombine.high %v137_v59, %v141_v61  ;;  %v4816_v33 = vld [vmem:[#allocation8 + $0x20] ss:$16 sps:$4 sm:$0xff]   ;;  %v4822_v35 = vld [vmem:[#allocation8 + $0x4] ss:$16 sps:$4 sm:$0xff]   ;;  %v4848_v42 = vld [vmem:[#allocation9 + $0xe8] ss:$16 sps:$4 sm:$0xff]  }
  0x77   :  { %5991 = vst [vmem:[#allocation43_spill] sm:$0xff] %v4816_v33  ;;  %5993 = vst [vmem:[#allocation45_spill] sm:$0xff] %v4822_v35  ;;  %v4830_v37 = vld [vmem:[#allocation8] ss:$16 sps:$4 sm:$0xff]   ;;  %v4853_v44 = vld [vmem:[#allocation9 + $0xcc] ss:$16 sps:$4 sm:$0xff]  }
  0x78   :  { %600 = vmatpush1.bf16.msra.mxu0 %v3600_v4  ;;  %673 = vmatpush1.bf16.msra.mxu1 %v3602_v5  ;;  %v3607_v4 = vcombine.high %v138_v62, %v142_v63  ;;  %v3604_v5 = vcombine.low %v137_v59, %v141_v61  ;;  %5995 = vst [vmem:[#allocation47_spill] sm:$0xff] %v4830_v37  ;;  %v4858_v45 = vld [vmem:[#allocation9 + $0xc0] ss:$16 sps:$4 sm:$0xff]   ;;  %v4862_v46 = vld [vmem:[#allocation9 + $0xc8] ss:$16 sps:$4 sm:$0xff]  }
  0x79   :  { %731 = vmatprep.subr.bf16.mxu0 %v3661_v7  ;;  %804 = vmatprep.subr.bf16.mxu1 %v3663_v9  ;;  %v3606_v7 = vcombine.low %v138_v62, %v142_v63  ;;  %v4730_v9 = vld [vmem:[#allocation8 + $0xec] ss:$16 sps:$4 sm:$0xff]   ;;  %v4876_v50 = vld [vmem:[#allocation9 + $0xa8] ss:$16 sps:$4 sm:$0xff]   ;;  %v4884_v53 = vld [vmem:[#allocation9 + $0x80] ss:$16 sps:$4 sm:$0xff]  }
  0x7a   :  { %v4881_v52 = vld [vmem:[#allocation9 + $0x8c] ss:$16 sps:$4 sm:$0xff]   ;;  %v4888_v54 = vld [vmem:[#allocation9 + $0x88] ss:$16 sps:$4 sm:$0xff]   ;;  %v4902_v59 = vld [vmem:[#allocation9 + $0x44] ss:$16 sps:$4 sm:$0xff]  }
  0x7b   :  { %618 = vmatmul.mubr.bf16.vlgmr.msra.gmra.mxu0 %v4705_v6  ;;  %691 = vmatmul.mubr.bf16.vlgmr.msra.gmra.mxu1 %v4705_v6  ;;  %v4908_v61 = vld [vmem:[#allocation9 + $0x40] ss:$16 sps:$4 sm:$0xff]   ;;  %v4912_v62 = vld [vmem:[#allocation9 + $0x48] ss:$16 sps:$4 sm:$0xff]   ;;  %v4914_v63 = vld [vmem:[#allocation9 + $0x24] ss:$16 sps:$4 sm:$0xff]  }
  0x7c   :  { %732 = vmatpush1.bf16.msra.mxu0 %v3660_v13  ;;  %805 = vmatpush1.bf16.msra.mxu1 %v3662_v14  ;;  %v4741_v13 = vld [vmem:[#allocation8 + $0xcc] ss:$16 sps:$4 sm:$0xff]   ;;  %v4744_v14 = vld [vmem:[#allocation8 + $0xc0] ss:$16 sps:$4 sm:$0xff]  }
  0x7d   :  { %733 = vmatprep.subr.bf16.mxu0 %v3653_v15  ;;  %806 = vmatprep.subr.bf16.mxu1 %v3655_v17  ;;  %5970 = vst [vmem:[#allocation22_spill] sm:$0xff] %v4741_v13  ;;  %5971 = vst [vmem:[#allocation23_spill] sm:$0xff] %v4744_v14  ;;  %v4746_v15 = vld [vmem:[#allocation8 + $0xc8] ss:$16 sps:$4 sm:$0xff]   ;;  %v4752_v17 = vld [vmem:[#allocation8 + $0xac] ss:$16 sps:$4 sm:$0xff]  }
  0x7e   :  { %627 = vmatprep.mubr.bf16.mxu0 %v5878_v0  ;;  %700 = vmatprep.mubr.bf16.mxu1 %v5878_v0  ;;  %5972 = vst [vmem:[#allocation24_spill] sm:$0xff] %v4746_v15  ;;  %5974 = vst [vmem:[#allocation26_spill] sm:$0xff] %v4752_v17 }
  0x80   :  { %734 = vmatpush1.bf16.msra.mxu0 %v3652_v21  ;;  %807 = vmatpush1.bf16.msra.mxu1 %v3654_v22  ;;  %v4771_v21 = vld [vmem:[#allocation8 + $0x80] ss:$16 sps:$4 sm:$0xff]   ;;  %v4774_v22 = vld [vmem:[#allocation8 + $0x88] ss:$16 sps:$4 sm:$0xff]  }
  0x81   :  { %735 = vmatprep.subr.bf16.mxu0 %v3645_v24  ;;  %808 = vmatprep.subr.bf16.mxu1 %v3647_v26  ;;  %5979 = vst [vmem:[#allocation31_spill] sm:$0xff] %v4771_v21  ;;  %5980 = vst [vmem:[#allocation32_spill] sm:$0xff] %v4774_v22  ;;  %v4776_v24 = vld [vmem:[#allocation8 + $0x64] ss:$16 sps:$4 sm:$0xff]   ;;  %v4786_v26 = vld [vmem:[#allocation8 + $0x60] ss:$16 sps:$4 sm:$0xff]  }
  0x82   :  { %5981 = vst [vmem:[#allocation33_spill] sm:$0xff] %v4776_v24  ;;  %5983 = vst [vmem:[#allocation35_spill] sm:$0xff] %v4786_v26 }
  0x83   :  { %628 = vmatmul.mubr.bf16.gmra.mxu0 %v4709_v23  ;;  %701 = vmatmul.mubr.bf16.gmra.mxu1 %v4709_v23 }
  0x84   :  { %736 = vmatpush1.bf16.msra.mxu0 %v3644_v30  ;;  %809 = vmatpush1.bf16.msra.mxu1 %v3646_v31  ;;  %v4806_v30 = vld [vmem:[#allocation8 + $0x48] ss:$16 sps:$4 sm:$0xff]   ;;  %v4808_v31 = vld [vmem:[#allocation8 + $0x24] ss:$16 sps:$4 sm:$0xff]  }
  0x85   :  { %737 = vmatprep.subr.bf16.mxu0 %v3637_v32  ;;  %810 = vmatprep.subr.bf16.mxu1 %v3639_v34  ;;  %5988 = vst [vmem:[#allocation40_spill] sm:$0xff] %v4806_v30  ;;  %5989 = vst [vmem:[#allocation41_spill] sm:$0xff] %v4808_v31  ;;  %v4812_v32 = vld [vmem:[#allocation8 + $0x2c] ss:$16 sps:$4 sm:$0xff]   ;;  %v4820_v34 = vld [vmem:[#allocation8 + $0x28] ss:$16 sps:$4 sm:$0xff]  }
  0x86   :  { %637 = vmatprep.mubr.bf16.mxu0 %v5878_v0  ;;  %710 = vmatprep.mubr.bf16.mxu1 %v5878_v0  ;;  %5990 = vst [vmem:[#allocation42_spill] sm:$0xff] %v4812_v32  ;;  %5992 = vst [vmem:[#allocation44_spill] sm:$0xff] %v4820_v34 }
  0x88   :  { %738 = vmatpush1.bf16.msra.mxu0 %v3636_v38  ;;  %811 = vmatpush1.bf16.msra.mxu1 %v3638_v39  ;;  %v4834_v38 = vld [vmem:[#allocation8 + $0x8] ss:$16 sps:$4 sm:$0xff]   ;;  %v4836_v39 = vld [vmem:[#allocation9 + $0xe4] ss:$16 sps:$4 sm:$0xff]  }
  0x89   :  { %739 = vmatprep.subr.bf16.mxu0 %v3629_v41  ;;  %812 = vmatprep.subr.bf16.mxu1 %v3631_v43  ;;  %5996 = vst [vmem:[#allocation48_spill] sm:$0xff] %v4834_v38  ;;  %5997 = vst [vmem:[#allocation49_spill] sm:$0xff] %v4836_v39  ;;  %v4844_v41 = vld [vmem:[#allocation9 + $0xe0] ss:$16 sps:$4 sm:$0xff]   ;;  %v4850_v43 = vld [vmem:[#allocation9 + $0xc4] ss:$16 sps:$4 sm:$0xff]  }
  0x8b   :  { %638 = vmatmul.mubr.bf16.gmra.mxu0 %v4715_v40  ;;  %711 = vmatmul.mubr.bf16.gmra.mxu1 %v4715_v40 }
  0x8c   :  { %740 = vmatpush1.bf16.msra.mxu0 %v3628_v47  ;;  %813 = vmatpush1.bf16.msra.mxu1 %v3630_v48  ;;  %v4864_v47 = vld [vmem:[#allocation9 + $0xa4] ss:$16 sps:$4 sm:$0xff]   ;;  %v4867_v48 = vld [vmem:[#allocation9 + $0xac] ss:$16 sps:$4 sm:$0xff]  }
  0x8d   :  { %741 = vmatprep.subr.bf16.mxu0 %v3621_v49  ;;  %814 = vmatprep.subr.bf16.mxu1 %v3623_v51  ;;  %v4872_v49 = vld [vmem:[#allocation9 + $0xa0] ss:$16 sps:$4 sm:$0xff]   ;;  %v4878_v51 = vld [vmem:[#allocation9 + $0x84] ss:$16 sps:$4 sm:$0xff]  }
  0x8e   :  { %647 = vmatprep.mubr.bf16.mxu0 %v5878_v0  ;;  %720 = vmatprep.mubr.bf16.mxu1 %v5878_v0 }
  0x90   :  { %742 = vmatpush1.bf16.msra.mxu0 %v3620_v55  ;;  %815 = vmatpush1.bf16.msra.mxu1 %v3622_v56  ;;  %v4890_v55 = vld [vmem:[#allocation9 + $0x64] ss:$16 sps:$4 sm:$0xff]   ;;  %v4893_v56 = vld [vmem:[#allocation9 + $0x6c] ss:$16 sps:$4 sm:$0xff]  }
  0x91   :  { %743 = vmatprep.subr.bf16.mxu0 %v3613_v58  ;;  %816 = vmatprep.subr.bf16.mxu1 %v3615_v60  ;;  %v4900_v58 = vld [vmem:[#allocation9 + $0x68] ss:$16 sps:$4 sm:$0xff]   ;;  %v4905_v60 = vld [vmem:[#allocation9 + $0x4c] ss:$16 sps:$4 sm:$0xff]  }
  0x93   :  { %648 = vmatmul.mubr.bf16.gmra.mxu0 %v4721_v57  ;;  %721 = vmatmul.mubr.bf16.gmra.mxu1 %v4721_v57 }
  0x94   :  { %744 = vmatpush1.bf16.msra.mxu0 %v3612_v1  ;;  %817 = vmatpush1.bf16.msra.mxu1 %v3614_v2  ;;  %v4917_v1 = vld [vmem:[#allocation9 + $0x2c] ss:$16 sps:$4 sm:$0xff]   ;;  %v4920_v2 = vld [vmem:[#allocation9 + $0x20] ss:$16 sps:$4 sm:$0xff]  }
  0x95   :  { %745 = vmatprep.subr.bf16.mxu0 %v3605_v3  ;;  %818 = vmatprep.subr.bf16.mxu1 %v3607_v4  ;;  %5999 = vst [vmem:[#allocation51_spill] sm:$0xff] %v4917_v1  ;;  %v4924_v3 = vld [vmem:[#allocation9 + $0x28] ss:$16 sps:$4 sm:$0xff]   ;;  %v4926_v4 = vld [vmem:[#allocation9 + $0x4] ss:$16 sps:$4 sm:$0xff]  }
  0x96   :  { %763 = vmatprep.mubr.bf16.mxu0 %v5878_v0  ;;  %836 = vmatprep.mubr.bf16.mxu1 %v5878_v0 }
  0x98   :  { %746 = vmatpush1.bf16.msra.mxu0 %v3604_v5  ;;  %819 = vmatpush1.bf16.msra.mxu1 %v3606_v7  ;;  %v4929_v5 = vld [vmem:[#allocation9 + $0xc] ss:$16 sps:$4 sm:$0xff]   ;;  %v4932_v7 = vld [vmem:[#allocation9] ss:$16 sps:$4 sm:$0xff]  }
  0x99   :  { %1165 = vmatprep.subr.bf16.mxu0 %v4727_v8  ;;  %1206 = vmatprep.subr.bf16.mxu1 %v4730_v9 }
  0x9b   :  { %764 = vmatmul.mubr.bf16.vlgmr.msra.gmra.mxu0 %v4705_v6  ;;  %837 = vmatmul.mubr.bf16.vlgmr.msra.gmra.mxu1 %v4705_v6  ;;  %v4766_v6 = vld [vmem:[#allocation8 + $0x8c] ss:$16 sps:$4 sm:$0xff]  }
  0x9c   :  { %1166 = vmatpush1.bf16.msra.mxu0 %v4733_v10  ;;  %1207 = vmatpush1.bf16.msra.mxu1 %v4735_v11  ;;  %5978 = vst [vmem:[#allocation30_spill] sm:$0xff] %v4766_v6 }
  0x9d   :  { %1167 = vmatprep.subr.bf16.mxu0 %v4738_v12  ;;  %1208 = vmatprep.subr.bf16.mxu1 %v4741_v13 }
  0x9e   :  { %773 = vmatprep.mubr.bf16.mxu0 %v5878_v0  ;;  %846 = vmatprep.mubr.bf16.mxu1 %v5878_v0 }
  0xa0   :  { %1168 = vmatpush1.bf16.msra.mxu0 %v4744_v14  ;;  %1209 = vmatpush1.bf16.msra.mxu1 %v4746_v15 }
  0xa1   :  { %1169 = vmatprep.subr.bf16.mxu0 %v4748_v16  ;;  %1210 = vmatprep.subr.bf16.mxu1 %v4752_v17 }
  0xa3   :  { %774 = vmatmul.mubr.bf16.gmra.mxu0 %v4709_v23  ;;  %847 = vmatmul.mubr.bf16.gmra.mxu1 %v4709_v23  ;;  %v4794_v23 = vld [vmem:[#allocation8 + $0x4c] ss:$16 sps:$4 sm:$0xff]  }
  0xa4   :  { %1170 = vmatpush1.bf16.msra.mxu0 %v4758_v18  ;;  %1211 = vmatpush1.bf16.msra.mxu1 %v4761_v19  ;;  %5986 = vst [vmem:[#allocation38_spill] sm:$0xff] %v4794_v23 }
  0xa5   :  { %1171 = vmatprep.subr.bf16.mxu0 %v4763_v20  ;;  %1212 = vmatprep.subr.bf16.mxu1 %v4766_v6 }
  0xa6   :  { %783 = vmatprep.mubr.bf16.mxu0 %v5878_v0  ;;  %856 = vmatprep.mubr.bf16.mxu1 %v5878_v0 }
  0xa8   :  { %1172 = vmatpush1.bf16.msra.mxu0 %v4771_v21  ;;  %1213 = vmatpush1.bf16.msra.mxu1 %v4774_v22 }
  0xa9   :  { %1173 = vmatprep.subr.bf16.mxu0 %v4776_v24  ;;  %1214 = vmatprep.subr.bf16.mxu1 %v4780_v25 }
  0xab   :  { %784 = vmatmul.mubr.bf16.gmra.mxu0 %v4715_v40  ;;  %857 = vmatmul.mubr.bf16.gmra.mxu1 %v4715_v40  ;;  %v4840_v40 = vld [vmem:[#allocation9 + $0xec] ss:$16 sps:$4 sm:$0xff]  }
  0xac   :  { %1174 = vmatpush1.bf16.msra.mxu0 %v4786_v26  ;;  %1215 = vmatpush1.bf16.msra.mxu1 %v4789_v27  ;;  %5998 = vst [vmem:[#allocation50_spill] sm:$0xff] %v4840_v40 }
  0xad   :  { %1175 = vmatprep.subr.bf16.mxu0 %v4791_v28  ;;  %1216 = vmatprep.subr.bf16.mxu1 %v4794_v23 }
  0xae   :  { %793 = vmatprep.mubr.bf16.mxu0 %v5878_v0  ;;  %866 = vmatprep.mubr.bf16.mxu1 %v5878_v0 }
  0xb0   :  { %1176 = vmatpush1.bf16.msra.mxu0 %v4802_v29  ;;  %1217 = vmatpush1.bf16.msra.mxu1 %v4806_v30 }
  0xb1   :  { %1177 = vmatprep.subr.bf16.mxu0 %v4808_v31  ;;  %1218 = vmatprep.subr.bf16.mxu1 %v4812_v32 }
  0xb3   :  { %794 = vmatmul.mubr.bf16.gmra.mxu0 %v4721_v57  ;;  %867 = vmatmul.mubr.bf16.gmra.mxu1 %v4721_v57  ;;  %v4896_v57 = vld [vmem:[#allocation9 + $0x60] ss:$16 sps:$4 sm:$0xff]  }
  0xb4   :  { %1178 = vmatpush1.bf16.msra.mxu0 %v4816_v33  ;;  %1219 = vmatpush1.bf16.msra.mxu1 %v4820_v34 }
  0xb5   :  { %1179 = vmatprep.subr.bf16.mxu0 %v4822_v35  ;;  %1220 = vmatprep.subr.bf16.mxu1 %v4825_v36 }
  0xb6   :  { %1197 = vmatprep.mubr.bf16.mxu0 %v5878_v0  ;;  %1238 = vmatprep.mubr.bf16.mxu1 %v5878_v0 }
  0xb8   :  { %1180 = vmatpush1.bf16.msra.mxu0 %v4830_v37  ;;  %1221 = vmatpush1.bf16.msra.mxu1 %v4834_v38 }
  0xb9   :  { %1407 = vmatprep.subr.bf16.mxu0 %v4836_v39  ;;  %1448 = vmatprep.subr.bf16.mxu1 %v4840_v40 }
  0xbb   :  { %1198 = vmatmul.mubr.bf16.vlgmr.msra.gmra.mxu0 %v5878_v0  ;;  %1239 = vmatmul.mubr.bf16.vlgmr.msra.gmra.mxu1 %v5878_v0 }
  0xbc   :  { %1408 = vmatpush1.bf16.msra.mxu0 %v4844_v41  ;;  %1449 = vmatpush1.bf16.msra.mxu1 %v4848_v42 }
  0xbd   :  { %1409 = vmatprep.subr.bf16.mxu0 %v4850_v43  ;;  %1450 = vmatprep.subr.bf16.mxu1 %v4853_v44 }
  0xbe   :  { %1439 = vmatprep.mubr.bf16.mxu0 %v5878_v0  ;;  %1480 = vmatprep.mubr.bf16.mxu1 %v5878_v0  ;;  %v4936_v0 = vld [vmem:[#allocation9 + $0x8] ss:$16 sps:$4 sm:$0xff]  }
  0xc0   :  { %1410 = vmatpush1.bf16.msra.mxu0 %v4858_v45  ;;  %1451 = vmatpush1.bf16.msra.mxu1 %v4862_v46 }
  0xc1   :  { %1411 = vmatprep.subr.bf16.mxu0 %v4864_v47  ;;  %1452 = vmatprep.subr.bf16.mxu1 %v4867_v48 }
  0xc4   :  { %1412 = vmatpush1.bf16.msra.mxu0 %v4872_v49  ;;  %1453 = vmatpush1.bf16.msra.mxu1 %v4876_v50 }
  0xc5   :  { %1413 = vmatprep.subr.bf16.mxu0 %v4878_v51  ;;  %1454 = vmatprep.subr.bf16.mxu1 %v4881_v52 }
  0xc8   :  { %1414 = vmatpush1.bf16.msra.mxu0 %v4884_v53  ;;  %1455 = vmatpush1.bf16.msra.mxu1 %v4888_v54 }
  0xc9   :  { %1415 = vmatprep.subr.bf16.mxu0 %v4890_v55  ;;  %1456 = vmatprep.subr.bf16.mxu1 %v4893_v56 }
  0xcc   :  { %1416 = vmatpush1.bf16.msra.mxu0 %v4896_v57  ;;  %1457 = vmatpush1.bf16.msra.mxu1 %v4900_v58 }
  0xcd   :  { %1417 = vmatprep.subr.bf16.mxu0 %v4902_v59  ;;  %1458 = vmatprep.subr.bf16.mxu1 %v4905_v60 }
  0xd0   :  { %1418 = vmatpush1.bf16.msra.mxu0 %v4908_v61  ;;  %1459 = vmatpush1.bf16.msra.mxu1 %v4912_v62 }
  0xd1   :  { %1419 = vmatprep.subr.bf16.mxu0 %v4914_v63  ;;  %1460 = vmatprep.subr.bf16.mxu1 %v4917_v1  ;;  %v6000_v1 = vmov 0  }
  0xd4   :  { %1420 = vmatpush1.bf16.msra.mxu0 %v4920_v2  ;;  %1461 = vmatpush1.bf16.msra.mxu1 %v4924_v3 }
  0xd5   :  { %1421 = vmatprep.subr.bf16.mxu0 %v4926_v4  ;;  %1462 = vmatprep.subr.bf16.mxu1 %v4929_v5 }
  0xd8   :  { %1422 = vmatpush1.bf16.msra.mxu0 %v4932_v7  ;;  %1463 = vmatpush1.bf16.msra.mxu1 %v4936_v0 }
  0xd9   :  { %1555 = vmatprep.subr.bf16.mxu0 %v4727_v8  ;;  %1596 = vmatprep.subr.bf16.mxu1 %v4730_v9 }
  0xdb   :  { %1440 = vmatmul.mubr.bf16.vlgmr.msra.gmra.mxu0 %v6000_v1  ;;  %1481 = vmatmul.mubr.bf16.vlgmr.msra.gmra.mxu1 %v6000_v1 }
  0xdc   :  { %1556 = vmatpush1.bf16.msra.mxu0 %v4733_v10  ;;  %1597 = vmatpush1.bf16.msra.mxu1 %v4735_v11 }
  0xdd   :  { %1557 = vmatprep.subr.bf16.mxu0 %v4738_v12  ;;  %1598 = vmatprep.subr.bf16.mxu1 %v4741_v13 }
  0xde   :  { %1587 = vmatprep.mubr.bf16.mxu0 %v6000_v1  ;;  %1628 = vmatprep.mubr.bf16.mxu1 %v6000_v1 }
  0xe0   :  { %1558 = vmatpush1.bf16.msra.mxu0 %v4744_v14  ;;  %1599 = vmatpush1.bf16.msra.mxu1 %v4746_v15 }
  0xe1   :  { %1559 = vmatprep.subr.bf16.mxu0 %v4748_v16  ;;  %1600 = vmatprep.subr.bf16.mxu1 %v4752_v17 }
  0xe4   :  { %1560 = vmatpush1.bf16.msra.mxu0 %v4758_v18  ;;  %1601 = vmatpush1.bf16.msra.mxu1 %v4761_v19 }
  0xe5   :  { %1561 = vmatprep.subr.bf16.mxu0 %v4763_v20  ;;  %1602 = vmatprep.subr.bf16.mxu1 %v4766_v6 }
  0xe8   :  { %1562 = vmatpush1.bf16.msra.mxu0 %v4771_v21  ;;  %1603 = vmatpush1.bf16.msra.mxu1 %v4774_v22 }
  0xe9   :  { %1563 = vmatprep.subr.bf16.mxu0 %v4776_v24  ;;  %1604 = vmatprep.subr.bf16.mxu1 %v4780_v25 }
  0xec   :  { %1564 = vmatpush1.bf16.msra.mxu0 %v4786_v26  ;;  %1605 = vmatpush1.bf16.msra.mxu1 %v4789_v27 }
  0xed   :  { %1565 = vmatprep.subr.bf16.mxu0 %v4791_v28  ;;  %1606 = vmatprep.subr.bf16.mxu1 %v4794_v23 }
  0xf0   :  { %1566 = vmatpush1.bf16.msra.mxu0 %v4802_v29  ;;  %1607 = vmatpush1.bf16.msra.mxu1 %v4806_v30  ;;  %v201_v30 = vlaneseq }
  0xf1   :  { %1567 = vmatprep.subr.bf16.mxu0 %v4808_v31  ;;  %1608 = vmatprep.subr.bf16.mxu1 %v4812_v32 }
  0xf2   :  { %v4979_v31 = vshrl.u32 %v201_v30, 7 }
  0xf4   :  { %1568 = vmatpush1.bf16.msra.mxu0 %v4816_v33  ;;  %1609 = vmatpush1.bf16.msra.mxu1 %v4820_v34  ;;  %v211_v32 = vsub.s32 2, %v4979_v31  ;;  %v203_v33 = vsub.s32 0, %v4979_v31  ;;  %v4983_v34 = vld [vmem:[#allocation11] sm:$0xff] }
  0xf5   :  { %1569 = vmatprep.subr.bf16.mxu0 %v4822_v35  ;;  %1610 = vmatprep.subr.bf16.mxu1 %v4825_v36  ;;  %v215_v36 = vsub.s32 3, %v4979_v31 }
  0xf6   :  { %v4997_v30 = vrot.slane %v4983_v34, %v203_v33 }
  0xf7   :  { %v5002_v23 = vrot.slane %v4983_v34, %v215_v36 }
  0xf8   :  { %1570 = vmatpush1.bf16.msra.mxu0 %v4830_v37  ;;  %1611 = vmatpush1.bf16.msra.mxu1 %v4834_v38  ;;  %v207_v38 = vsub.s32 1, %v4979_v31 }
  0xf9   :  { %1637 = vmatprep.subr.bf16.mxu0 %v4836_v39  ;;  %1678 = vmatprep.subr.bf16.mxu1 %v4840_v40  ;;  %v4992_v39 = vrot.slane %v4983_v34, %v211_v32 }
  0xfa   :  { %v5005_v27 = vrot.slane %v4983_v34, %v207_v38 }
 0x13b   :  { %v4985_v35 = vpop.f32.mrf.mxu0  ;;  %v4988_v37 = vpop.f32.mrf.mxu1 }
 0x13d   :  { %v4994_v40 = vpop.f32.mrf.mxu0  ;;  %v4999_v29 = vpop.f32.mrf.mxu1 }
 0x13f   :  { %v623_v28 = vpop.f32.mrf.mxu0  ;;  %v696_v25 = vpop.f32.mrf.mxu1 }
 0x140   :  { %v5008_v26 = vadd.f32 %v623_v28, %v4997_v30  ;;  %v5011_v32 = vadd.f32 %v696_v25, %v4992_v39 }
 0x141   :  { %v625_v24 = vpop.f32.mrf.mxu0  ;;  %v698_v22 = vpop.f32.mrf.mxu1 }
 0x142   :  { %6001 = vst [vmem:[#allocation52_spill] sm:$0xff] %v5008_v26  ;;  %6002 = vst [vmem:[#allocation53_spill] sm:$0xff] %v5011_v32  ;;  %v5014_v33 = vadd.f32 %v625_v24, %v5005_v27  ;;  %v5017_v21 = vadd.f32 %v698_v22, %v5002_v23 }
 0x143   :  { %v629_v36 = vpop.f32.mrf.mxu0  ;;  %v702_v38 = vpop.f32.mrf.mxu1 }
 0x144   :  { %6003 = vst [vmem:[#allocation54_spill] sm:$0xff] %v5014_v33  ;;  %6004 = vst [vmem:[#allocation55_spill] sm:$0xff] %v5017_v21  ;;  %v5020_v6 = vadd.f32 %v629_v36, %v4997_v30  ;;  %v5023_v28 = vadd.f32 %v702_v38, %v4992_v39 }
 0x145   :  { %v631_v26 = vpop.f32.mrf.mxu0  ;;  %v704_v32 = vpop.f32.mrf.mxu1 }
 0x146   :  { %6005 = vst [vmem:[#allocation56_spill] sm:$0xff] %v5020_v6  ;;  %6006 = vst [vmem:[#allocation57_spill] sm:$0xff] %v5023_v28  ;;  %v5026_v25 = vadd.f32 %v631_v26, %v5005_v27  ;;  %v5029_v24 = vadd.f32 %v704_v32, %v5002_v23 }
 0x147   :  { %v633_v33 = vpop.f32.mrf.mxu0  ;;  %v706_v21 = vpop.f32.mrf.mxu1 }
 0x148   :  { %6007 = vst [vmem:[#allocation58_spill] sm:$0xff] %v5026_v25  ;;  %6008 = vst [vmem:[#allocation59_spill] sm:$0xff] %v5029_v24  ;;  %v5032_v22 = vadd.f32 %v633_v33, %v4997_v30  ;;  %v5035_v36 = vadd.f32 %v706_v21, %v4992_v39 }
 0x149   :  { %v635_v6 = vpop.f32.mrf.mxu0  ;;  %v708_v28 = vpop.f32.mrf.mxu1 }
 0x14a   :  { %6009 = vst [vmem:[#allocation60_spill] sm:$0xff] %v5032_v22  ;;  %6010 = vst [vmem:[#allocation61_spill] sm:$0xff] %v5035_v36  ;;  %v5038_v38 = vadd.f32 %v635_v6, %v5005_v27  ;;  %v5041_v26 = vadd.f32 %v708_v28, %v5002_v23 }
 0x14b   :  { %v639_v25 = vpop.f32.mrf.mxu0  ;;  %v712_v24 = vpop.f32.mrf.mxu1 }
 0x14c   :  { %6011 = vst [vmem:[#allocation62_spill] sm:$0xff] %v5038_v38  ;;  %6012 = vst [vmem:[#allocation63_spill] sm:$0xff] %v5041_v26  ;;  %v5044_v32 = vadd.f32 %v639_v25, %v4997_v30  ;;  %v5047_v33 = vadd.f32 %v712_v24, %v4992_v39 }
 0x14d   :  { %v641_v22 = vpop.f32.mrf.mxu0  ;;  %v714_v36 = vpop.f32.mrf.mxu1 }
 0x14e   :  { %6013 = vst [vmem:[#allocation64_spill] sm:$0xff] %v5044_v32  ;;  %6014 = vst [vmem:[#allocation65_spill] sm:$0xff] %v5047_v33  ;;  %v5050_v21 = vadd.f32 %v641_v22, %v5005_v27  ;;  %v5053_v6 = vadd.f32 %v714_v36, %v5002_v23 }
 0x14f   :  { %v643_v38 = vpop.f32.mrf.mxu0  ;;  %v716_v26 = vpop.f32.mrf.mxu1 }
 0x150   :  { %6015 = vst [vmem:[#allocation66_spill] sm:$0xff] %v5050_v21  ;;  %6016 = vst [vmem:[#allocation67_spill] sm:$0xff] %v5053_v6  ;;  %v5056_v28 = vadd.f32 %v643_v38, %v4997_v30  ;;  %v5059_v25 = vadd.f32 %v716_v26, %v4992_v39  ;;  %v219_v38 = vsub.s32 4, %v4979_v31 }
 0x151   :  { %v645_v32 = vpop.f32.mrf.mxu0  ;;  %v718_v33 = vpop.f32.mrf.mxu1 }
 0x152   :  { %6017 = vst [vmem:[#allocation68_spill] sm:$0xff] %v5056_v28  ;;  %6018 = vst [vmem:[#allocation69_spill] sm:$0xff] %v5059_v25  ;;  %v5062_v24 = vadd.f32 %v645_v32, %v5005_v27  ;;  %v5065_v22 = vadd.f32 %v718_v33, %v5002_v23  ;;  %v227_v25 = vsub.s32 6, %v4979_v31  ;;  %v223_v33 = vsub.s32 5, %v4979_v31 }
 0x153   :  { %v649_v21 = vpop.f32.mrf.mxu0  ;;  %v722_v6 = vpop.f32.mrf.mxu1 }
 0x154   :  { %6019 = vst [vmem:[#allocation70_spill] sm:$0xff] %v5062_v24  ;;  %6020 = vst [vmem:[#allocation71_spill] sm:$0xff] %v5065_v22  ;;  %v5068_v36 = vadd.f32 %v649_v21, %v4997_v30  ;;  %v5072_v28 = vadd.f32 %v722_v6, %v4992_v39 }
 0x155   :  { %v651_v26 = vpop.f32.mrf.mxu0  ;;  %v724_v24 = vpop.f32.mrf.mxu1 }
 0x156   :  { %6021 = vst [vmem:[#allocation72_spill] sm:$0xff] %v5068_v36  ;;  %6022 = vst [vmem:[#allocation73_spill] sm:$0xff] %v5072_v28  ;;  %v5076_v32 = vadd.f32 %v651_v26, %v5005_v27  ;;  %v5080_v22 = vadd.f32 %v724_v24, %v5002_v23  ;;  %v231_v36 = vsub.s32 7, %v4979_v31  ;;  %v5087_v28 = vrot.slane %v4983_v34, %v219_v38 }
 0x157   :  { %v653_v21 = vpop.f32.mrf.mxu0  ;;  %v726_v6 = vpop.f32.mrf.mxu1  ;;  %v5099_v31 = vrot.slane %v4983_v34, %v223_v33 }
 0x158   :  { %6023 = vst [vmem:[#allocation74_spill] sm:$0xff] %v5076_v32  ;;  %6024 = vst [vmem:[#allocation75_spill] sm:$0xff] %v5080_v22  ;;  %v5084_v20 = vadd.f32 %v653_v21, %v4997_v30  ;;  %v5090_v19 = vadd.f32 %v726_v6, %v4992_v39  ;;  %v5093_v32 = vrot.slane %v4983_v34, %v227_v25 }
 0x159   :  { %v655_v26 = vpop.f32.mrf.mxu0  ;;  %v728_v22 = vpop.f32.mrf.mxu1  ;;  %v5105_v38 = vrot.slane %v4983_v34, %v231_v36 }
 0x15a   :  { %6025 = vst [vmem:[#allocation76_spill] sm:$0xff] %v5084_v20  ;;  %6026 = vst [vmem:[#allocation77_spill] sm:$0xff] %v5090_v19  ;;  %v5096_v24 = vadd.f32 %v655_v26, %v5005_v27  ;;  %v5102_v21 = vadd.f32 %v728_v22, %v5002_v23 }
 0x15b   :  { %v765_v20 = vpop.f32.mrf.mxu0  ;;  %v838_v19 = vpop.f32.mrf.mxu1 }
 0x15c   :  { %6027 = vst [vmem:[#allocation78_spill] sm:$0xff] %v5096_v24  ;;  %6028 = vst [vmem:[#allocation79_spill] sm:$0xff] %v5102_v21  ;;  %v5108_v6 = vadd.f32 %v765_v20, %v5087_v28  ;;  %v5111_v25 = vadd.f32 %v838_v19, %v5093_v32 }
 0x15d   :  { %v767_v26 = vpop.f32.mrf.mxu0  ;;  %v840_v33 = vpop.f32.mrf.mxu1 }
 0x15e   :  { %6029 = vst [vmem:[#allocation80_spill] sm:$0xff] %v5108_v6  ;;  %6030 = vst [vmem:[#allocation81_spill] sm:$0xff] %v5111_v25  ;;  %v5114_v24 = vadd.f32 %v767_v26, %v5099_v31  ;;  %v5117_v18 = vadd.f32 %v840_v33, %v5105_v38 }
 0x15f   :  { %v769_v22 = vpop.f32.mrf.mxu0  ;;  %v842_v34 = vpop.f32.mrf.mxu1 }
 0x160   :  { %6031 = vst [vmem:[#allocation82_spill] sm:$0xff] %v5114_v24  ;;  %6032 = vst [vmem:[#allocation83_spill] sm:$0xff] %v5117_v18  ;;  %v5120_v21 = vadd.f32 %v769_v22, %v5087_v28  ;;  %v5123_v20 = vadd.f32 %v842_v34, %v5093_v32 }
 0x161   :  { %v771_v36 = vpop.f32.mrf.mxu0  ;;  %v844_v25 = vpop.f32.mrf.mxu1 }
 0x162   :  { %6033 = vst [vmem:[#allocation84_spill] sm:$0xff] %v5120_v21  ;;  %6034 = vst [vmem:[#allocation85_spill] sm:$0xff] %v5123_v20  ;;  %v5126_v19 = vadd.f32 %v771_v36, %v5099_v31  ;;  %v5129_v26 = vadd.f32 %v844_v25, %v5105_v38 }
 0x163   :  { %v775_v24 = vpop.f32.mrf.mxu0  ;;  %v848_v18 = vpop.f32.mrf.mxu1 }
 0x164   :  { %6035 = vst [vmem:[#allocation86_spill] sm:$0xff] %v5126_v19  ;;  %6036 = vst [vmem:[#allocation87_spill] sm:$0xff] %v5129_v26  ;;  %v5132_v33 = vadd.f32 %v775_v24, %v5087_v28  ;;  %v5135_v22 = vadd.f32 %v848_v18, %v5093_v32 }
 0x165   :  { %v777_v6 = vpop.f32.mrf.mxu0  ;;  %v850_v20 = vpop.f32.mrf.mxu1 }
 0x166   :  { %6037 = vst [vmem:[#allocation88_spill] sm:$0xff] %v5132_v33  ;;  %6038 = vst [vmem:[#allocation89_spill] sm:$0xff] %v5135_v22  ;;  %v5138_v34 = vadd.f32 %v777_v6, %v5099_v31  ;;  %v5141_v36 = vadd.f32 %v850_v20, %v5105_v38 }
 0x167   :  { %v779_v19 = vpop.f32.mrf.mxu0  ;;  %v852_v26 = vpop.f32.mrf.mxu1 }
 0x168   :  { %6039 = vst [vmem:[#allocation90_spill] sm:$0xff] %v5138_v34  ;;  %6040 = vst [vmem:[#allocation91_spill] sm:$0xff] %v5141_v36  ;;  %v5144_v25 = vadd.f32 %v779_v19, %v5087_v28  ;;  %v5147_v24 = vadd.f32 %v852_v26, %v5093_v32 }
 0x169   :  { %v781_v21 = vpop.f32.mrf.mxu0  ;;  %v854_v22 = vpop.f32.mrf.mxu1 }
 0x16a   :  { %6041 = vst [vmem:[#allocation92_spill] sm:$0xff] %v5144_v25  ;;  %6042 = vst [vmem:[#allocation93_spill] sm:$0xff] %v5147_v24  ;;  %v5150_v18 = vadd.f32 %v781_v21, %v5099_v31  ;;  %v5153_v6 = vadd.f32 %v854_v22, %v5105_v38 }
 0x16b   :  { %v785_v34 = vpop.f32.mrf.mxu0  ;;  %v858_v36 = vpop.f32.mrf.mxu1 }
 0x16c   :  { %6043 = vst [vmem:[#allocation94_spill] sm:$0xff] %v5150_v18  ;;  %6044 = vst [vmem:[#allocation95_spill] sm:$0xff] %v5153_v6  ;;  %v5156_v20 = vadd.f32 %v785_v34, %v5087_v28  ;;  %v5159_v19 = vadd.f32 %v858_v36, %v5093_v32 }
 0x16d   :  { %v787_v33 = vpop.f32.mrf.mxu0  ;;  %v860_v24 = vpop.f32.mrf.mxu1 }
 0x16e   :  { %6045 = vst [vmem:[#allocation96_spill] sm:$0xff] %v5156_v20  ;;  %6046 = vst [vmem:[#allocation97_spill] sm:$0xff] %v5159_v19  ;;  %v5162_v26 = vadd.f32 %v787_v33, %v5099_v31  ;;  %v5165_v21 = vadd.f32 %v860_v24, %v5105_v38 }
 0x16f   :  { %v789_v18 = vpop.f32.mrf.mxu0  ;;  %v862_v6 = vpop.f32.mrf.mxu1 }
 0x170   :  { %6047 = vst [vmem:[#allocation98_spill] sm:$0xff] %v5162_v26  ;;  %6048 = vst [vmem:[#allocation99_spill] sm:$0xff] %v5165_v21  ;;  %v5168_v22 = vadd.f32 %v789_v18, %v5087_v28  ;;  %v5171_v34 = vadd.f32 %v862_v6, %v5093_v32 }
 0x171   :  { %v791_v25 = vpop.f32.mrf.mxu0  ;;  %v864_v19 = vpop.f32.mrf.mxu1 }
 0x172   :  { %6049 = vst [vmem:[#allocation100_spill] sm:$0xff] %v5168_v22  ;;  %6050 = vst [vmem:[#allocation101_spill] sm:$0xff] %v5171_v34  ;;  %v5174_v36 = vadd.f32 %v791_v25, %v5099_v31  ;;  %v5177_v33 = vadd.f32 %v864_v19, %v5105_v38 }
 0x173   :  { %v795_v26 = vpop.f32.mrf.mxu0  ;;  %v868_v21 = vpop.f32.mrf.mxu1 }
 0x174   :  { %6051 = vst [vmem:[#allocation102_spill] sm:$0xff] %v5174_v36  ;;  %6052 = vst [vmem:[#allocation103_spill] sm:$0xff] %v5177_v33  ;;  %v5180_v24 = vadd.f32 %v795_v26, %v5087_v28  ;;  %v5183_v18 = vadd.f32 %v868_v21, %v5093_v32  ;;  %v620_v33 = vadd.f32 %v4985_v35, %v4997_v30 }
 0x175   :  { %v797_v20 = vpop.f32.mrf.mxu0  ;;  %v870_v34 = vpop.f32.mrf.mxu1  ;;  %v622_v21 = vadd.f32 %v4994_v40, %v5005_v27  ;;  %v695_v35 = vadd.f32 %v4999_v29, %v5002_v23  ;;  %v693_v27 = vadd.f32 %v4988_v37, %v4992_v39 }
 0x176   :  { %6053 = vst [vmem:[#allocation104_spill] sm:$0xff] %v5180_v24  ;;  %6054 = vst [vmem:[#allocation105_spill] sm:$0xff] %v5183_v18  ;;  %v5186_v6 = vadd.f32 %v797_v20, %v5099_v31  ;;  %v5189_v25 = vadd.f32 %v870_v34, %v5105_v38 }
 0x177   :  { %v799_v36 = vpop.f32.mrf.mxu0  ;;  %v872_v22 = vpop.f32.mrf.mxu1 }
 0x178   :  { %6055 = vst [vmem:[#allocation106_spill] sm:$0xff] %v5186_v6  ;;  %6056 = vst [vmem:[#allocation107_spill] sm:$0xff] %v5189_v25 }
 0x179   :  { %v801_v19 = vpop.f32.mrf.mxu0  ;;  %v874_v26 = vpop.f32.mrf.mxu1 }
 0x17b   :  { %v1199_v24 = vpop.f32.mrf.mxu0  ;;  %v1240_v17 = vpop.f32.mrf.mxu1 }
 0x17c   :  { %v1493_v18 = vadd.f32 %v1199_v24, %v620_v33  ;;  %v1495_v40 = vadd.f32 %v1240_v17, %v693_v27 }
 0x17d   :  { %v1201_v16 = vpop.f32.mrf.mxu0  ;;  %v1242_v15 = vpop.f32.mrf.mxu1 }
 0x17e   :  { %v3728_v20 = vmul.f32 -1.442695, %v1493_v18  ;;  %v1494_v6 = vadd.f32 %v1201_v16, %v622_v21  ;;  %v1496_v30 = vadd.f32 %v1242_v15, %v695_v35  ;;  %v802_v15 = vadd.f32 %v801_v19, %v5099_v31 }
 0x17f   :  { %v1203_v14 = vpop.f32.mrf.mxu0  ;;  %v1244_v25 = vpop.f32.mrf.mxu1  ;;  %v875_v19 = vadd.f32 %v874_v26, %v5105_v38 }
 0x180   :  { %4046 = vpow2.f32 %v3728_v20  ;;  %v3729_v34 = vmul.f32 -1.442695, %v1494_v6  ;;  %v3730_v33 = vmul.f32 -1.442695, %v1496_v30 }
 0x181   :  { %v1204_v13 = vpop.f32.mrf.mxu0  ;;  %v1245_v12 = vpop.f32.mrf.mxu1 }
 0x182   :  { %4048 = vpow2.f32 %v3729_v34  ;;  %v800_v13 = vadd.f32 %v799_v36, %v5087_v28 }
 0x183   :  { %4050 = vtanh.f32 %v1495_v40 }
 0x184   :  { %4052 = vpow2.f32 %v3730_v33 }
 0x18d   :  { %v4047_v24 = vpop.eup %4046 }
 0x18e   :  { %v1508_v18 = vadd.f32 1.0, %v4047_v24 }
 0x18f   :  { %v4049_v16 = vpop.eup %4048 }
 0x190   :  { %4054 = vrcp.f32 %v1508_v18  ;;  %v1514_v14 = vadd.f32 1.0, %v4049_v16  ;;  %v4051_v12 = vpop.eup %4050  ;;  %v873_v16 = vadd.f32 %v872_v22, %v5093_v32 }
 0x191   :  { %v4053_v25 = vpop.eup %4052 }
 0x192   :  { %4056 = vrcp.f32 %v1514_v14  ;;  %v1521_v30 = vadd.f32 1.0, %v4053_v25 }
 0x19b   :  { %v1441_v6 = vpop.f32.mrf.mxu0  ;;  %v1482_v29 = vpop.f32.mrf.mxu1 }
 0x19c   :  { %v1501_v23 = vadd.f32 %v1441_v6, %v800_v13 }
 0x19d   :  { %v4055_v37 = vpop.eup %4054  ;;  %v1443_v17 = vpop.f32.mrf.mxu0 }
 0x19e   :  { %v1525_v39 = vmul.f32 %v4055_v37, %v4051_v12  ;;  %v3731_v21 = vmul.f32 -1.442695, %v1501_v23  ;;  %v1502_v20 = vadd.f32 %v1443_v17, %v802_v15  ;;  %v1484_v34 = vpop.f32.mrf.mxu1  ;;  %v1503_v12 = vadd.f32 %v1482_v29, %v873_v16  ;;  %v6067_v16 = vld [vmem:[#allocation30_spill] sm:$0xff] }
 0x19f   :  { %v4057_v35 = vpop.eup %4056  ;;  %v1445_v27 = vpop.f32.mrf.mxu0  ;;  %v1504_v18 = vadd.f32 %v1484_v34, %v875_v19  ;;  %v6061_v19 = vld [vmem:[#allocation24_spill] sm:$0xff] }
 0x1a0   :  { %v1524_v40 = vmul.f32 0.0, %v4057_v35  ;;  %4058 = vpow2.f32 %v3731_v21  ;;  %v3732_v33 = vmul.f32 -1.442695, %v1502_v20  ;;  %v1486_v28 = vpop.f32.mrf.mxu1  ;;  %v6057_v35 = vld [vmem:[#allocation51_spill] sm:$0xff] }
 0x1a1   :  { %v1446_v36 = vpop.f32.mrf.mxu0  ;;  %v3733_v14 = vmul.f32 -1.442695, %v1504_v18  ;;  %v6058_v28 = vld [vmem:[#allocation21_spill] sm:$0xff]  ;;  %v6064_v18 = vld [vmem:[#allocation27_spill] sm:$0xff] }
 0x1a2   :  { %v5201_v24 = vadd.f32 %v1525_v39, %v1524_v40  ;;  %4060 = vpow2.f32 %v3732_v33  ;;  %v1487_v31 = vpop.f32.mrf.mxu1  ;;  %v6059_v36 = vld [vmem:[#allocation22_spill] sm:$0xff] }
 0x1a3   :  { %4062 = vrcp.f32 %v1521_v30  ;;  %v6060_v31 = vld [vmem:[#allocation23_spill] sm:$0xff] }
 0x1a4   :  { %4064 = vtanh.f32 %v5201_v24 }
 0x1a5   :  { %4066 = vpow2.f32 %v3733_v14  ;;  %v6068_v14 = vld [vmem:[#allocation31_spill] sm:$0xff] }
 0x1ad   :  { %v4059_v13 = vpop.eup %4058 }
 0x1ae   :  { %v1532_v6 = vadd.f32 1.0, %v4059_v13  ;;  %v6069_v13 = vld [vmem:[#allocation32_spill] sm:$0xff] }
 0x1af   :  { %v4061_v25 = vpop.eup %4060 }
 0x1b0   :  { %v4063_v15 = vpop.eup %4062  ;;  %4068 = vrcp.f32 %v1532_v6  ;;  %v1538_v23 = vadd.f32 1.0, %v4061_v25  ;;  %v6071_v6 = vld [vmem:[#allocation34_spill] sm:$0xff]  ;;  %v6072_v25 = vld [vmem:[#allocation35_spill] sm:$0xff] }
 0x1b1   :  { %v4065_v37 = vpop.eup %4064  ;;  %4070 = vtanh.f32 %v1503_v12  ;;  %v6070_v12 = vld [vmem:[#allocation33_spill] sm:$0xff] }
 0x1b2   :  { %4072 = vrcp.f32 %v1538_v23  ;;  %v1528_v17 = vmul.f32 %v4065_v37, %v4063_v15  ;;  %v4067_v32 = vpop.eup %4066  ;;  %v6073_v15 = vld [vmem:[#allocation36_spill] sm:$0xff]  ;;  %v6074_v23 = vld [vmem:[#allocation37_spill] sm:$0xff]  ;;  %v6075_v37 = vld [vmem:[#allocation38_spill] sm:$0xff] }
 0x1b3   :  { %v1545_v29 = vadd.f32 1.0, %v4067_v32  ;;  %v6078_v32 = vld [vmem:[#allocation41_spill] sm:$0xff] }
 0x1b4   :  { %v1553_v39 = vpack.c.bf16 %v1528_v17, %v1528_v17  ;;  %v6076_v17 = vld [vmem:[#allocation39_spill] sm:$0xff] }
 0x1b5   :  { %4074 = vrcp.f32 %v1545_v29  ;;  %v6082_v29 = vld [vmem:[#allocation45_spill] sm:$0xff] }
 0x1b6   :  { %1588 = vmatmul.mubr.bf16.vlgmr.msra.gmra.mxu0 %v1553_v39  ;;  %1629 = vmatmul.mubr.bf16.vlgmr.msra.gmra.mxu1 %v1553_v39  ;;  %v6077_v39 = vld [vmem:[#allocation40_spill] sm:$0xff] }
 0x1b7   :  { %1638 = vmatpush1.bf16.msra.mxu0 %v4844_v41  ;;  %1679 = vmatpush1.bf16.msra.mxu1 %v4848_v42 }
 0x1b8   :  { %1639 = vmatprep.subr.bf16.mxu0 %v4850_v43  ;;  %1680 = vmatprep.subr.bf16.mxu1 %v4853_v44 }
 0x1b9   :  { %1669 = vmatprep.mubr.bf16.mxu0 %v6000_v1  ;;  %1710 = vmatprep.mubr.bf16.mxu1 %v6000_v1 }
 0x1bb   :  { %1640 = vmatpush1.bf16.msra.mxu0 %v4858_v45  ;;  %1681 = vmatpush1.bf16.msra.mxu1 %v4862_v46 }
 0x1bc   :  { %1641 = vmatprep.subr.bf16.mxu0 %v4864_v47  ;;  %1682 = vmatprep.subr.bf16.mxu1 %v4867_v48 }
 0x1bd   :  { %v4069_v38 = vpop.eup %4068 }
 0x1be   :  { %v4071_v22 = vpop.eup %4070 }
 0x1bf   :  { %v4073_v26 = vpop.eup %4072  ;;  %1642 = vmatpush1.bf16.msra.mxu0 %v4872_v49  ;;  %1683 = vmatpush1.bf16.msra.mxu1 %v4876_v50  ;;  %v1549_v20 = vmul.f32 %v4071_v22, %v4069_v38  ;;  %v6079_v38 = vld [vmem:[#allocation42_spill] sm:$0xff]  ;;  %v6080_v22 = vld [vmem:[#allocation43_spill] sm:$0xff] }
 0x1c0   :  { %v1548_v21 = vmul.f32 0.0, %v4073_v26  ;;  %1643 = vmatprep.subr.bf16.mxu0 %v4878_v51  ;;  %1684 = vmatprep.subr.bf16.mxu1 %v4881_v52  ;;  %v6081_v26 = vld [vmem:[#allocation44_spill] sm:$0xff] }
 0x1c2   :  { %v5220_v34 = vadd.f32 %v1549_v20, %v1548_v21  ;;  %v4075_v30 = vpop.eup %4074  ;;  %v6083_v21 = vld [vmem:[#allocation46_spill] sm:$0xff]  ;;  %v6084_v20 = vld [vmem:[#allocation47_spill] sm:$0xff] }
 0x1c3   :  { %1644 = vmatpush1.bf16.msra.mxu0 %v4884_v53  ;;  %1685 = vmatpush1.bf16.msra.mxu1 %v4888_v54 }
 0x1c4   :  { %4076 = vtanh.f32 %v5220_v34  ;;  %1645 = vmatprep.subr.bf16.mxu0 %v4890_v55  ;;  %1686 = vmatprep.subr.bf16.mxu1 %v4893_v56 }
 0x1c7   :  { %1646 = vmatpush1.bf16.msra.mxu0 %v4896_v57  ;;  %1687 = vmatpush1.bf16.msra.mxu1 %v4900_v58 }
 0x1c8   :  { %1647 = vmatprep.subr.bf16.mxu0 %v4902_v59  ;;  %1688 = vmatprep.subr.bf16.mxu1 %v4905_v60 }
 0x1cb   :  { %1648 = vmatpush1.bf16.msra.mxu0 %v4908_v61  ;;  %1689 = vmatpush1.bf16.msra.mxu1 %v4912_v62 }
 0x1cc   :  { %1649 = vmatprep.subr.bf16.mxu0 %v4914_v63  ;;  %1690 = vmatprep.subr.bf16.mxu1 %v6057_v35 }
 0x1cf   :  { %1650 = vmatpush1.bf16.msra.mxu0 %v4920_v2  ;;  %1691 = vmatpush1.bf16.msra.mxu1 %v4924_v3 }
 0x1d0   :  { %1651 = vmatprep.subr.bf16.mxu0 %v4926_v4  ;;  %1692 = vmatprep.subr.bf16.mxu1 %v4929_v5 }
 0x1d1   :  { %v4077_v27 = vpop.eup %4076 }
 0x1d2   :  { %v1552_v40 = vmul.f32 %v4077_v27, %v4075_v30  ;;  %v6085_v30 = vld [vmem:[#allocation48_spill] sm:$0xff]  ;;  %v6086_v27 = vld [vmem:[#allocation49_spill] sm:$0xff] }
 0x1d3   :  { %1652 = vmatpush1.bf16.msra.mxu0 %v4932_v7  ;;  %1693 = vmatpush1.bf16.msra.mxu1 %v4936_v0 }
 0x1d4   :  { %v1554_v33 = vpack.c.bf16 %v1552_v40, %v1552_v40  ;;  %1785 = vmatprep.subr.bf16.mxu0 %v4727_v8  ;;  %1826 = vmatprep.subr.bf16.mxu1 %v4730_v9  ;;  %v6062_v8 = vld [vmem:[#allocation25_spill] sm:$0xff]  ;;  %v6063_v9 = vld [vmem:[#allocation26_spill] sm:$0xff] }
 0x1d5   :  { %v6087_v40 = vld [vmem:[#allocation50_spill] sm:$0xff] }
 0x1d6   :  { %1670 = vmatmul.mubr.bf16.vlgmr.msra.gmra.mxu0 %v1554_v33  ;;  %1711 = vmatmul.mubr.bf16.vlgmr.msra.gmra.mxu1 %v1554_v33 }
 0x1d7   :  { %1786 = vmatpush1.bf16.msra.mxu0 %v4733_v10  ;;  %1827 = vmatpush1.bf16.msra.mxu1 %v4735_v11  ;;  %v6065_v10 = vld [vmem:[#allocation28_spill] sm:$0xff]  ;;  %v6066_v11 = vld [vmem:[#allocation29_spill] sm:$0xff] }
 0x1d8   :  { %1787 = vmatprep.subr.bf16.mxu0 %v6058_v28  ;;  %1828 = vmatprep.subr.bf16.mxu1 %v6059_v36  ;;  %v6088_v36 = vld [vmem:[#allocation52_spill] sm:$0xff] }
 0x1d9   :  { %1817 = vmatprep.mubr.bf16.mxu0 %v6000_v1  ;;  %1858 = vmatprep.mubr.bf16.mxu1 %v6000_v1 }
 0x1db   :  { %1788 = vmatpush1.bf16.msra.mxu0 %v6060_v31  ;;  %1829 = vmatpush1.bf16.msra.mxu1 %v6061_v19 }
 0x1dc   :  { %1789 = vmatprep.subr.bf16.mxu0 %v6062_v8  ;;  %1830 = vmatprep.subr.bf16.mxu1 %v6063_v9 }
 0x1df   :  { %1790 = vmatpush1.bf16.msra.mxu0 %v6064_v18  ;;  %1831 = vmatpush1.bf16.msra.mxu1 %v6065_v10  ;;  %v6089_v18 = vld [vmem:[#allocation54_spill] sm:$0xff] }
 0x1e0   :  { %1791 = vmatprep.subr.bf16.mxu0 %v6066_v11  ;;  %1832 = vmatprep.subr.bf16.mxu1 %v6067_v16 }
 0x1e3   :  { %1792 = vmatpush1.bf16.msra.mxu0 %v6068_v14  ;;  %1833 = vmatpush1.bf16.msra.mxu1 %v6069_v13 }
 0x1e4   :  { %1793 = vmatprep.subr.bf16.mxu0 %v6070_v12  ;;  %1834 = vmatprep.subr.bf16.mxu1 %v6071_v6  ;;  %v6090_v6 = vld [vmem:[#allocation55_spill] sm:$0xff] }
 0x1e7   :  { %1794 = vmatpush1.bf16.msra.mxu0 %v6072_v25  ;;  %1835 = vmatpush1.bf16.msra.mxu1 %v6073_v15  ;;  %v6091_v15 = vld [vmem:[#allocation53_spill] sm:$0xff] }
 0x1e8   :  { %1795 = vmatprep.subr.bf16.mxu0 %v6074_v23  ;;  %1836 = vmatprep.subr.bf16.mxu1 %v6075_v37 }
 0x1eb   :  { %1796 = vmatpush1.bf16.msra.mxu0 %v6076_v17  ;;  %1837 = vmatpush1.bf16.msra.mxu1 %v6077_v39 }
 0x1ec   :  { %1797 = vmatprep.subr.bf16.mxu0 %v6078_v32  ;;  %1838 = vmatprep.subr.bf16.mxu1 %v6079_v38 }
 0x1ef   :  { %1798 = vmatpush1.bf16.msra.mxu0 %v6080_v22  ;;  %1839 = vmatpush1.bf16.msra.mxu1 %v6081_v26 }
 0x1f0   :  { %1799 = vmatprep.subr.bf16.mxu0 %v6082_v29  ;;  %1840 = vmatprep.subr.bf16.mxu1 %v6083_v21 }
 0x1f3   :  { %1800 = vmatpush1.bf16.msra.mxu0 %v6084_v20  ;;  %1841 = vmatpush1.bf16.msra.mxu1 %v6085_v30  ;;  %v6092_v20 = vld [vmem:[#allocation104_spill] sm:$0xff] }
 0x1f4   :  { %1867 = vmatprep.subr.bf16.mxu0 %v6086_v27  ;;  %1908 = vmatprep.subr.bf16.mxu1 %v6087_v40 }
 0x276   :  { %v1589_v33 = vpop.f32.mrf.mxu0  ;;  %v1630_v28 = vpop.f32.mrf.mxu1 }
 0x277   :  { %v1723_v31 = vadd.f32 %v1589_v33, %v6088_v36  ;;  %v1725_v23 = vadd.f32 %v1630_v28, %v6091_v15  ;;  %v6095_v15 = vld [vmem:[#allocation105_spill] sm:$0xff] }
 0x278   :  { %v1591_v19 = vpop.f32.mrf.mxu0  ;;  %v1632_v8 = vpop.f32.mrf.mxu1 }
 0x279   :  { %v3734_v9 = vmul.f32 -1.442695, %v1723_v31  ;;  %v1724_v10 = vadd.f32 %v1591_v19, %v6089_v18  ;;  %v1726_v25 = vadd.f32 %v1632_v8, %v6090_v6  ;;  %v6093_v31 = vld [vmem:[#allocation106_spill] sm:$0xff]  ;;  %v6094_v6 = vld [vmem:[#allocation107_spill] sm:$0xff] }
 0x27a   :  { %v1593_v11 = vpop.f32.mrf.mxu0  ;;  %v1634_v16 = vpop.f32.mrf.mxu1 }
 0x27b   :  { %4078 = vpow2.f32 %v3734_v9  ;;  %v3735_v14 = vmul.f32 -1.442695, %v1724_v10  ;;  %v3736_v37 = vmul.f32 -1.442695, %v1726_v25 }
 0x27c   :  { %v1594_v13 = vpop.f32.mrf.mxu0  ;;  %v1635_v12 = vpop.f32.mrf.mxu1 }
 0x27d   :  { %4080 = vpow2.f32 %v3735_v14 }
 0x27e   :  { %4082 = vtanh.f32 %v1725_v23 }
 0x27f   :  { %4084 = vpow2.f32 %v3736_v37 }
 0x288   :  { %v4079_v17 = vpop.eup %4078 }
 0x289   :  { %v1738_v39 = vadd.f32 1.0, %v4079_v17 }
 0x28a   :  { %v4081_v32 = vpop.eup %4080 }
 0x28b   :  { %4086 = vrcp.f32 %v1738_v39  ;;  %v1744_v38 = vadd.f32 1.0, %v4081_v32  ;;  %v4083_v22 = vpop.eup %4082 }
 0x28c   :  { %v4085_v21 = vpop.eup %4084 }
 0x28d   :  { %4088 = vrcp.f32 %v1744_v38  ;;  %v1751_v9 = vadd.f32 1.0, %v4085_v21 }
 0x296   :  { %v1671_v26 = vpop.f32.mrf.mxu0  ;;  %v1712_v29 = vpop.f32.mrf.mxu1 }
 0x297   :  { %v1731_v30 = vadd.f32 %v1671_v26, %v6092_v20  ;;  %v1733_v23 = vadd.f32 %v1712_v29, %v6095_v15 }
 0x298   :  { %v4087_v27 = vpop.eup %4086  ;;  %v1673_v40 = vpop.f32.mrf.mxu0 }
 0x299   :  { %v1714_v33 = vpop.f32.mrf.mxu1  ;;  %v1755_v36 = vmul.f32 %v4087_v27, %v4083_v22  ;;  %v3737_v28 = vmul.f32 -1.442695, %v1731_v30  ;;  %v1732_v19 = vadd.f32 %v1673_v40, %v6093_v31  ;;  %v5393_v27 = vld [vmem:[#allocation8 + $0x40] ss:$16 sps:$4 sm:$0xff]   ;;  %v5396_v40 = vld [vmem:[#allocation8 + $0x48] ss:$16 sps:$4 sm:$0xff]  }
 0x29a   :  { %v4089_v8 = vpop.eup %4088  ;;  %v1675_v18 = vpop.f32.mrf.mxu0  ;;  %v1734_v25 = vadd.f32 %v1714_v33, %v6094_v6  ;;  %6109 = vst [vmem:[#allocation33_spill] sm:$0xff] %v5393_v27  ;;  %6110 = vst [vmem:[#allocation34_spill] sm:$0xff] %v5396_v40  ;;  %v5399_v33 = vld [vmem:[#allocation8 + $0x24] ss:$16 sps:$4 sm:$0xff]   ;;  %v5408_v31 = vld [vmem:[#allocation8 + $0x28] ss:$16 sps:$4 sm:$0xff]  }
 0x29b   :  { %v1716_v10 = vpop.f32.mrf.mxu1  ;;  %v1754_v11 = vmul.f32 %v4089_v8, %v5201_v24  ;;  %4090 = vpow2.f32 %v3737_v28  ;;  %v3738_v16 = vmul.f32 -1.442695, %v1732_v19  ;;  %6111 = vst [vmem:[#allocation35_spill] sm:$0xff] %v5399_v33  ;;  %v5405_v28 = vld [vmem:[#allocation8 + $0x20] ss:$16 sps:$4 sm:$0xff]   ;;  %6114 = vst [vmem:[#allocation38_spill] sm:$0xff] %v5408_v31 }
 0x29c   :  { %v1676_v14 = vpop.f32.mrf.mxu0  ;;  %v3739_v37 = vmul.f32 -1.442695, %v1734_v25  ;;  %6113 = vst [vmem:[#allocation37_spill] sm:$0xff] %v5405_v28  ;;  %v5411_v19 = vld [vmem:[#allocation8 + $0x4] ss:$16 sps:$4 sm:$0xff]  }
 0x29d   :  { %v1717_v13 = vpop.f32.mrf.mxu1  ;;  %v5284_v12 = vadd.f32 %v1755_v36, %v1754_v11  ;;  %4092 = vpow2.f32 %v3738_v16  ;;  %v5402_v36 = vld [vmem:[#allocation8 + $0x2c] ss:$16 sps:$4 sm:$0xff]   ;;  %6115 = vst [vmem:[#allocation39_spill] sm:$0xff] %v5411_v19  ;;  %v5420_v18 = vld [vmem:[#allocation8 + $0x8] ss:$16 sps:$4 sm:$0xff]  }
 0x29e   :  { %4094 = vrcp.f32 %v1751_v9  ;;  %6112 = vst [vmem:[#allocation36_spill] sm:$0xff] %v5402_v36  ;;  %v5414_v8 = vld [vmem:[#allocation8 + $0xc] ss:$16 sps:$4 sm:$0xff]   ;;  %v5417_v9 = vld [vmem:[#allocation8] ss:$16 sps:$4 sm:$0xff]   ;;  %6118 = vst [vmem:[#allocation42_spill] sm:$0xff] %v5420_v18 }
 0x29f   :  { %4096 = vtanh.f32 %v5284_v12  ;;  %6116 = vst [vmem:[#allocation40_spill] sm:$0xff] %v5414_v8  ;;  %6117 = vst [vmem:[#allocation41_spill] sm:$0xff] %v5417_v9  ;;  %v5423_v10 = vld [vmem:[#allocation9 + $0xe4] ss:$16 sps:$4 sm:$0xff]   ;;  %v5426_v11 = vld [vmem:[#allocation9 + $0xec] ss:$16 sps:$4 sm:$0xff]  }
 0x2a0   :  { %4098 = vtanh.f32 %v1733_v23  ;;  %6119 = vst [vmem:[#allocation43_spill] sm:$0xff] %v5423_v10  ;;  %6120 = vst [vmem:[#allocation44_spill] sm:$0xff] %v5426_v11  ;;  %v6121_v13 = vld [vmem:[#allocation56_spill] sm:$0xff] }
 0x2a1   :  { %4100 = vpow2.f32 %v3739_v37  ;;  %v6122_v37 = vld [vmem:[#allocation58_spill] sm:$0xff] }
 0x2a8   :  { %v4091_v17 = vpop.eup %4090 }
 0x2a9   :  { %v1762_v39 = vadd.f32 1.0, %v4091_v17 }
 0x2aa   :  { %v4093_v32 = vpop.eup %4092 }
 0x2ab   :  { %v4095_v24 = vpop.eup %4094  ;;  %4102 = vrcp.f32 %v1762_v39  ;;  %v1768_v38 = vadd.f32 1.0, %v4093_v32 }
 0x2ac   :  { %v4097_v22 = vpop.eup %4096 }
 0x2ad   :  { %4104 = vrcp.f32 %v1768_v38  ;;  %v1758_v26 = vmul.f32 %v4097_v22, %v4095_v24  ;;  %v4099_v29 = vpop.eup %4098 }
 0x2ae   :  { %v4101_v20 = vpop.eup %4100 }
 0x2af   :  { %v1783_v21 = vpack.c.bf16 %v1758_v26, %v1758_v26  ;;  %v6123_v26 = vld [vmem:[#allocation59_spill] sm:$0xff] }
 0x2b1   :  { %1818 = vmatmul.mubr.bf16.vlgmr.msra.gmra.mxu0 %v1783_v21  ;;  %1859 = vmatmul.mubr.bf16.vlgmr.msra.gmra.mxu1 %v1783_v21 }
 0x2b2   :  { %1868 = vmatpush1.bf16.msra.mxu0 %v4844_v41  ;;  %1909 = vmatpush1.bf16.msra.mxu1 %v4848_v42 }
 0x2b3   :  { %1869 = vmatprep.subr.bf16.mxu0 %v4850_v43  ;;  %1910 = vmatprep.subr.bf16.mxu1 %v4853_v44  ;;  %v1775_v43 = vadd.f32 1.0, %v4101_v20 }
 0x2b4   :  { %1899 = vmatprep.mubr.bf16.mxu0 %v6000_v1  ;;  %1940 = vmatprep.mubr.bf16.mxu1 %v6000_v1 }
 0x2b5   :  { %4106 = vrcp.f32 %v1775_v43 }
 0x2b6   :  { %1870 = vmatpush1.bf16.msra.mxu0 %v4858_v45  ;;  %1911 = vmatpush1.bf16.msra.mxu1 %v4862_v46 }
 0x2b7   :  { %1871 = vmatprep.subr.bf16.mxu0 %v4864_v47  ;;  %1912 = vmatprep.subr.bf16.mxu1 %v4867_v48 }
 0x2b8   :  { %v4103_v41 = vpop.eup %4102 }
 0x2b9   :  { %v1779_v42 = vmul.f32 %v4103_v41, %v4099_v29  ;;  %v6124_v29 = vld [vmem:[#allocation57_spill] sm:$0xff] }
 0x2ba   :  { %v4105_v30 = vpop.eup %4104  ;;  %1872 = vmatpush1.bf16.msra.mxu0 %v4872_v49  ;;  %1913 = vmatpush1.bf16.msra.mxu1 %v4876_v50  ;;  %v5325_v50 = vld [vmem:[#allocation8 + $0xe4] ss:$16 sps:$4 sm:$0xff]  }
 0x2bb   :  { %v1778_v44 = vmul.f32 %v4105_v30, %v5220_v34  ;;  %1873 = vmatprep.subr.bf16.mxu0 %v4878_v51  ;;  %1914 = vmatprep.subr.bf16.mxu1 %v4881_v52  ;;  %v5328_v51 = vld [vmem:[#allocation8 + $0xec] ss:$16 sps:$4 sm:$0xff]   ;;  %v5331_v52 = vld [vmem:[#allocation8 + $0xe0] ss:$16 sps:$4 sm:$0xff]   ;;  %v5387_v34 = vld [vmem:[#allocation8 + $0x44] ss:$16 sps:$4 sm:$0xff]  }
 0x2bc   :  { %6107 = vst [vmem:[#allocation31_spill] sm:$0xff] %v5387_v34 }
 0x2bd   :  { %v5304_v45 = vadd.f32 %v1779_v42, %v1778_v44 }
 0x2be   :  { %1874 = vmatpush1.bf16.msra.mxu0 %v4884_v53  ;;  %1915 = vmatpush1.bf16.msra.mxu1 %v4888_v54  ;;  %v5334_v53 = vld [vmem:[#allocation8 + $0xe8] ss:$16 sps:$4 sm:$0xff]   ;;  %v5340_v54 = vld [vmem:[#allocation8 + $0xcc] ss:$16 sps:$4 sm:$0xff]  }
 0x2bf   :  { %1875 = vmatprep.subr.bf16.mxu0 %v4890_v55  ;;  %1916 = vmatprep.subr.bf16.mxu1 %v4893_v56  ;;  %4108 = vtanh.f32 %v5304_v45  ;;  %v5345_v55 = vld [vmem:[#allocation8 + $0xc0] ss:$16 sps:$4 sm:$0xff]   ;;  %v5348_v56 = vld [vmem:[#allocation8 + $0xc8] ss:$16 sps:$4 sm:$0xff]  }
 0x2c2   :  { %1876 = vmatpush1.bf16.msra.mxu0 %v4896_v57  ;;  %1917 = vmatpush1.bf16.msra.mxu1 %v4900_v58  ;;  %v4107_v46 = vpop.eup %4106  ;;  %v5351_v57 = vld [vmem:[#allocation8 + $0xa4] ss:$16 sps:$4 sm:$0xff]   ;;  %v5354_v58 = vld [vmem:[#allocation8 + $0xac] ss:$16 sps:$4 sm:$0xff]  }
 0x2c3   :  { %1877 = vmatprep.subr.bf16.mxu0 %v4902_v59  ;;  %1918 = vmatprep.subr.bf16.mxu1 %v4905_v60  ;;  %6096 = vst [vmem:[#allocation51_spill] sm:$0xff] %v5354_v58  ;;  %v5357_v59 = vld [vmem:[#allocation8 + $0xa0] ss:$16 sps:$4 sm:$0xff]   ;;  %v5360_v60 = vld [vmem:[#allocation8 + $0xa8] ss:$16 sps:$4 sm:$0xff]  }
 0x2c4   :  { %6097 = vst [vmem:[#allocation21_spill] sm:$0xff] %v5357_v59  ;;  %6098 = vst [vmem:[#allocation22_spill] sm:$0xff] %v5360_v60 }
 0x2c6   :  { %1878 = vmatpush1.bf16.msra.mxu0 %v4908_v61  ;;  %1919 = vmatpush1.bf16.msra.mxu1 %v4912_v62  ;;  %v5363_v61 = vld [vmem:[#allocation8 + $0x84] ss:$16 sps:$4 sm:$0xff]   ;;  %v5366_v62 = vld [vmem:[#allocation8 + $0x8c] ss:$16 sps:$4 sm:$0xff]  }
 0x2c7   :  { %1879 = vmatprep.subr.bf16.mxu0 %v4914_v63  ;;  %1920 = vmatprep.subr.bf16.mxu1 %v6057_v35  ;;  %6099 = vst [vmem:[#allocation23_spill] sm:$0xff] %v5363_v61  ;;  %6100 = vst [vmem:[#allocation24_spill] sm:$0xff] %v5366_v62  ;;  %v5369_v63 = vld [vmem:[#allocation8 + $0x80] ss:$16 sps:$4 sm:$0xff]   ;;  %v5390_v35 = vld [vmem:[#allocation8 + $0x4c] ss:$16 sps:$4 sm:$0xff]  }
 0x2c8   :  { %6101 = vst [vmem:[#allocation25_spill] sm:$0xff] %v5369_v63  ;;  %6108 = vst [vmem:[#allocation32_spill] sm:$0xff] %v5390_v35 }
 0x2ca   :  { %1880 = vmatpush1.bf16.msra.mxu0 %v4920_v2  ;;  %1921 = vmatpush1.bf16.msra.mxu1 %v4924_v3  ;;  %v5372_v2 = vld [vmem:[#allocation8 + $0x88] ss:$16 sps:$4 sm:$0xff]   ;;  %v5375_v3 = vld [vmem:[#allocation8 + $0x64] ss:$16 sps:$4 sm:$0xff]  }
 0x2cb   :  { %1881 = vmatprep.subr.bf16.mxu0 %v4926_v4  ;;  %1922 = vmatprep.subr.bf16.mxu1 %v4929_v5  ;;  %6102 = vst [vmem:[#allocation26_spill] sm:$0xff] %v5372_v2  ;;  %6103 = vst [vmem:[#allocation27_spill] sm:$0xff] %v5375_v3  ;;  %v5378_v4 = vld [vmem:[#allocation8 + $0x6c] ss:$16 sps:$4 sm:$0xff]   ;;  %v5381_v5 = vld [vmem:[#allocation8 + $0x60] ss:$16 sps:$4 sm:$0xff]  }
 0x2cc   :  { %v4109_v47 = vpop.eup %4108  ;;  %6104 = vst [vmem:[#allocation28_spill] sm:$0xff] %v5378_v4  ;;  %6105 = vst [vmem:[#allocation29_spill] sm:$0xff] %v5381_v5 }
 0x2cd   :  { %v1782_v48 = vmul.f32 %v4109_v47, %v4107_v46 }
 0x2ce   :  { %1882 = vmatpush1.bf16.msra.mxu0 %v4932_v7  ;;  %1923 = vmatpush1.bf16.msra.mxu1 %v4936_v0  ;;  %v5337_v0 = vld [vmem:[#allocation8 + $0xc4] ss:$16 sps:$4 sm:$0xff]   ;;  %v5384_v7 = vld [vmem:[#allocation8 + $0x68] ss:$16 sps:$4 sm:$0xff]  }
 0x2cf   :  { %v1784_v49 = vpack.c.bf16 %v1782_v48, %v1782_v48  ;;  %2015 = vmatprep.subr.bf16.mxu0 %v5325_v50  ;;  %2056 = vmatprep.subr.bf16.mxu1 %v5328_v51  ;;  %6106 = vst [vmem:[#allocation30_spill] sm:$0xff] %v5384_v7 }
 0x2d1   :  { %1900 = vmatmul.mubr.bf16.vlgmr.msra.gmra.mxu0 %v1784_v49  ;;  %1941 = vmatmul.mubr.bf16.vlgmr.msra.gmra.mxu1 %v1784_v49 }
 0x2d2   :  { %2016 = vmatpush1.bf16.msra.mxu0 %v5331_v52  ;;  %2057 = vmatpush1.bf16.msra.mxu1 %v5334_v53 }
 0x2d3   :  { %2017 = vmatprep.subr.bf16.mxu0 %v5337_v0  ;;  %2058 = vmatprep.subr.bf16.mxu1 %v5340_v54 }
 0x2d4   :  { %2047 = vmatprep.mubr.bf16.mxu0 %v6000_v1  ;;  %2088 = vmatprep.mubr.bf16.mxu1 %v6000_v1 }
 0x2d6   :  { %2018 = vmatpush1.bf16.msra.mxu0 %v5345_v55  ;;  %2059 = vmatpush1.bf16.msra.mxu1 %v5348_v56 }
 0x2d7   :  { %2019 = vmatprep.subr.bf16.mxu0 %v5351_v57  ;;  %2060 = vmatprep.subr.bf16.mxu1 %v5354_v58 }
 0x2da   :  { %2020 = vmatpush1.bf16.msra.mxu0 %v5357_v59  ;;  %2061 = vmatpush1.bf16.msra.mxu1 %v5360_v60 }
 0x2db   :  { %2021 = vmatprep.subr.bf16.mxu0 %v5363_v61  ;;  %2062 = vmatprep.subr.bf16.mxu1 %v5366_v62 }
 0x2de   :  { %2022 = vmatpush1.bf16.msra.mxu0 %v5369_v63  ;;  %2063 = vmatpush1.bf16.msra.mxu1 %v5372_v2 }
 0x2df   :  { %2023 = vmatprep.subr.bf16.mxu0 %v5375_v3  ;;  %2064 = vmatprep.subr.bf16.mxu1 %v5378_v4 }
 0x2e2   :  { %2024 = vmatpush1.bf16.msra.mxu0 %v5381_v5  ;;  %2065 = vmatpush1.bf16.msra.mxu1 %v5384_v7 }
 0x2e3   :  { %2025 = vmatprep.subr.bf16.mxu0 %v5387_v34  ;;  %2066 = vmatprep.subr.bf16.mxu1 %v5390_v35 }
 0x2e6   :  { %2026 = vmatpush1.bf16.msra.mxu0 %v5393_v27  ;;  %2067 = vmatpush1.bf16.msra.mxu1 %v5396_v40 }
 0x2e7   :  { %2027 = vmatprep.subr.bf16.mxu0 %v5399_v33  ;;  %2068 = vmatprep.subr.bf16.mxu1 %v5402_v36 }
 0x2ea   :  { %2028 = vmatpush1.bf16.msra.mxu0 %v5405_v28  ;;  %2069 = vmatpush1.bf16.msra.mxu1 %v5408_v31 }
 0x2eb   :  { %2029 = vmatprep.subr.bf16.mxu0 %v5411_v19  ;;  %2070 = vmatprep.subr.bf16.mxu1 %v5414_v8 }
 0x2ee   :  { %2030 = vmatpush1.bf16.msra.mxu0 %v5417_v9  ;;  %2071 = vmatpush1.bf16.msra.mxu1 %v5420_v18 }
 0x2ef   :  { %2097 = vmatprep.subr.bf16.mxu0 %v5423_v10  ;;  %2138 = vmatprep.subr.bf16.mxu1 %v5426_v11 }
 0x371   :  { %v1819_v16 = vpop.f32.mrf.mxu0  ;;  %v1860_v14 = vpop.f32.mrf.mxu1 }
 0x372   :  { %v1953_v6 = vadd.f32 %v1819_v16, %v6121_v13  ;;  %v1955_v20 = vadd.f32 %v1860_v14, %v6124_v29  ;;  %v6125_v16 = vld [vmem:[#allocation100_spill] sm:$0xff] }
 0x373   :  { %v1821_v25 = vpop.f32.mrf.mxu0  ;;  %v1862_v15 = vpop.f32.mrf.mxu1 }
 0x374   :  { %v3740_v23 = vmul.f32 -1.442695, %v1953_v6  ;;  %v1954_v17 = vadd.f32 %v1821_v25, %v6122_v37  ;;  %v1956_v21 = vadd.f32 %v1862_v15, %v6123_v26  ;;  %v6126_v37 = vld [vmem:[#allocation102_spill] sm:$0xff] }
 0x375   :  { %v1823_v39 = vpop.f32.mrf.mxu0  ;;  %v1864_v32 = vpop.f32.mrf.mxu1 }
 0x376   :  { %4110 = vpow2.f32 %v3740_v23  ;;  %v3741_v24 = vmul.f32 -1.442695, %v1954_v17  ;;  %v3742_v41 = vmul.f32 -1.442695, %v1956_v21 }
 0x377   :  { %v1824_v38 = vpop.f32.mrf.mxu0  ;;  %v1865_v22 = vpop.f32.mrf.mxu1 }
 0x378   :  { %4112 = vpow2.f32 %v3741_v24 }
 0x379   :  { %4114 = vtanh.f32 %v1955_v20 }
 0x37a   :  { %4116 = vpow2.f32 %v3742_v41  ;;  %v6127_v41 = vld [vmem:[#allocation103_spill] sm:$0xff] }
 0x383   :  { %v4111_v42 = vpop.eup %4110 }
 0x384   :  { %v1968_v30 = vadd.f32 1.0, %v4111_v42 }
 0x385   :  { %v4113_v43 = vpop.eup %4112 }
 0x386   :  { %4118 = vrcp.f32 %v1968_v30  ;;  %v1974_v44 = vadd.f32 1.0, %v4113_v43  ;;  %v4115_v46 = vpop.eup %4114  ;;  %v6128_v30 = vld [vmem:[#allocation101_spill] sm:$0xff] }
 0x387   :  { %v4117_v49 = vpop.eup %4116 }
 0x388   :  { %4120 = vrcp.f32 %v1974_v44  ;;  %v1981_v32 = vadd.f32 1.0, %v4117_v49 }
 0x391   :  { %v1901_v47 = vpop.f32.mrf.mxu0  ;;  %v1942_v48 = vpop.f32.mrf.mxu1 }
 0x392   :  { %v1961_v13 = vadd.f32 %v1901_v47, %v6125_v16  ;;  %v1963_v43 = vadd.f32 %v1942_v48, %v6128_v30  ;;  %v5444_v48 = vld [vmem:[#allocation9 + $0xe8] ss:$16 sps:$4 sm:$0xff]  }
 0x393   :  { %v4119_v6 = vpop.eup %4118  ;;  %v1903_v25 = vpop.f32.mrf.mxu0 }
 0x394   :  { %v1944_v15 = vpop.f32.mrf.mxu1  ;;  %v1985_v23 = vmul.f32 %v4119_v6, %v4115_v46  ;;  %v3743_v14 = vmul.f32 -1.442695, %v1961_v13  ;;  %v1962_v17 = vadd.f32 %v1903_v25, %v6126_v37 }
 0x395   :  { %v4121_v39 = vpop.eup %4120  ;;  %v1905_v24 = vpop.f32.mrf.mxu0  ;;  %v1964_v42 = vadd.f32 %v1944_v15, %v6127_v41  ;;  %v5447_v15 = vld [vmem:[#allocation9 + $0xc4] ss:$16 sps:$4 sm:$0xff]   ;;  %v5467_v41 = vld [vmem:[#allocation9 + $0xa0] ss:$16 sps:$4 sm:$0xff]  }
 0x396   :  { %v1946_v38 = vpop.f32.mrf.mxu1  ;;  %v1984_v22 = vmul.f32 %v4121_v39, %v5284_v12  ;;  %4122 = vpow2.f32 %v3743_v14  ;;  %v3744_v26 = vmul.f32 -1.442695, %v1962_v17  ;;  %v5450_v14 = vld [vmem:[#allocation9 + $0xcc] ss:$16 sps:$4 sm:$0xff]   ;;  %v5455_v17 = vld [vmem:[#allocation9 + $0xc0] ss:$16 sps:$4 sm:$0xff]  }
 0x397   :  { %v1906_v21 = vpop.f32.mrf.mxu0  ;;  %v3745_v44 = vmul.f32 -1.442695, %v1964_v42  ;;  %v5458_v39 = vld [vmem:[#allocation9 + $0xc8] ss:$16 sps:$4 sm:$0xff]   ;;  %v5461_v24 = vld [vmem:[#allocation9 + $0xa4] ss:$16 sps:$4 sm:$0xff]  }
 0x398   :  { %v1947_v29 = vpop.f32.mrf.mxu1  ;;  %v5436_v20 = vadd.f32 %v1985_v23, %v1984_v22  ;;  %4124 = vpow2.f32 %v3744_v26  ;;  %v5441_v23 = vld [vmem:[#allocation9 + $0xe0] ss:$16 sps:$4 sm:$0xff]   ;;  %v5464_v38 = vld [vmem:[#allocation9 + $0xac] ss:$16 sps:$4 sm:$0xff]   ;;  %v5470_v42 = vld [vmem:[#allocation9 + $0xa8] ss:$16 sps:$4 sm:$0xff]  }
 0x399   :  { %4126 = vrcp.f32 %v1981_v32 }
 0x39a   :  { %4128 = vtanh.f32 %v5436_v20 }
 0x39b   :  { %4130 = vtanh.f32 %v1963_v43  ;;  %v5474_v43 = vld [vmem:[#allocation9 + $0x84] ss:$16 sps:$4 sm:$0xff]  }
 0x39c   :  { %4132 = vpow2.f32 %v3745_v44  ;;  %v5477_v44 = vld [vmem:[#allocation9 + $0x8c] ss:$16 sps:$4 sm:$0xff]  }
 0x3a3   :  { %v4123_v46 = vpop.eup %4122 }
 0x3a4   :  { %v1992_v47 = vadd.f32 1.0, %v4123_v46 }
 0x3a5   :  { %v4125_v49 = vpop.eup %4124 }
 0x3a6   :  { %v4127_v12 = vpop.eup %4126  ;;  %4134 = vrcp.f32 %v1992_v47  ;;  %v1998_v16 = vadd.f32 1.0, %v4125_v49  ;;  %v5482_v47 = vld [vmem:[#allocation9 + $0x80] ss:$16 sps:$4 sm:$0xff]   ;;  %v5485_v49 = vld [vmem:[#allocation9 + $0x88] ss:$16 sps:$4 sm:$0xff]  }
 0x3a7   :  { %v4129_v13 = vpop.eup %4128 }
 0x3a8   :  { %4136 = vrcp.f32 %v1998_v16  ;;  %v1988_v6 = vmul.f32 %v4129_v13, %v4127_v12  ;;  %v4131_v37 = vpop.eup %4130  ;;  %v5491_v12 = vld [vmem:[#allocation9 + $0x6c] ss:$16 sps:$4 sm:$0xff]   ;;  %v5495_v16 = vld [vmem:[#allocation9 + $0x60] ss:$16 sps:$4 sm:$0xff]   ;;  %v5498_v13 = vld [vmem:[#allocation9 + $0x68] ss:$16 sps:$4 sm:$0xff]  }
 0x3a9   :  { %v4133_v32 = vpop.eup %4132 }
 0x3aa   :  { %v2013_v25 = vpack.c.bf16 %v1988_v6, %v1988_v6  ;;  %v2005_v29 = vadd.f32 1.0, %v4133_v32  ;;  %v5501_v6 = vld [vmem:[#allocation9 + $0x44] ss:$16 sps:$4 sm:$0xff]   ;;  %v5510_v32 = vld [vmem:[#allocation9 + $0x48] ss:$16 sps:$4 sm:$0xff]  }
 0x3ab   :  { %6131 = vst [vmem:[#allocation47_spill] sm:$0xff] %v5510_v32 }
 0x3ac   :  { %2048 = vmatmul.mubr.bf16.vlgmr.msra.gmra.mxu0 %v2013_v25  ;;  %2089 = vmatmul.mubr.bf16.vlgmr.msra.gmra.mxu1 %v2013_v25  ;;  %4138 = vrcp.f32 %v2005_v29  ;;  %v5504_v25 = vld [vmem:[#allocation9 + $0x4c] ss:$16 sps:$4 sm:$0xff]   ;;  %v5522_v29 = vld [vmem:[#allocation9 + $0x28] ss:$16 sps:$4 sm:$0xff]  }
 0x3ad   :  { %2098 = vmatpush1.bf16.msra.mxu0 %v5441_v23  ;;  %2139 = vmatpush1.bf16.msra.mxu1 %v5444_v48  ;;  %6129 = vst [vmem:[#allocation45_spill] sm:$0xff] %v5504_v25  ;;  %6135 = vst [vmem:[#allocation52_spill] sm:$0xff] %v5522_v29 }
 0x3ae   :  { %2099 = vmatprep.subr.bf16.mxu0 %v5447_v15  ;;  %2140 = vmatprep.subr.bf16.mxu1 %v5450_v14 }
 0x3af   :  { %2129 = vmatprep.mubr.bf16.mxu0 %v6000_v1  ;;  %2170 = vmatprep.mubr.bf16.mxu1 %v6000_v1 }
 0x3b1   :  { %2100 = vmatpush1.bf16.msra.mxu0 %v5455_v17  ;;  %2141 = vmatpush1.bf16.msra.mxu1 %v5458_v39 }
 0x3b2   :  { %2101 = vmatprep.subr.bf16.mxu0 %v5461_v24  ;;  %2142 = vmatprep.subr.bf16.mxu1 %v5464_v38 }
 0x3b3   :  { %v4135_v22 = vpop.eup %4134 }
 0x3b4   :  { %v2009_v26 = vmul.f32 %v4135_v22, %v4131_v37  ;;  %v5507_v37 = vld [vmem:[#allocation9 + $0x40] ss:$16 sps:$4 sm:$0xff]   ;;  %v5513_v22 = vld [vmem:[#allocation9 + $0x24] ss:$16 sps:$4 sm:$0xff]  }
 0x3b5   :  { %v4137_v21 = vpop.eup %4136  ;;  %2102 = vmatpush1.bf16.msra.mxu0 %v5467_v41  ;;  %2143 = vmatpush1.bf16.msra.mxu1 %v5470_v42  ;;  %6130 = vst [vmem:[#allocation46_spill] sm:$0xff] %v5507_v37  ;;  %6132 = vst [vmem:[#allocation48_spill] sm:$0xff] %v5513_v22 }
 0x3b6   :  { %v2008_v30 = vmul.f32 %v4137_v21, %v5304_v45  ;;  %2103 = vmatprep.subr.bf16.mxu0 %v5474_v43  ;;  %2144 = vmatprep.subr.bf16.mxu1 %v5477_v44  ;;  %v5488_v45 = vld [vmem:[#allocation9 + $0x64] ss:$16 sps:$4 sm:$0xff]   ;;  %v5519_v21 = vld [vmem:[#allocation9 + $0x20] ss:$16 sps:$4 sm:$0xff]  }
 0x3b7   :  { %6134 = vst [vmem:[#allocation50_spill] sm:$0xff] %v5519_v21 }
 0x3b8   :  { %v5480_v46 = vadd.f32 %v2009_v26, %v2008_v30  ;;  %v5516_v26 = vld [vmem:[#allocation9 + $0x2c] ss:$16 sps:$4 sm:$0xff]  }
 0x3b9   :  { %2104 = vmatpush1.bf16.msra.mxu0 %v5482_v47  ;;  %2145 = vmatpush1.bf16.msra.mxu1 %v5485_v49  ;;  %6133 = vst [vmem:[#allocation49_spill] sm:$0xff] %v5516_v26  ;;  %v4139_v30 = vpop.eup %4138 }
 0x3ba   :  { %2105 = vmatprep.subr.bf16.mxu0 %v5488_v45  ;;  %2146 = vmatprep.subr.bf16.mxu1 %v5491_v12  ;;  %4140 = vtanh.f32 %v5480_v46 }
 0x3bd   :  { %2106 = vmatpush1.bf16.msra.mxu0 %v5495_v16  ;;  %2147 = vmatpush1.bf16.msra.mxu1 %v5498_v13 }
 0x3be   :  { %2107 = vmatprep.subr.bf16.mxu0 %v5501_v6  ;;  %2148 = vmatprep.subr.bf16.mxu1 %v5504_v25 }
 0x3c1   :  { %2108 = vmatpush1.bf16.msra.mxu0 %v5507_v37  ;;  %2149 = vmatpush1.bf16.msra.mxu1 %v5510_v32  ;;  %v5525_v37 = vld [vmem:[#allocation9 + $0x4] ss:$16 sps:$4 sm:$0xff]   ;;  %v5528_v32 = vld [vmem:[#allocation9 + $0xc] ss:$16 sps:$4 sm:$0xff]  }
 0x3c2   :  { %2109 = vmatprep.subr.bf16.mxu0 %v5513_v22  ;;  %2150 = vmatprep.subr.bf16.mxu1 %v5516_v26  ;;  %v5531_v26 = vld [vmem:[#allocation9] ss:$16 sps:$4 sm:$0xff]  }
 0x3c5   :  { %2110 = vmatpush1.bf16.msra.mxu0 %v5519_v21  ;;  %2151 = vmatpush1.bf16.msra.mxu1 %v5522_v29  ;;  %v5534_v21 = vld [vmem:[#allocation9 + $0x8] ss:$16 sps:$4 sm:$0xff]  }
 0x3c6   :  { %2111 = vmatprep.subr.bf16.mxu0 %v5525_v37  ;;  %2152 = vmatprep.subr.bf16.mxu1 %v5528_v32 }
 0x3c7   :  { %v4141_v22 = vpop.eup %4140 }
 0x3c8   :  { %v2012_v25 = vmul.f32 %v4141_v22, %v4139_v30 }
 0x3c9   :  { %2112 = vmatpush1.bf16.msra.mxu0 %v5531_v26  ;;  %2153 = vmatpush1.bf16.msra.mxu1 %v5534_v21 }
 0x3ca   :  { %v2014_v29 = vpack.c.bf16 %v2012_v25, %v2012_v25  ;;  %2245 = vmatprep.subr.bf16.mxu0 %v5325_v50  ;;  %2286 = vmatprep.subr.bf16.mxu1 %v5328_v51 }
 0x3cc   :  { %2130 = vmatmul.mubr.bf16.vlgmr.msra.gmra.mxu0 %v2014_v29  ;;  %2171 = vmatmul.mubr.bf16.vlgmr.msra.gmra.mxu1 %v2014_v29  ;;  %v6136_v29 = vld [vmem:[#allocation60_spill] sm:$0xff] }
 0x3cd   :  { %2246 = vmatpush1.bf16.msra.mxu0 %v5331_v52  ;;  %2287 = vmatpush1.bf16.msra.mxu1 %v5334_v53 }
 0x3ce   :  { %2247 = vmatprep.subr.bf16.mxu0 %v5337_v0  ;;  %2288 = vmatprep.subr.bf16.mxu1 %v5340_v54 }
 0x3cf   :  { %2277 = vmatprep.mubr.bf16.mxu0 %v6000_v1  ;;  %2318 = vmatprep.mubr.bf16.mxu1 %v6000_v1 }
 0x3d1   :  { %2248 = vmatpush1.bf16.msra.mxu0 %v5345_v55  ;;  %2289 = vmatpush1.bf16.msra.mxu1 %v5348_v56 }
 0x3d2   :  { %2249 = vmatprep.subr.bf16.mxu0 %v5351_v57  ;;  %2290 = vmatprep.subr.bf16.mxu1 %v5354_v58 }
 0x3d5   :  { %2250 = vmatpush1.bf16.msra.mxu0 %v5357_v59  ;;  %2291 = vmatpush1.bf16.msra.mxu1 %v5360_v60 }
 0x3d6   :  { %2251 = vmatprep.subr.bf16.mxu0 %v5363_v61  ;;  %2292 = vmatprep.subr.bf16.mxu1 %v5366_v62 }
 0x3d9   :  { %2252 = vmatpush1.bf16.msra.mxu0 %v5369_v63  ;;  %2293 = vmatpush1.bf16.msra.mxu1 %v5372_v2 }
 0x3da   :  { %2253 = vmatprep.subr.bf16.mxu0 %v5375_v3  ;;  %2294 = vmatprep.subr.bf16.mxu1 %v5378_v4 }
 0x3dd   :  { %2254 = vmatpush1.bf16.msra.mxu0 %v5381_v5  ;;  %2295 = vmatpush1.bf16.msra.mxu1 %v5384_v7 }
 0x3de   :  { %2255 = vmatprep.subr.bf16.mxu0 %v5387_v34  ;;  %2296 = vmatprep.subr.bf16.mxu1 %v5390_v35  ;;  %v6139_v34 = vld [vmem:[#allocation61_spill] sm:$0xff] }
 0x3e1   :  { %2256 = vmatpush1.bf16.msra.mxu0 %v5393_v27  ;;  %2297 = vmatpush1.bf16.msra.mxu1 %v5396_v40 }
 0x3e2   :  { %2257 = vmatprep.subr.bf16.mxu0 %v5399_v33  ;;  %2298 = vmatprep.subr.bf16.mxu1 %v5402_v36 }
 0x3e5   :  { %2258 = vmatpush1.bf16.msra.mxu0 %v5405_v28  ;;  %2299 = vmatpush1.bf16.msra.mxu1 %v5408_v31  ;;  %v6137_v31 = vld [vmem:[#allocation62_spill] sm:$0xff] }
 0x3e6   :  { %2259 = vmatprep.subr.bf16.mxu0 %v5411_v19  ;;  %2300 = vmatprep.subr.bf16.mxu1 %v5414_v8 }
 0x3e9   :  { %2260 = vmatpush1.bf16.msra.mxu0 %v5417_v9  ;;  %2301 = vmatpush1.bf16.msra.mxu1 %v5420_v18  ;;  %v6138_v18 = vld [vmem:[#allocation63_spill] sm:$0xff] }
 0x3ea   :  { %2327 = vmatprep.subr.bf16.mxu0 %v5423_v10  ;;  %2368 = vmatprep.subr.bf16.mxu1 %v5426_v11 }
 0x46c   :  { %v2049_v25 = vpop.f32.mrf.mxu0  ;;  %v2090_v22 = vpop.f32.mrf.mxu1 }
 0x46d   :  { %v2183_v30 = vadd.f32 %v2049_v25, %v6136_v29  ;;  %v2185_v11 = vadd.f32 %v2090_v22, %v6139_v34 }
 0x46e   :  { %v2051_v36 = vpop.f32.mrf.mxu0  ;;  %v2092_v28 = vpop.f32.mrf.mxu1 }
 0x46f   :  { %v3746_v33 = vmul.f32 -1.442695, %v2183_v30  ;;  %v2184_v40 = vadd.f32 %v2051_v36, %v6137_v31  ;;  %v2186_v10 = vadd.f32 %v2092_v28, %v6138_v18  ;;  %v6140_v31 = vld [vmem:[#allocation96_spill] sm:$0xff]  ;;  %v6141_v18 = vld [vmem:[#allocation98_spill] sm:$0xff] }
 0x470   :  { %v2053_v19 = vpop.f32.mrf.mxu0  ;;  %v2094_v27 = vpop.f32.mrf.mxu1 }
 0x471   :  { %4142 = vpow2.f32 %v3746_v33  ;;  %v3747_v8 = vmul.f32 -1.442695, %v2184_v40  ;;  %v3748_v7 = vmul.f32 -1.442695, %v2186_v10 }
 0x472   :  { %v2054_v9 = vpop.f32.mrf.mxu0  ;;  %v2095_v35 = vpop.f32.mrf.mxu1 }
 0x473   :  { %4144 = vpow2.f32 %v3747_v8 }
 0x474   :  { %4146 = vtanh.f32 %v2185_v11 }
 0x475   :  { %4148 = vpow2.f32 %v3748_v7 }
 0x47e   :  { %v4143_v5 = vpop.eup %4142 }
 0x47f   :  { %v2198_v4 = vadd.f32 1.0, %v4143_v5 }
 0x480   :  { %v4145_v25 = vpop.eup %4144 }
 0x481   :  { %4150 = vrcp.f32 %v2198_v4  ;;  %v2204_v29 = vadd.f32 1.0, %v4145_v25  ;;  %v4147_v36 = vpop.eup %4146 }
 0x482   :  { %v4149_v40 = vpop.eup %4148 }
 0x483   :  { %4152 = vrcp.f32 %v2204_v29  ;;  %v2211_v11 = vadd.f32 1.0, %v4149_v40 }
 0x48c   :  { %v2131_v27 = vpop.f32.mrf.mxu0  ;;  %v2172_v33 = vpop.f32.mrf.mxu1 }
 0x48d   :  { %v2191_v35 = vadd.f32 %v2131_v27, %v6140_v31  ;;  %v6143_v31 = vld [vmem:[#allocation97_spill] sm:$0xff] }
 0x48e   :  { %v4151_v19 = vpop.eup %4150  ;;  %v2133_v8 = vpop.f32.mrf.mxu0 }
 0x48f   :  { %v2174_v28 = vpop.f32.mrf.mxu1  ;;  %v2215_v9 = vmul.f32 %v4151_v19, %v4147_v36  ;;  %v3749_v34 = vmul.f32 -1.442695, %v2191_v35  ;;  %v2192_v10 = vadd.f32 %v2133_v8, %v6141_v18  ;;  %v6142_v36 = vld [vmem:[#allocation99_spill] sm:$0xff]  ;;  %v2193_v35 = vadd.f32 %v2172_v33, %v6143_v31  ;;  %v6148_v31 = vld [vmem:[#allocation49_spill] sm:$0xff] }
 0x490   :  { %v4153_v5 = vpop.eup %4152  ;;  %v2135_v22 = vpop.f32.mrf.mxu0  ;;  %v2194_v27 = vadd.f32 %v2174_v28, %v6142_v36  ;;  %v6146_v36 = vld [vmem:[#allocation47_spill] sm:$0xff] }
 0x491   :  { %v2176_v7 = vpop.f32.mrf.mxu1  ;;  %v2214_v4 = vmul.f32 %v4153_v5, %v5436_v20  ;;  %4154 = vpow2.f32 %v3749_v34  ;;  %v3750_v30 = vmul.f32 -1.442695, %v2192_v10 }
 0x492   :  { %v2136_v25 = vpop.f32.mrf.mxu0  ;;  %v3751_v19 = vmul.f32 -1.442695, %v2194_v27  ;;  %v6147_v27 = vld [vmem:[#allocation48_spill] sm:$0xff] }
 0x493   :  { %v2177_v29 = vpop.f32.mrf.mxu1  ;;  %v5580_v3 = vadd.f32 %v2215_v9, %v2214_v4  ;;  %4156 = vpow2.f32 %v3750_v30 }
 0x494   :  { %4158 = vrcp.f32 %v2211_v11  ;;  %v6145_v29 = vld [vmem:[#allocation46_spill] sm:$0xff] }
 0x495   :  { %4160 = vtanh.f32 %v5580_v3 }
 0x496   :  { %4162 = vtanh.f32 %v2193_v35  ;;  %v6149_v35 = vld [vmem:[#allocation50_spill] sm:$0xff] }
 0x497   :  { %4164 = vpow2.f32 %v3751_v19  ;;  %v6150_v19 = vld [vmem:[#allocation52_spill] sm:$0xff] }
 0x49e   :  { %v4155_v40 = vpop.eup %4154 }
 0x49f   :  { %v2222_v8 = vadd.f32 1.0, %v4155_v40 }
 0x4a0   :  { %v4157_v18 = vpop.eup %4156 }
 0x4a1   :  { %v4159_v20 = vpop.eup %4158  ;;  %4166 = vrcp.f32 %v2222_v8  ;;  %v2228_v34 = vadd.f32 1.0, %v4157_v18 }
 0x4a2   :  { %v4161_v10 = vpop.eup %4160 }
 0x4a3   :  { %4168 = vrcp.f32 %v2228_v34  ;;  %v2218_v9 = vmul.f32 %v4161_v10, %v4159_v20  ;;  %v4163_v33 = vpop.eup %4162  ;;  %v6151_v34 = vld [vmem:[#allocation27_spill] sm:$0xff]  ;;  %v6152_v10 = vld [vmem:[#allocation28_spill] sm:$0xff] }
 0x4a4   :  { %v4165_v28 = vpop.eup %4164 }
 0x4a5   :  { %v2243_v5 = vpack.c.bf16 %v2218_v9, %v2218_v9  ;;  %v2235_v4 = vadd.f32 1.0, %v4165_v28  ;;  %v6153_v9 = vld [vmem:[#allocation29_spill] sm:$0xff]  ;;  %v6156_v28 = vld [vmem:[#allocation32_spill] sm:$0xff] }
 0x4a7   :  { %2278 = vmatmul.mubr.bf16.vlgmr.msra.gmra.mxu0 %v2243_v5  ;;  %2319 = vmatmul.mubr.bf16.vlgmr.msra.gmra.mxu1 %v2243_v5  ;;  %4170 = vrcp.f32 %v2235_v4  ;;  %v6154_v5 = vld [vmem:[#allocation30_spill] sm:$0xff]  ;;  %v6160_v4 = vld [vmem:[#allocation36_spill] sm:$0xff] }
 0x4a8   :  { %2328 = vmatpush1.bf16.msra.mxu0 %v5441_v23  ;;  %2369 = vmatpush1.bf16.msra.mxu1 %v5444_v48 }
 0x4a9   :  { %2329 = vmatprep.subr.bf16.mxu0 %v5447_v15  ;;  %2370 = vmatprep.subr.bf16.mxu1 %v5450_v14 }
 0x4aa   :  { %2359 = vmatprep.mubr.bf16.mxu0 %v6000_v1  ;;  %2400 = vmatprep.mubr.bf16.mxu1 %v6000_v1 }
 0x4ac   :  { %2330 = vmatpush1.bf16.msra.mxu0 %v5455_v17  ;;  %2371 = vmatpush1.bf16.msra.mxu1 %v5458_v39 }
 0x4ad   :  { %2331 = vmatprep.subr.bf16.mxu0 %v5461_v24  ;;  %2372 = vmatprep.subr.bf16.mxu1 %v5464_v38 }
 0x4ae   :  { %v4167_v11 = vpop.eup %4166 }
 0x4af   :  { %v2239_v22 = vmul.f32 %v4167_v11, %v4163_v33  ;;  %v6155_v33 = vld [vmem:[#allocation31_spill] sm:$0xff]  ;;  %v6157_v11 = vld [vmem:[#allocation33_spill] sm:$0xff] }
 0x4b0   :  { %v4169_v7 = vpop.eup %4168  ;;  %2332 = vmatpush1.bf16.msra.mxu0 %v5467_v41  ;;  %2373 = vmatpush1.bf16.msra.mxu1 %v5470_v42 }
 0x4b1   :  { %v2238_v30 = vmul.f32 %v4169_v7, %v5480_v46  ;;  %2333 = vmatprep.subr.bf16.mxu0 %v5474_v43  ;;  %2374 = vmatprep.subr.bf16.mxu1 %v5477_v44  ;;  %v6144_v46 = vld [vmem:[#allocation45_spill] sm:$0xff]  ;;  %v6159_v7 = vld [vmem:[#allocation35_spill] sm:$0xff] }
 0x4b3   :  { %v5600_v25 = vadd.f32 %v2239_v22, %v2238_v30  ;;  %v6158_v22 = vld [vmem:[#allocation34_spill] sm:$0xff]  ;;  %v6161_v30 = vld [vmem:[#allocation37_spill] sm:$0xff] }
 0x4b4   :  { %2334 = vmatpush1.bf16.msra.mxu0 %v5482_v47  ;;  %2375 = vmatpush1.bf16.msra.mxu1 %v5485_v49  ;;  %v4171_v40 = vpop.eup %4170 }
 0x4b5   :  { %2335 = vmatprep.subr.bf16.mxu0 %v5488_v45  ;;  %2376 = vmatprep.subr.bf16.mxu1 %v5491_v12  ;;  %4172 = vtanh.f32 %v5600_v25 }
 0x4b8   :  { %2336 = vmatpush1.bf16.msra.mxu0 %v5495_v16  ;;  %2377 = vmatpush1.bf16.msra.mxu1 %v5498_v13 }
 0x4b9   :  { %2337 = vmatprep.subr.bf16.mxu0 %v5501_v6  ;;  %2378 = vmatprep.subr.bf16.mxu1 %v6144_v46 }
 0x4bc   :  { %2338 = vmatpush1.bf16.msra.mxu0 %v6145_v29  ;;  %2379 = vmatpush1.bf16.msra.mxu1 %v6146_v36 }
 0x4bd   :  { %2339 = vmatprep.subr.bf16.mxu0 %v6147_v27  ;;  %2380 = vmatprep.subr.bf16.mxu1 %v6148_v31 }
 0x4c0   :  { %2340 = vmatpush1.bf16.msra.mxu0 %v6149_v35  ;;  %2381 = vmatpush1.bf16.msra.mxu1 %v6150_v19 }
 0x4c1   :  { %2341 = vmatprep.subr.bf16.mxu0 %v5525_v37  ;;  %2382 = vmatprep.subr.bf16.mxu1 %v5528_v32 }
 0x4c2   :  { %v4173_v8 = vpop.eup %4172 }
 0x4c3   :  { %v2242_v18 = vmul.f32 %v4173_v8, %v4171_v40  ;;  %v6162_v40 = vld [vmem:[#allocation38_spill] sm:$0xff]  ;;  %v6163_v8 = vld [vmem:[#allocation39_spill] sm:$0xff] }
 0x4c4   :  { %2342 = vmatpush1.bf16.msra.mxu0 %v5531_v26  ;;  %2383 = vmatpush1.bf16.msra.mxu1 %v5534_v21 }
 0x4c5   :  { %v2244_v20 = vpack.c.bf16 %v2242_v18, %v2242_v18  ;;  %2475 = vmatprep.subr.bf16.mxu0 %v5325_v50  ;;  %2516 = vmatprep.subr.bf16.mxu1 %v5328_v51  ;;  %v6164_v18 = vld [vmem:[#allocation40_spill] sm:$0xff] }
 0x4c7   :  { %2360 = vmatmul.mubr.bf16.vlgmr.msra.gmra.mxu0 %v2244_v20  ;;  %2401 = vmatmul.mubr.bf16.vlgmr.msra.gmra.mxu1 %v2244_v20  ;;  %v6165_v20 = vld [vmem:[#allocation41_spill] sm:$0xff] }
 0x4c8   :  { %2476 = vmatpush1.bf16.msra.mxu0 %v5331_v52  ;;  %2517 = vmatpush1.bf16.msra.mxu1 %v5334_v53 }
 0x4c9   :  { %2477 = vmatprep.subr.bf16.mxu0 %v5337_v0  ;;  %2518 = vmatprep.subr.bf16.mxu1 %v5340_v54 }
 0x4ca   :  { %2507 = vmatprep.mubr.bf16.mxu0 %v6000_v1  ;;  %2548 = vmatprep.mubr.bf16.mxu1 %v6000_v1 }
 0x4cc   :  { %2478 = vmatpush1.bf16.msra.mxu0 %v5345_v55  ;;  %2519 = vmatpush1.bf16.msra.mxu1 %v5348_v56 }
 0x4cd   :  { %2479 = vmatprep.subr.bf16.mxu0 %v5351_v57  ;;  %2520 = vmatprep.subr.bf16.mxu1 %v5354_v58 }
 0x4d0   :  { %2480 = vmatpush1.bf16.msra.mxu0 %v5357_v59  ;;  %2521 = vmatpush1.bf16.msra.mxu1 %v5360_v60 }
 0x4d1   :  { %2481 = vmatprep.subr.bf16.mxu0 %v5363_v61  ;;  %2522 = vmatprep.subr.bf16.mxu1 %v5366_v62  ;;  %v6172_v62 = vld [vmem:[#allocation65_spill] sm:$0xff] }
 0x4d4   :  { %2482 = vmatpush1.bf16.msra.mxu0 %v5369_v63  ;;  %2523 = vmatpush1.bf16.msra.mxu1 %v5372_v2 }
 0x4d5   :  { %2483 = vmatprep.subr.bf16.mxu0 %v6151_v34  ;;  %2524 = vmatprep.subr.bf16.mxu1 %v6152_v10 }
 0x4d8   :  { %2484 = vmatpush1.bf16.msra.mxu0 %v6153_v9  ;;  %2525 = vmatpush1.bf16.msra.mxu1 %v6154_v5  ;;  %v6169_v5 = vld [vmem:[#allocation64_spill] sm:$0xff] }
 0x4d9   :  { %2485 = vmatprep.subr.bf16.mxu0 %v6155_v33  ;;  %2526 = vmatprep.subr.bf16.mxu1 %v6156_v28  ;;  %v6166_v33 = vld [vmem:[#allocation42_spill] sm:$0xff]  ;;  %v6167_v28 = vld [vmem:[#allocation43_spill] sm:$0xff] }
 0x4dc   :  { %2486 = vmatpush1.bf16.msra.mxu0 %v6157_v11  ;;  %2527 = vmatpush1.bf16.msra.mxu1 %v6158_v22  ;;  %v6168_v11 = vld [vmem:[#allocation44_spill] sm:$0xff] }
 0x4dd   :  { %2487 = vmatprep.subr.bf16.mxu0 %v6159_v7  ;;  %2528 = vmatprep.subr.bf16.mxu1 %v6160_v4 }
 0x4e0   :  { %2488 = vmatpush1.bf16.msra.mxu0 %v6161_v30  ;;  %2529 = vmatpush1.bf16.msra.mxu1 %v6162_v40  ;;  %v6170_v40 = vld [vmem:[#allocation66_spill] sm:$0xff] }
 0x4e1   :  { %2489 = vmatprep.subr.bf16.mxu0 %v6163_v8  ;;  %2530 = vmatprep.subr.bf16.mxu1 %v6164_v18 }
 0x4e4   :  { %2490 = vmatpush1.bf16.msra.mxu0 %v6165_v20  ;;  %2531 = vmatpush1.bf16.msra.mxu1 %v6166_v33  ;;  %v6171_v33 = vld [vmem:[#allocation67_spill] sm:$0xff] }
 0x4e5   :  { %2557 = vmatprep.subr.bf16.mxu0 %v6167_v28  ;;  %2598 = vmatprep.subr.bf16.mxu1 %v6168_v11 }
 0x567   :  { %v2279_v22 = vpop.f32.mrf.mxu0  ;;  %v2320_v7 = vpop.f32.mrf.mxu1 }
 0x568   :  { %v2413_v4 = vadd.f32 %v2279_v22, %v6169_v5  ;;  %v2415_v11 = vadd.f32 %v2320_v7, %v6172_v62 }
 0x569   :  { %v2281_v9 = vpop.f32.mrf.mxu0  ;;  %v2322_v30 = vpop.f32.mrf.mxu1 }
 0x56a   :  { %v3752_v10 = vmul.f32 -1.442695, %v2413_v4  ;;  %v2414_v34 = vadd.f32 %v2281_v9, %v6170_v40  ;;  %v2416_v28 = vadd.f32 %v2322_v30, %v6171_v33  ;;  %v6173_v4 = vld [vmem:[#allocation92_spill] sm:$0xff] }
 0x56b   :  { %v2283_v8 = vpop.f32.mrf.mxu0  ;;  %v2324_v2 = vpop.f32.mrf.mxu1 }
 0x56c   :  { %4174 = vpow2.f32 %v3752_v10  ;;  %v3753_v18 = vmul.f32 -1.442695, %v2414_v34  ;;  %v3754_v61 = vmul.f32 -1.442695, %v2416_v28  ;;  %v6174_v28 = vld [vmem:[#allocation94_spill] sm:$0xff] }
 0x56d   :  { %v2284_v20 = vpop.f32.mrf.mxu0  ;;  %v2325_v63 = vpop.f32.mrf.mxu1 }
 0x56e   :  { %4176 = vpow2.f32 %v3753_v18 }
 0x56f   :  { %4178 = vtanh.f32 %v2415_v11 }
 0x570   :  { %4180 = vpow2.f32 %v3754_v61 }
 0x579   :  { %v4175_v60 = vpop.eup %4174 }
 0x57a   :  { %v2428_v59 = vadd.f32 1.0, %v4175_v60 }
 0x57b   :  { %v4177_v5 = vpop.eup %4176 }
 0x57c   :  { %4182 = vrcp.f32 %v2428_v59  ;;  %v2434_v22 = vadd.f32 1.0, %v4177_v5  ;;  %v4179_v9 = vpop.eup %4178 }
 0x57d   :  { %v4181_v34 = vpop.eup %4180 }
 0x57e   :  { %4184 = vrcp.f32 %v2434_v22  ;;  %v2441_v11 = vadd.f32 1.0, %v4181_v34 }
 0x587   :  { %v2361_v2 = vpop.f32.mrf.mxu0  ;;  %v2402_v10 = vpop.f32.mrf.mxu1 }
 0x588   :  { %v2421_v63 = vadd.f32 %v2361_v2, %v6173_v4  ;;  %v6176_v4 = vld [vmem:[#allocation93_spill] sm:$0xff] }
 0x589   :  { %v4183_v40 = vpop.eup %4182  ;;  %v2363_v8 = vpop.f32.mrf.mxu0 }
 0x58a   :  { %v2404_v33 = vpop.f32.mrf.mxu1  ;;  %v2445_v30 = vmul.f32 %v4183_v40, %v4179_v9  ;;  %v3755_v62 = vmul.f32 -1.442695, %v2421_v63  ;;  %v2422_v7 = vadd.f32 %v2363_v8, %v6174_v28  ;;  %v6175_v9 = vld [vmem:[#allocation95_spill] sm:$0xff]  ;;  %v2423_v63 = vadd.f32 %v2402_v10, %v6176_v4  ;;  %v6183_v4 = vld [vmem:[#allocation26_spill] sm:$0xff] }
 0x58b   :  { %v4185_v60 = vpop.eup %4184  ;;  %v2365_v18 = vpop.f32.mrf.mxu0  ;;  %v2424_v2 = vadd.f32 %v2404_v33, %v6175_v9 }
 0x58c   :  { %v2406_v61 = vpop.f32.mrf.mxu1  ;;  %v2444_v59 = vmul.f32 %v4185_v60, %v5580_v3  ;;  %4186 = vpow2.f32 %v3755_v62  ;;  %v3756_v20 = vmul.f32 -1.442695, %v2422_v7 }
 0x58d   :  { %v2366_v5 = vpop.f32.mrf.mxu0  ;;  %v3757_v40 = vmul.f32 -1.442695, %v2424_v2 }
 0x58e   :  { %v2407_v22 = vpop.f32.mrf.mxu1  ;;  %v5664_v58 = vadd.f32 %v2445_v30, %v2444_v59  ;;  %4188 = vpow2.f32 %v3756_v20 }
 0x58f   :  { %4190 = vrcp.f32 %v2441_v11 }
 0x590   :  { %4192 = vtanh.f32 %v5664_v58 }
 0x591   :  { %4194 = vtanh.f32 %v2423_v63  ;;  %v6184_v63 = vld [vmem:[#allocation27_spill] sm:$0xff] }
 0x592   :  { %4196 = vpow2.f32 %v3757_v40  ;;  %v6188_v40 = vld [vmem:[#allocation31_spill] sm:$0xff] }
 0x599   :  { %v4187_v34 = vpop.eup %4186 }
 0x59a   :  { %v2452_v8 = vadd.f32 1.0, %v4187_v34  ;;  %v6189_v34 = vld [vmem:[#allocation32_spill] sm:$0xff] }
 0x59b   :  { %v4189_v28 = vpop.eup %4188 }
 0x59c   :  { %v4191_v3 = vpop.eup %4190  ;;  %4198 = vrcp.f32 %v2452_v8  ;;  %v2458_v62 = vadd.f32 1.0, %v4189_v28  ;;  %v6190_v8 = vld [vmem:[#allocation33_spill] sm:$0xff]  ;;  %v6191_v28 = vld [vmem:[#allocation34_spill] sm:$0xff] }
 0x59d   :  { %v4193_v7 = vpop.eup %4192 }
 0x59e   :  { %4200 = vrcp.f32 %v2458_v62  ;;  %v2448_v30 = vmul.f32 %v4193_v7, %v4191_v3  ;;  %v4195_v10 = vpop.eup %4194  ;;  %v6192_v3 = vld [vmem:[#allocation35_spill] sm:$0xff]  ;;  %v6193_v62 = vld [vmem:[#allocation36_spill] sm:$0xff]  ;;  %v6194_v7 = vld [vmem:[#allocation37_spill] sm:$0xff] }
 0x59f   :  { %v4197_v33 = vpop.eup %4196 }
 0x5a0   :  { %v2473_v60 = vpack.c.bf16 %v2448_v30, %v2448_v30  ;;  %v2465_v59 = vadd.f32 1.0, %v4197_v33  ;;  %v6195_v30 = vld [vmem:[#allocation38_spill] sm:$0xff]  ;;  %v6198_v33 = vld [vmem:[#allocation41_spill] sm:$0xff] }
 0x5a2   :  { %2508 = vmatmul.mubr.bf16.vlgmr.msra.gmra.mxu0 %v2473_v60  ;;  %2549 = vmatmul.mubr.bf16.vlgmr.msra.gmra.mxu1 %v2473_v60  ;;  %4202 = vrcp.f32 %v2465_v59  ;;  %v6196_v60 = vld [vmem:[#allocation39_spill] sm:$0xff] }
 0x5a3   :  { %2558 = vmatpush1.bf16.msra.mxu0 %v5441_v23  ;;  %2599 = vmatpush1.bf16.msra.mxu1 %v5444_v48 }
 0x5a4   :  { %2559 = vmatprep.subr.bf16.mxu0 %v5447_v15  ;;  %2600 = vmatprep.subr.bf16.mxu1 %v5450_v14 }
 0x5a5   :  { %2589 = vmatprep.mubr.bf16.mxu0 %v6000_v1  ;;  %2630 = vmatprep.mubr.bf16.mxu1 %v6000_v1 }
 0x5a7   :  { %2560 = vmatpush1.bf16.msra.mxu0 %v5455_v17  ;;  %2601 = vmatpush1.bf16.msra.mxu1 %v5458_v39 }
 0x5a8   :  { %2561 = vmatprep.subr.bf16.mxu0 %v5461_v24  ;;  %2602 = vmatprep.subr.bf16.mxu1 %v5464_v38 }
 0x5a9   :  { %v4199_v11 = vpop.eup %4198 }
 0x5aa   :  { %v2469_v18 = vmul.f32 %v4199_v11, %v4195_v10  ;;  %v6197_v10 = vld [vmem:[#allocation40_spill] sm:$0xff]  ;;  %v6199_v11 = vld [vmem:[#allocation42_spill] sm:$0xff] }
 0x5ab   :  { %v4201_v61 = vpop.eup %4200  ;;  %2562 = vmatpush1.bf16.msra.mxu0 %v5467_v41  ;;  %2603 = vmatpush1.bf16.msra.mxu1 %v5470_v42 }
 0x5ac   :  { %v2468_v20 = vmul.f32 %v4201_v61, %v5600_v25  ;;  %2563 = vmatprep.subr.bf16.mxu0 %v5474_v43  ;;  %2604 = vmatprep.subr.bf16.mxu1 %v5477_v44  ;;  %v6201_v61 = vld [vmem:[#allocation44_spill] sm:$0xff] }
 0x5ae   :  { %v5684_v5 = vadd.f32 %v2469_v18, %v2468_v20  ;;  %v6200_v18 = vld [vmem:[#allocation43_spill] sm:$0xff] }
 0x5af   :  { %2564 = vmatpush1.bf16.msra.mxu0 %v5482_v47  ;;  %2605 = vmatpush1.bf16.msra.mxu1 %v5485_v49  ;;  %v4203_v25 = vpop.eup %4202 }
 0x5b0   :  { %2565 = vmatprep.subr.bf16.mxu0 %v5488_v45  ;;  %2606 = vmatprep.subr.bf16.mxu1 %v5491_v12  ;;  %4204 = vtanh.f32 %v5684_v5 }
 0x5b3   :  { %2566 = vmatpush1.bf16.msra.mxu0 %v5495_v16  ;;  %2607 = vmatpush1.bf16.msra.mxu1 %v5498_v13 }
 0x5b4   :  { %2567 = vmatprep.subr.bf16.mxu0 %v5501_v6  ;;  %2608 = vmatprep.subr.bf16.mxu1 %v6144_v46 }
 0x5b7   :  { %2568 = vmatpush1.bf16.msra.mxu0 %v6145_v29  ;;  %2609 = vmatpush1.bf16.msra.mxu1 %v6146_v36 }
 0x5b8   :  { %2569 = vmatprep.subr.bf16.mxu0 %v6147_v27  ;;  %2610 = vmatprep.subr.bf16.mxu1 %v6148_v31 }
 0x5bb   :  { %2570 = vmatpush1.bf16.msra.mxu0 %v6149_v35  ;;  %2611 = vmatpush1.bf16.msra.mxu1 %v6150_v19 }
 0x5bc   :  { %2571 = vmatprep.subr.bf16.mxu0 %v5525_v37  ;;  %2612 = vmatprep.subr.bf16.mxu1 %v5528_v32 }
 0x5bd   :  { %v4205_v22 = vpop.eup %4204 }
 0x5be   :  { %v2472_v9 = vmul.f32 %v4205_v22, %v4203_v25  ;;  %v6202_v25 = vld [vmem:[#allocation68_spill] sm:$0xff] }
 0x5bf   :  { %2572 = vmatpush1.bf16.msra.mxu0 %v5531_v26  ;;  %2613 = vmatpush1.bf16.msra.mxu1 %v5534_v21 }
 0x5c0   :  { %v2474_v2 = vpack.c.bf16 %v2472_v9, %v2472_v9  ;;  %2705 = vmatprep.subr.bf16.mxu0 %v5325_v50  ;;  %2746 = vmatprep.subr.bf16.mxu1 %v5328_v51  ;;  %v6177_v50 = vld [vmem:[#allocation51_spill] sm:$0xff]  ;;  %v6178_v51 = vld [vmem:[#allocation21_spill] sm:$0xff] }
 0x5c2   :  { %2590 = vmatmul.mubr.bf16.vlgmr.msra.gmra.mxu0 %v2474_v2  ;;  %2631 = vmatmul.mubr.bf16.vlgmr.msra.gmra.mxu1 %v2474_v2 }
 0x5c3   :  { %2706 = vmatpush1.bf16.msra.mxu0 %v5331_v52  ;;  %2747 = vmatpush1.bf16.msra.mxu1 %v5334_v53  ;;  %v6179_v52 = vld [vmem:[#allocation22_spill] sm:$0xff]  ;;  %v6180_v53 = vld [vmem:[#allocation23_spill] sm:$0xff] }
 0x5c4   :  { %2707 = vmatprep.subr.bf16.mxu0 %v5337_v0  ;;  %2748 = vmatprep.subr.bf16.mxu1 %v5340_v54  ;;  %v6181_v0 = vld [vmem:[#allocation24_spill] sm:$0xff]  ;;  %v6182_v54 = vld [vmem:[#allocation25_spill] sm:$0xff] }
 0x5c5   :  { %2737 = vmatprep.mubr.bf16.mxu0 %v6000_v1  ;;  %2778 = vmatprep.mubr.bf16.mxu1 %v6000_v1 }
 0x5c7   :  { %2708 = vmatpush1.bf16.msra.mxu0 %v5345_v55  ;;  %2749 = vmatpush1.bf16.msra.mxu1 %v5348_v56  ;;  %v6185_v55 = vld [vmem:[#allocation28_spill] sm:$0xff]  ;;  %v6186_v56 = vld [vmem:[#allocation29_spill] sm:$0xff] }
 0x5c8   :  { %2709 = vmatprep.subr.bf16.mxu0 %v5351_v57  ;;  %2750 = vmatprep.subr.bf16.mxu1 %v6177_v50  ;;  %v6187_v57 = vld [vmem:[#allocation30_spill] sm:$0xff] }
 0x5cb   :  { %2710 = vmatpush1.bf16.msra.mxu0 %v6178_v51  ;;  %2751 = vmatpush1.bf16.msra.mxu1 %v6179_v52  ;;  %v6203_v51 = vld [vmem:[#allocation70_spill] sm:$0xff] }
 0x5cc   :  { %2711 = vmatprep.subr.bf16.mxu0 %v6180_v53  ;;  %2752 = vmatprep.subr.bf16.mxu1 %v6181_v0 }
 0x5cf   :  { %2712 = vmatpush1.bf16.msra.mxu0 %v6182_v54  ;;  %2753 = vmatpush1.bf16.msra.mxu1 %v6183_v4 }
 0x5d0   :  { %2713 = vmatprep.subr.bf16.mxu0 %v6184_v63  ;;  %2754 = vmatprep.subr.bf16.mxu1 %v6185_v55  ;;  %v6204_v55 = vld [vmem:[#allocation71_spill] sm:$0xff] }
 0x5d3   :  { %2714 = vmatpush1.bf16.msra.mxu0 %v6186_v56  ;;  %2755 = vmatpush1.bf16.msra.mxu1 %v6187_v57  ;;  %v6205_v57 = vld [vmem:[#allocation69_spill] sm:$0xff] }
 0x5d4   :  { %2715 = vmatprep.subr.bf16.mxu0 %v6188_v40  ;;  %2756 = vmatprep.subr.bf16.mxu1 %v6189_v34 }
 0x5d7   :  { %2716 = vmatpush1.bf16.msra.mxu0 %v6190_v8  ;;  %2757 = vmatpush1.bf16.msra.mxu1 %v6191_v28 }
 0x5d8   :  { %2717 = vmatprep.subr.bf16.mxu0 %v6192_v3  ;;  %2758 = vmatprep.subr.bf16.mxu1 %v6193_v62 }
 0x5db   :  { %2718 = vmatpush1.bf16.msra.mxu0 %v6194_v7  ;;  %2759 = vmatpush1.bf16.msra.mxu1 %v6195_v30 }
 0x5dc   :  { %2719 = vmatprep.subr.bf16.mxu0 %v6196_v60  ;;  %2760 = vmatprep.subr.bf16.mxu1 %v6197_v10 }
 0x5df   :  { %2720 = vmatpush1.bf16.msra.mxu0 %v6198_v33  ;;  %2761 = vmatpush1.bf16.msra.mxu1 %v6199_v11  ;;  %v6206_v33 = vld [vmem:[#allocation88_spill] sm:$0xff] }
 0x5e0   :  { %2787 = vmatprep.subr.bf16.mxu0 %v6200_v18  ;;  %2828 = vmatprep.subr.bf16.mxu1 %v6201_v61 }
 0x662   :  { %v2509_v59 = vpop.f32.mrf.mxu0  ;;  %v2550_v20 = vpop.f32.mrf.mxu1 }
 0x663   :  { %v2643_v22 = vadd.f32 %v2509_v59, %v6202_v25  ;;  %v2645_v40 = vadd.f32 %v2550_v20, %v6205_v57  ;;  %v6209_v57 = vld [vmem:[#allocation89_spill] sm:$0xff] }
 0x664   :  { %v2511_v9 = vpop.f32.mrf.mxu0  ;;  %v2552_v2 = vpop.f32.mrf.mxu1 }
 0x665   :  { %v3758_v50 = vmul.f32 -1.442695, %v2643_v22  ;;  %v2644_v52 = vadd.f32 %v2511_v9, %v6203_v51  ;;  %v2646_v56 = vadd.f32 %v2552_v2, %v6204_v55  ;;  %v6207_v22 = vld [vmem:[#allocation90_spill] sm:$0xff]  ;;  %v6208_v55 = vld [vmem:[#allocation91_spill] sm:$0xff] }
 0x666   :  { %v2513_v53 = vpop.f32.mrf.mxu0  ;;  %v2554_v0 = vpop.f32.mrf.mxu1 }
 0x667   :  { %4206 = vpow2.f32 %v3758_v50  ;;  %v3759_v54 = vmul.f32 -1.442695, %v2644_v52  ;;  %v3760_v34 = vmul.f32 -1.442695, %v2646_v56 }
 0x668   :  { %v2514_v4 = vpop.f32.mrf.mxu0  ;;  %v2555_v63 = vpop.f32.mrf.mxu1 }
 0x669   :  { %4208 = vpow2.f32 %v3759_v54 }
 0x66a   :  { %4210 = vtanh.f32 %v2645_v40 }
 0x66b   :  { %4212 = vpow2.f32 %v3760_v34 }
 0x674   :  { %v4207_v8 = vpop.eup %4206 }
 0x675   :  { %v2658_v28 = vadd.f32 1.0, %v4207_v8 }
 0x676   :  { %v4209_v3 = vpop.eup %4208 }
 0x677   :  { %4214 = vrcp.f32 %v2658_v28  ;;  %v2664_v62 = vadd.f32 1.0, %v4209_v3  ;;  %v4211_v7 = vpop.eup %4210 }
 0x678   :  { %v4213_v10 = vpop.eup %4212 }
 0x679   :  { %4216 = vrcp.f32 %v2664_v62  ;;  %v2671_v50 = vadd.f32 1.0, %v4213_v10 }
 0x682   :  { %v2591_v30 = vpop.f32.mrf.mxu0  ;;  %v2632_v60 = vpop.f32.mrf.mxu1 }
 0x683   :  { %v2651_v11 = vadd.f32 %v2591_v30, %v6206_v33  ;;  %v2653_v40 = vadd.f32 %v2632_v60, %v6209_v57 }
 0x684   :  { %v4215_v18 = vpop.eup %4214  ;;  %v2593_v61 = vpop.f32.mrf.mxu0 }
 0x685   :  { %v2634_v59 = vpop.f32.mrf.mxu1  ;;  %v2675_v25 = vmul.f32 %v4215_v18, %v4211_v7  ;;  %v3761_v20 = vmul.f32 -1.442695, %v2651_v11  ;;  %v2652_v9 = vadd.f32 %v2593_v61, %v6207_v22  ;;  %v4388_v18 = vld [vmem:[#allocation8 + $0x40] ss:$16 sps:$4 sm:$0xff]   ;;  %v4389_v61 = vld [vmem:[#allocation8 + $0x48] ss:$16 sps:$4 sm:$0xff]  }
 0x686   :  { %v4217_v2 = vpop.eup %4216  ;;  %v2595_v51 = vpop.f32.mrf.mxu0  ;;  %v2654_v56 = vadd.f32 %v2634_v59, %v6208_v55  ;;  %v4390_v59 = vld [vmem:[#allocation8 + $0x24] ss:$16 sps:$4 sm:$0xff]   ;;  %v4393_v22 = vld [vmem:[#allocation8 + $0x28] ss:$16 sps:$4 sm:$0xff]  }
 0x687   :  { %v2636_v52 = vpop.f32.mrf.mxu1  ;;  %v2674_v53 = vmul.f32 %v4217_v2, %v5664_v58  ;;  %4218 = vpow2.f32 %v3761_v20  ;;  %v3762_v0 = vmul.f32 -1.442695, %v2652_v9  ;;  %v4392_v20 = vld [vmem:[#allocation8 + $0x20] ss:$16 sps:$4 sm:$0xff]   ;;  %v4394_v9 = vld [vmem:[#allocation8 + $0x4] ss:$16 sps:$4 sm:$0xff]  }
 0x688   :  { %v2596_v54 = vpop.f32.mrf.mxu0  ;;  %v3763_v34 = vmul.f32 -1.442695, %v2654_v56  ;;  %v4395_v2 = vld [vmem:[#allocation8 + $0xc] ss:$16 sps:$4 sm:$0xff]   ;;  %v4397_v51 = vld [vmem:[#allocation8 + $0x8] ss:$16 sps:$4 sm:$0xff]  }
 0x689   :  { %v2637_v4 = vpop.f32.mrf.mxu1  ;;  %v5748_v63 = vadd.f32 %v2675_v25, %v2674_v53  ;;  %4220 = vpow2.f32 %v3762_v0  ;;  %v4391_v25 = vld [vmem:[#allocation8 + $0x2c] ss:$16 sps:$4 sm:$0xff]   ;;  %v4398_v52 = vld [vmem:[#allocation9 + $0xe4] ss:$16 sps:$4 sm:$0xff]  }
 0x68a   :  { %4222 = vrcp.f32 %v2671_v50  ;;  %v4396_v50 = vld [vmem:[#allocation8] ss:$16 sps:$4 sm:$0xff]   ;;  %v4399_v53 = vld [vmem:[#allocation9 + $0xec] ss:$16 sps:$4 sm:$0xff]  }
 0x68b   :  { %4224 = vtanh.f32 %v5748_v63  ;;  %v6210_v4 = vld [vmem:[#allocation72_spill] sm:$0xff] }
 0x68c   :  { %4226 = vtanh.f32 %v2653_v40 }
 0x68d   :  { %4228 = vpow2.f32 %v3763_v34  ;;  %v6211_v34 = vld [vmem:[#allocation74_spill] sm:$0xff] }
 0x694   :  { %v4219_v8 = vpop.eup %4218 }
 0x695   :  { %v2682_v28 = vadd.f32 1.0, %v4219_v8 }
 0x696   :  { %v4221_v3 = vpop.eup %4220 }
 0x697   :  { %v4223_v58 = vpop.eup %4222  ;;  %4230 = vrcp.f32 %v2682_v28  ;;  %v2688_v62 = vadd.f32 1.0, %v4221_v3 }
 0x698   :  { %v4225_v7 = vpop.eup %4224 }
 0x699   :  { %4232 = vrcp.f32 %v2688_v62  ;;  %v2678_v30 = vmul.f32 %v4225_v7, %v4223_v58  ;;  %v4227_v60 = vpop.eup %4226 }
 0x69a   :  { %v4229_v33 = vpop.eup %4228 }
 0x69b   :  { %v2703_v10 = vpack.c.bf16 %v2678_v30, %v2678_v30  ;;  %v6212_v30 = vld [vmem:[#allocation75_spill] sm:$0xff] }
 0x69d   :  { %2738 = vmatmul.mubr.bf16.vlgmr.msra.gmra.mxu0 %v2703_v10  ;;  %2779 = vmatmul.mubr.bf16.vlgmr.msra.gmra.mxu1 %v2703_v10 }
 0x69e   :  { %2788 = vmatpush1.bf16.msra.mxu0 %v5441_v23  ;;  %2829 = vmatpush1.bf16.msra.mxu1 %v5444_v48 }
 0x69f   :  { %2789 = vmatprep.subr.bf16.mxu0 %v5447_v15  ;;  %2830 = vmatprep.subr.bf16.mxu1 %v5450_v14  ;;  %v2695_v15 = vadd.f32 1.0, %v4229_v33 }
 0x6a0   :  { %2819 = vmatprep.mubr.bf16.mxu0 %v6000_v1  ;;  %2860 = vmatprep.mubr.bf16.mxu1 %v6000_v1 }
 0x6a1   :  { %4234 = vrcp.f32 %v2695_v15 }
 0x6a2   :  { %2790 = vmatpush1.bf16.msra.mxu0 %v5455_v17  ;;  %2831 = vmatpush1.bf16.msra.mxu1 %v5458_v39 }
 0x6a3   :  { %2791 = vmatprep.subr.bf16.mxu0 %v5461_v24  ;;  %2832 = vmatprep.subr.bf16.mxu1 %v5464_v38 }
 0x6a4   :  { %v4231_v23 = vpop.eup %4230 }
 0x6a5   :  { %v2699_v48 = vmul.f32 %v4231_v23, %v4227_v60  ;;  %v6213_v60 = vld [vmem:[#allocation73_spill] sm:$0xff] }
 0x6a6   :  { %v4233_v11 = vpop.eup %4232  ;;  %2792 = vmatpush1.bf16.msra.mxu0 %v5467_v41  ;;  %2833 = vmatpush1.bf16.msra.mxu1 %v5470_v42  ;;  %v4366_v42 = vld [vmem:[#allocation8 + $0xe4] ss:$16 sps:$4 sm:$0xff]  }
 0x6a7   :  { %v2698_v14 = vmul.f32 %v4233_v11, %v5684_v5  ;;  %2793 = vmatprep.subr.bf16.mxu0 %v5474_v43  ;;  %2834 = vmatprep.subr.bf16.mxu1 %v5477_v44  ;;  %v4367_v43 = vld [vmem:[#allocation8 + $0xec] ss:$16 sps:$4 sm:$0xff]   ;;  %v4368_v44 = vld [vmem:[#allocation8 + $0xe0] ss:$16 sps:$4 sm:$0xff]  }
 0x6a8   :  { %v4387_v5 = vld [vmem:[#allocation8 + $0x4c] ss:$16 sps:$4 sm:$0xff]  }
 0x6a9   :  { %v5768_v17 = vadd.f32 %v2699_v48, %v2698_v14 }
 0x6aa   :  { %2794 = vmatpush1.bf16.msra.mxu0 %v5482_v47  ;;  %2835 = vmatpush1.bf16.msra.mxu1 %v5485_v49  ;;  %v4369_v47 = vld [vmem:[#allocation8 + $0xe8] ss:$16 sps:$4 sm:$0xff]   ;;  %v4370_v49 = vld [vmem:[#allocation8 + $0xc4] ss:$16 sps:$4 sm:$0xff]  }
 0x6ab   :  { %2795 = vmatprep.subr.bf16.mxu0 %v5488_v45  ;;  %2836 = vmatprep.subr.bf16.mxu1 %v5491_v12  ;;  %4236 = vtanh.f32 %v5768_v17  ;;  %v4371_v45 = vld [vmem:[#allocation8 + $0xcc] ss:$16 sps:$4 sm:$0xff]   ;;  %v4372_v12 = vld [vmem:[#allocation8 + $0xc0] ss:$16 sps:$4 sm:$0xff]  }
 0x6ae   :  { %2796 = vmatpush1.bf16.msra.mxu0 %v5495_v16  ;;  %2837 = vmatpush1.bf16.msra.mxu1 %v5498_v13  ;;  %v4235_v39 = vpop.eup %4234  ;;  %v4373_v16 = vld [vmem:[#allocation8 + $0xc8] ss:$16 sps:$4 sm:$0xff]   ;;  %v4374_v13 = vld [vmem:[#allocation8 + $0xa4] ss:$16 sps:$4 sm:$0xff]  }
 0x6af   :  { %2797 = vmatprep.subr.bf16.mxu0 %v5501_v6  ;;  %2838 = vmatprep.subr.bf16.mxu1 %v6144_v46  ;;  %v4375_v6 = vld [vmem:[#allocation8 + $0xac] ss:$16 sps:$4 sm:$0xff]   ;;  %v4380_v46 = vld [vmem:[#allocation8 + $0x80] ss:$16 sps:$4 sm:$0xff]  }
 0x6b2   :  { %2798 = vmatpush1.bf16.msra.mxu0 %v6145_v29  ;;  %2839 = vmatpush1.bf16.msra.mxu1 %v6146_v36  ;;  %v4381_v29 = vld [vmem:[#allocation8 + $0x88] ss:$16 sps:$4 sm:$0xff]   ;;  %v4382_v36 = vld [vmem:[#allocation8 + $0x64] ss:$16 sps:$4 sm:$0xff]  }
 0x6b3   :  { %2799 = vmatprep.subr.bf16.mxu0 %v6147_v27  ;;  %2840 = vmatprep.subr.bf16.mxu1 %v6148_v31  ;;  %v4383_v27 = vld [vmem:[#allocation8 + $0x6c] ss:$16 sps:$4 sm:$0xff]   ;;  %v4384_v31 = vld [vmem:[#allocation8 + $0x60] ss:$16 sps:$4 sm:$0xff]  }
 0x6b6   :  { %2800 = vmatpush1.bf16.msra.mxu0 %v6149_v35  ;;  %2841 = vmatpush1.bf16.msra.mxu1 %v6150_v19  ;;  %v4385_v35 = vld [vmem:[#allocation8 + $0x68] ss:$16 sps:$4 sm:$0xff]   ;;  %v4386_v19 = vld [vmem:[#allocation8 + $0x44] ss:$16 sps:$4 sm:$0xff]  }
 0x6b7   :  { %2801 = vmatprep.subr.bf16.mxu0 %v5525_v37  ;;  %2842 = vmatprep.subr.bf16.mxu1 %v5528_v32  ;;  %v4376_v37 = vld [vmem:[#allocation8 + $0xa0] ss:$16 sps:$4 sm:$0xff]   ;;  %v4377_v32 = vld [vmem:[#allocation8 + $0xa8] ss:$16 sps:$4 sm:$0xff]  }
 0x6b8   :  { %v4237_v24 = vpop.eup %4236 }
 0x6b9   :  { %v2702_v38 = vmul.f32 %v4237_v24, %v4235_v39 }
 0x6ba   :  { %2802 = vmatpush1.bf16.msra.mxu0 %v5531_v26  ;;  %2843 = vmatpush1.bf16.msra.mxu1 %v5534_v21  ;;  %v4378_v26 = vld [vmem:[#allocation8 + $0x84] ss:$16 sps:$4 sm:$0xff]   ;;  %v4379_v21 = vld [vmem:[#allocation8 + $0x8c] ss:$16 sps:$4 sm:$0xff]  }
 0x6bb   :  { %v2704_v41 = vpack.c.bf16 %v2702_v38, %v2702_v38  ;;  %2935 = vmatprep.subr.bf16.mxu0 %v4366_v42  ;;  %2976 = vmatprep.subr.bf16.mxu1 %v4367_v43  ;;  %v6214_v42 = vld [vmem:[#allocation84_spill] sm:$0xff] }
 0x6bd   :  { %2820 = vmatmul.mubr.bf16.vlgmr.msra.gmra.mxu0 %v2704_v41  ;;  %2861 = vmatmul.mubr.bf16.vlgmr.msra.gmra.mxu1 %v2704_v41 }
 0x6be   :  { %2936 = vmatpush1.bf16.msra.mxu0 %v4368_v44  ;;  %2977 = vmatpush1.bf16.msra.mxu1 %v4369_v47 }
 0x6bf   :  { %2937 = vmatprep.subr.bf16.mxu0 %v4370_v49  ;;  %2978 = vmatprep.subr.bf16.mxu1 %v4371_v45 }
 0x6c0   :  { %2967 = vmatprep.mubr.bf16.mxu0 %v6000_v1  ;;  %3008 = vmatprep.mubr.bf16.mxu1 %v6000_v1 }
 0x6c2   :  { %2938 = vmatpush1.bf16.msra.mxu0 %v4372_v12  ;;  %2979 = vmatpush1.bf16.msra.mxu1 %v4373_v16  ;;  %v6215_v16 = vld [vmem:[#allocation86_spill] sm:$0xff] }
 0x6c3   :  { %2939 = vmatprep.subr.bf16.mxu0 %v4374_v13  ;;  %2980 = vmatprep.subr.bf16.mxu1 %v4375_v6 }
 0x6c6   :  { %2940 = vmatpush1.bf16.msra.mxu0 %v4376_v37  ;;  %2981 = vmatpush1.bf16.msra.mxu1 %v4377_v32 }
 0x6c7   :  { %2941 = vmatprep.subr.bf16.mxu0 %v4378_v26  ;;  %2982 = vmatprep.subr.bf16.mxu1 %v4379_v21 }
 0x6ca   :  { %2942 = vmatpush1.bf16.msra.mxu0 %v4380_v46  ;;  %2983 = vmatpush1.bf16.msra.mxu1 %v4381_v29 }
 0x6cb   :  { %2943 = vmatprep.subr.bf16.mxu0 %v4382_v36  ;;  %2984 = vmatprep.subr.bf16.mxu1 %v4383_v27 }
 0x6ce   :  { %2944 = vmatpush1.bf16.msra.mxu0 %v4384_v31  ;;  %2985 = vmatpush1.bf16.msra.mxu1 %v4385_v35  ;;  %v6216_v31 = vld [vmem:[#allocation87_spill] sm:$0xff] }
 0x6cf   :  { %2945 = vmatprep.subr.bf16.mxu0 %v4386_v19  ;;  %2986 = vmatprep.subr.bf16.mxu1 %v4387_v5  ;;  %v6217_v19 = vld [vmem:[#allocation85_spill] sm:$0xff] }
 0x6d2   :  { %2946 = vmatpush1.bf16.msra.mxu0 %v4388_v18  ;;  %2987 = vmatpush1.bf16.msra.mxu1 %v4389_v61 }
 0x6d3   :  { %2947 = vmatprep.subr.bf16.mxu0 %v4390_v59  ;;  %2988 = vmatprep.subr.bf16.mxu1 %v4391_v25 }
 0x6d6   :  { %2948 = vmatpush1.bf16.msra.mxu0 %v4392_v20  ;;  %2989 = vmatpush1.bf16.msra.mxu1 %v4393_v22 }
 0x6d7   :  { %2949 = vmatprep.subr.bf16.mxu0 %v4394_v9  ;;  %2990 = vmatprep.subr.bf16.mxu1 %v4395_v2 }
 0x6da   :  { %2950 = vmatpush1.bf16.msra.mxu0 %v4396_v50  ;;  %2991 = vmatpush1.bf16.msra.mxu1 %v4397_v51  ;;  %v4400_v50 = vld [vmem:[#allocation9 + $0xe0] ss:$16 sps:$4 sm:$0xff]   ;;  %v4401_v51 = vld [vmem:[#allocation9 + $0xe8] ss:$16 sps:$4 sm:$0xff]  }
 0x6db   :  { %3017 = vmatprep.subr.bf16.mxu0 %v4398_v52  ;;  %3058 = vmatprep.subr.bf16.mxu1 %v4399_v53  ;;  %v4402_v52 = vld [vmem:[#allocation9 + $0xc4] ss:$16 sps:$4 sm:$0xff]   ;;  %v4403_v53 = vld [vmem:[#allocation9 + $0xcc] ss:$16 sps:$4 sm:$0xff]  }
 0x75d   :  { %v2739_v0 = vpop.f32.mrf.mxu0  ;;  %v2780_v54 = vpop.f32.mrf.mxu1 }
 0x75e   :  { %v2873_v55 = vadd.f32 %v2739_v0, %v6210_v4  ;;  %v2875_v33 = vadd.f32 %v2780_v54, %v6213_v60  ;;  %v4404_v54 = vld [vmem:[#allocation9 + $0xc0] ss:$16 sps:$4 sm:$0xff]   ;;  %v4405_v4 = vld [vmem:[#allocation9 + $0xc8] ss:$16 sps:$4 sm:$0xff]  }
 0x75f   :  { %v2741_v56 = vpop.f32.mrf.mxu0  ;;  %v2782_v57 = vpop.f32.mrf.mxu1  ;;  %v4413_v60 = vld [vmem:[#allocation9 + $0x88] ss:$16 sps:$4 sm:$0xff]  }
 0x760   :  { %v3764_v40 = vmul.f32 -1.442695, %v2873_v55  ;;  %v2874_v8 = vadd.f32 %v2741_v56, %v6211_v34  ;;  %v2876_v10 = vadd.f32 %v2782_v57, %v6212_v30  ;;  %v4406_v56 = vld [vmem:[#allocation9 + $0xa4] ss:$16 sps:$4 sm:$0xff]   ;;  %v4407_v57 = vld [vmem:[#allocation9 + $0xac] ss:$16 sps:$4 sm:$0xff]  }
 0x761   :  { %v2743_v28 = vpop.f32.mrf.mxu0  ;;  %v2784_v3 = vpop.f32.mrf.mxu1 }
 0x762   :  { %4238 = vpow2.f32 %v3764_v40  ;;  %v3765_v58 = vmul.f32 -1.442695, %v2874_v8  ;;  %v3766_v23 = vmul.f32 -1.442695, %v2876_v10  ;;  %v4408_v3 = vld [vmem:[#allocation9 + $0xa0] ss:$16 sps:$4 sm:$0xff]  }
 0x763   :  { %v2744_v62 = vpop.f32.mrf.mxu0  ;;  %v2785_v7 = vpop.f32.mrf.mxu1  ;;  %v4412_v10 = vld [vmem:[#allocation9 + $0x80] ss:$16 sps:$4 sm:$0xff]  }
 0x764   :  { %4240 = vpow2.f32 %v3765_v58  ;;  %v4409_v58 = vld [vmem:[#allocation9 + $0xa8] ss:$16 sps:$4 sm:$0xff]   ;;  %v4410_v62 = vld [vmem:[#allocation9 + $0x84] ss:$16 sps:$4 sm:$0xff]   ;;  %v4411_v7 = vld [vmem:[#allocation9 + $0x8c] ss:$16 sps:$4 sm:$0xff]  }
 0x765   :  { %4242 = vtanh.f32 %v2875_v33  ;;  %v4414_v33 = vld [vmem:[#allocation9 + $0x64] ss:$16 sps:$4 sm:$0xff]  }
 0x766   :  { %4244 = vpow2.f32 %v3766_v23  ;;  %v4415_v23 = vld [vmem:[#allocation9 + $0x6c] ss:$16 sps:$4 sm:$0xff]  }
 0x76f   :  { %v4239_v48 = vpop.eup %4238 }
 0x770   :  { %v2888_v11 = vadd.f32 1.0, %v4239_v48  ;;  %v4416_v48 = vld [vmem:[#allocation9 + $0x60] ss:$16 sps:$4 sm:$0xff]  }
 0x771   :  { %v4241_v15 = vpop.eup %4240 }
 0x772   :  { %4246 = vrcp.f32 %v2888_v11  ;;  %v2894_v14 = vadd.f32 1.0, %v4241_v15  ;;  %v4243_v39 = vpop.eup %4242  ;;  %v4418_v11 = vld [vmem:[#allocation9 + $0x44] ss:$16 sps:$4 sm:$0xff]   ;;  %v4419_v15 = vld [vmem:[#allocation9 + $0x4c] ss:$16 sps:$4 sm:$0xff]  }
 0x773   :  { %v4245_v41 = vpop.eup %4244 }
 0x774   :  { %4248 = vrcp.f32 %v2894_v14  ;;  %v2901_v37 = vadd.f32 1.0, %v4245_v41  ;;  %v4420_v14 = vld [vmem:[#allocation9 + $0x40] ss:$16 sps:$4 sm:$0xff]  }
 0x775   :  { %v4424_v41 = vld [vmem:[#allocation9 + $0x20] ss:$16 sps:$4 sm:$0xff]  }
 0x77d   :  { %v2821_v24 = vpop.f32.mrf.mxu0  ;;  %v2862_v38 = vpop.f32.mrf.mxu1 }
 0x77e   :  { %v2881_v43 = vadd.f32 %v2821_v24, %v6214_v42  ;;  %v2883_v5 = vadd.f32 %v2862_v38, %v6217_v19  ;;  %v4422_v24 = vld [vmem:[#allocation9 + $0x24] ss:$16 sps:$4 sm:$0xff]   ;;  %v4423_v38 = vld [vmem:[#allocation9 + $0x2c] ss:$16 sps:$4 sm:$0xff]   ;;  %v4425_v42 = vld [vmem:[#allocation9 + $0x28] ss:$16 sps:$4 sm:$0xff]  }
 0x77f   :  { %v4247_v44 = vpop.eup %4246  ;;  %v2823_v47 = vpop.f32.mrf.mxu0  ;;  %v4031_v19 = vld [vmem:[#allocation12 + $0x70] sm:$0xff]  }
 0x780   :  { %v2864_v49 = vpop.f32.mrf.mxu1  ;;  %v2905_v45 = vmul.f32 %v4247_v44, %v4243_v39  ;;  %v3767_v12 = vmul.f32 -1.442695, %v2881_v43  ;;  %v2882_v13 = vadd.f32 %v2823_v47, %v6215_v16  ;;  %v4421_v39 = vld [vmem:[#allocation9 + $0x48] ss:$16 sps:$4 sm:$0xff]   ;;  %v4426_v44 = vld [vmem:[#allocation9 + $0x4] ss:$16 sps:$4 sm:$0xff]  }
 0x781   :  { %v4249_v6 = vpop.eup %4248  ;;  %v2825_v32 = vpop.f32.mrf.mxu0  ;;  %v2884_v35 = vadd.f32 %v2864_v49, %v6216_v31  ;;  %v4427_v47 = vld [vmem:[#allocation9 + $0xc] ss:$16 sps:$4 sm:$0xff]   ;;  %v4429_v16 = vld [vmem:[#allocation9 + $0x8] ss:$16 sps:$4 sm:$0xff]  }
 0x782   :  { %v2866_v26 = vpop.f32.mrf.mxu1  ;;  %v2904_v21 = vmul.f32 %v4249_v6, %v5748_v63  ;;  %4250 = vpow2.f32 %v3767_v12  ;;  %v3768_v46 = vmul.f32 -1.442695, %v2882_v13  ;;  %v4428_v12 = vld [vmem:[#allocation9] ss:$16 sps:$4 sm:$0xff]   ;;  %v4023_v32 = vld [vmem:[#allocation12 + $0x30] sm:$0xff]   ;;  %v4029_v31 = vld [vmem:[#allocation12] sm:$0xff]  }
 0x783   :  { %v2826_v29 = vpop.f32.mrf.mxu0  ;;  %v3769_v18 = vmul.f32 -1.442695, %v2884_v35  ;;  %v4022_v6 = vld [vmem:[#allocation12 + $0x38] sm:$0xff]   ;;  %v4024_v26 = vld [vmem:[#allocation12 + $0x28] sm:$0xff]  }
 0x784   :  { %v2867_v36 = vpop.f32.mrf.mxu1  ;;  %v5798_v27 = vadd.f32 %v2905_v45, %v2904_v21  ;;  %4252 = vpow2.f32 %v3768_v46  ;;  %v4025_v21 = vld [vmem:[#allocation12 + $0x20] sm:$0xff]   ;;  %v4026_v46 = vld [vmem:[#allocation12 + $0x18] sm:$0xff]   ;;  %v4027_v29 = vld [vmem:[#allocation12 + $0x10] sm:$0xff]  }
 0x785   :  { %4254 = vrcp.f32 %v2901_v37  ;;  %v4614_v37 = vmov 0.0   ;;  %v4028_v36 = vld [vmem:[#allocation12 + $0x8] sm:$0xff]   ;;  %v4030_v35 = vld [vmem:[#allocation12 + $0x78] sm:$0xff]  }
 0x786   :  { %4256 = vtanh.f32 %v5798_v27 }
 0x787   :  { %4258 = vtanh.f32 %v2883_v5  ;;  %v4032_v5 = vld [vmem:[#allocation12 + $0x68] sm:$0xff]  }
 0x788   :  { %4260 = vpow2.f32 %v3769_v18  ;;  %v4033_v18 = vld [vmem:[#allocation12 + $0x60] sm:$0xff]  }
 0x78f   :  { %v4251_v61 = vpop.eup %4250 }
 0x790   :  { %v2912_v59 = vadd.f32 1.0, %v4251_v61  ;;  %v4034_v61 = vld [vmem:[#allocation12 + $0x58] sm:$0xff]  }
 0x791   :  { %v4253_v25 = vpop.eup %4252 }
 0x792   :  { %v4255_v63 = vpop.eup %4254  ;;  %4262 = vrcp.f32 %v2912_v59  ;;  %v2918_v20 = vadd.f32 1.0, %v4253_v25  ;;  %v4035_v59 = vld [vmem:[#allocation12 + $0x50] sm:$0xff]   ;;  %v4036_v25 = vld [vmem:[#allocation12 + $0x48] sm:$0xff]  }
 0x793   :  { %v4257_v22 = vpop.eup %4256 }
 0x794   :  { %4264 = vrcp.f32 %v2918_v20  ;;  %v2908_v9 = vmul.f32 %v4257_v22, %v4255_v63  ;;  %v4259_v0 = vpop.eup %4258  ;;  %v4037_v63 = vld [vmem:[#allocation12 + $0x40] sm:$0xff]  }
 0x795   :  { %v4261_v55 = vpop.eup %4260 }
 0x796   :  { %v2933_v2 = vpack.c.bf16 %v2908_v9, %v2908_v9  ;;  %v2925_v28 = vadd.f32 1.0, %v4261_v55  ;;  %v6218_v9 = vld [vmem:[#allocation76_spill] sm:$0xff] }
 0x798   :  { %2968 = vmatmul.mubr.bf16.vlgmr.msra.gmra.mxu0 %v2933_v2  ;;  %3009 = vmatmul.mubr.bf16.vlgmr.msra.gmra.mxu1 %v2933_v2  ;;  %4266 = vrcp.f32 %v2925_v28 }
 0x799   :  { %3018 = vmatpush1.bf16.msra.mxu0 %v4400_v50  ;;  %3059 = vmatpush1.bf16.msra.mxu1 %v4401_v51 }
 0x79a   :  { %3019 = vmatprep.subr.bf16.mxu0 %v4402_v52  ;;  %3060 = vmatprep.subr.bf16.mxu1 %v4403_v53  ;;  %v6219_v53 = vld [vmem:[#allocation78_spill] sm:$0xff] }
 0x79b   :  { %3049 = vmatprep.mubr.bf16.mxu0 %v6000_v1  ;;  %3090 = vmatprep.mubr.bf16.mxu1 %v6000_v1 }
 0x79d   :  { %3020 = vmatpush1.bf16.msra.mxu0 %v4404_v54  ;;  %3061 = vmatpush1.bf16.msra.mxu1 %v4405_v4 }
 0x79e   :  { %3021 = vmatprep.subr.bf16.mxu0 %v4406_v56  ;;  %3062 = vmatprep.subr.bf16.mxu1 %v4407_v57 }
 0x79f   :  { %v4263_v40 = vpop.eup %4262 }
 0x7a0   :  { %v2929_v34 = vmul.f32 %v4263_v40, %v4259_v0  ;;  %v6220_v40 = vld [vmem:[#allocation79_spill] sm:$0xff] }
 0x7a1   :  { %v4265_v8 = vpop.eup %4264  ;;  %3022 = vmatpush1.bf16.msra.mxu0 %v4408_v3  ;;  %3063 = vmatpush1.bf16.msra.mxu1 %v4409_v58 }
 0x7a2   :  { %v2928_v1 = vmul.f32 %v4265_v8, %v5768_v17  ;;  %3023 = vmatprep.subr.bf16.mxu0 %v4410_v62  ;;  %3064 = vmatprep.subr.bf16.mxu1 %v4411_v7  ;;  %v4417_v17 = vld [vmem:[#allocation9 + $0x68] ss:$16 sps:$4 sm:$0xff]   ;;  %v6221_v8 = vld [vmem:[#allocation77_spill] sm:$0xff] }
 0x7a4   :  { %v5806_v30 = vadd.f32 %v2929_v34, %v2928_v1 }
 0x7a5   :  { %3024 = vmatpush1.bf16.msra.mxu0 %v4412_v10  ;;  %3065 = vmatpush1.bf16.msra.mxu1 %v4413_v60  ;;  %v4267_v43 = vpop.eup %4266 }
 0x7a6   :  { %3025 = vmatprep.subr.bf16.mxu0 %v4414_v33  ;;  %3066 = vmatprep.subr.bf16.mxu1 %v4415_v23  ;;  %4268 = vtanh.f32 %v5806_v30 }
 0x7a9   :  { %3026 = vmatpush1.bf16.msra.mxu0 %v4416_v48  ;;  %3067 = vmatpush1.bf16.msra.mxu1 %v4417_v17  ;;  %v6222_v48 = vld [vmem:[#allocation80_spill] sm:$0xff] }
 0x7aa   :  { %3027 = vmatprep.subr.bf16.mxu0 %v4418_v11  ;;  %3068 = vmatprep.subr.bf16.mxu1 %v4419_v15 }
 0x7ad   :  { %3028 = vmatpush1.bf16.msra.mxu0 %v4420_v14  ;;  %3069 = vmatpush1.bf16.msra.mxu1 %v4421_v39 }
 0x7ae   :  { %3029 = vmatprep.subr.bf16.mxu0 %v4422_v24  ;;  %3070 = vmatprep.subr.bf16.mxu1 %v4423_v38  ;;  %v6223_v38 = vld [vmem:[#allocation82_spill] sm:$0xff] }
 0x7b1   :  { %3030 = vmatpush1.bf16.msra.mxu0 %v4424_v41  ;;  %3071 = vmatpush1.bf16.msra.mxu1 %v4425_v42 }
 0x7b2   :  { %3031 = vmatprep.subr.bf16.mxu0 %v4426_v44  ;;  %3072 = vmatprep.subr.bf16.mxu1 %v4427_v47 }
 0x7b3   :  { %v4269_v49 = vpop.eup %4268 }
 0x7b4   :  { %v2932_v45 = vmul.f32 %v4269_v49, %v4267_v43 }
 0x7b5   :  { %3032 = vmatpush1.bf16.msra.mxu0 %v4428_v12  ;;  %3073 = vmatpush1.bf16.msra.mxu1 %v4429_v16 }
 0x7b6   :  { %v2934_v13 = vpack.c.bf16 %v2932_v45, %v2932_v45  ;;  %3853 = vmatprep.subr.bf16.mxu1 %v4614_v37  ;;  %3833 = vmatprep.subr.bf16.mxu0 %v4614_v37 }
 0x7b8   :  { %3050 = vmatmul.mubr.bf16.vlgmr.msra.gmra.mxu0 %v2934_v13  ;;  %3091 = vmatmul.mubr.bf16.vlgmr.msra.gmra.mxu1 %v2934_v13 }
 0x7b9   :  { %3854 = vmatpush3.bf16.msra.mxu1 %v4022_v6  ;;  %3869 = vmatprep.mubr.msk.bf16.mxu1 %vm4615_vm0, %v4614_v37  ;;  %v6224_v6 = vld [vmem:[#allocation83_spill] sm:$0xff] }
 0x7ba   :  { %3855 = vmatprep.subr.bf16.mxu1 %v4614_v37  ;;  %3849 = vmatprep.mubr.msk.bf16.mxu0 %vm4615_vm0, %v4614_v37 }
 0x7bb   :  { %3834 = vmatpush3.bf16.msra.mxu0 %v4030_v35 }
 0x7bc   :  { %3835 = vmatprep.subr.bf16.mxu0 %v4614_v37 }
 0x7bd   :  { %3856 = vmatpush3.bf16.msra.mxu1 %v4023_v32 }
 0x7be   :  { %3857 = vmatprep.subr.bf16.mxu1 %v4614_v37 }
 0x7bf   :  { %3836 = vmatpush3.bf16.msra.mxu0 %v4031_v19 }
 0x7c0   :  { %3837 = vmatprep.subr.bf16.mxu0 %v4614_v37 }
 0x7c1   :  { %3858 = vmatpush3.bf16.msra.mxu1 %v4024_v26  ;;  %v6225_v26 = vld [vmem:[#allocation81_spill] sm:$0xff] }
 0x7c2   :  { %3859 = vmatprep.subr.bf16.mxu1 %v4614_v37 }
 0x7c3   :  { %3838 = vmatpush3.bf16.msra.mxu0 %v4032_v5 }
 0x7c4   :  { %3839 = vmatprep.subr.bf16.mxu0 %v4614_v37 }
 0x7c5   :  { %3860 = vmatpush3.bf16.msra.mxu1 %v4025_v21 }
 0x7c6   :  { %3861 = vmatprep.subr.bf16.mxu1 %v4614_v37 }
 0x7c7   :  { %3840 = vmatpush3.bf16.msra.mxu0 %v4033_v18 }
 0x7c8   :  { %3841 = vmatprep.subr.bf16.mxu0 %v4614_v37 }
 0x7c9   :  { %3862 = vmatpush3.bf16.msra.mxu1 %v4026_v46 }
 0x7ca   :  { %3863 = vmatprep.subr.bf16.mxu1 %v4614_v37 }
 0x7cb   :  { %3842 = vmatpush3.bf16.msra.mxu0 %v4034_v61 }
 0x7cc   :  { %3843 = vmatprep.subr.bf16.mxu0 %v4614_v37 }
 0x7cd   :  { %3864 = vmatpush3.bf16.msra.mxu1 %v4027_v29 }
 0x7ce   :  { %3865 = vmatprep.subr.bf16.mxu1 %v4614_v37 }
 0x7cf   :  { %3844 = vmatpush3.bf16.msra.mxu0 %v4035_v59 }
 0x7d0   :  { %3845 = vmatprep.subr.bf16.mxu0 %v4614_v37 }
 0x7d1   :  { %3866 = vmatpush3.bf16.msra.mxu1 %v4028_v36 }
 0x7d2   :  { %3867 = vmatprep.subr.bf16.mxu1 %v4614_v37 }
 0x7d3   :  { %3846 = vmatpush3.bf16.msra.mxu0 %v4036_v25 }
 0x7d4   :  { %3847 = vmatprep.subr.bf16.mxu0 %v4614_v37 }
 0x7d5   :  { %3868 = vmatpush3.bf16.msra.mxu1 %v4029_v31 }
 0x7d6   :  { %3879 = vmatprep.subr.bf16.mxu1 %v4614_v37 }
 0x7d7   :  { %3848 = vmatpush3.bf16.msra.mxu0 %v4037_v63 }
 0x7d8   :  { %3873 = vmatprep.subr.bf16.mxu0 %v4614_v37 }
 0x858   :  { %v2969_v20 = vpop.f32.mrf.mxu0  ;;  %v3010_v22 = vpop.f32.mrf.mxu1 }
 0x859   :  { %v3103_v2 = vadd.f32 %v2969_v20, %v6218_v9  ;;  %v3105_v28 = vadd.f32 %v3010_v22, %v6221_v8 }
 0x85a   :  { %v2971_v50 = vpop.f32.mrf.mxu0  ;;  %v3012_v51 = vpop.f32.mrf.mxu1 }
 0x85b   :  { %v3770_v52 = vmul.f32 -1.442695, %v3103_v2  ;;  %v3104_v0 = vadd.f32 %v2971_v50, %v6219_v53  ;;  %v3106_v34 = vadd.f32 %v3012_v51, %v6220_v40 }
 0x85c   :  { %v2973_v54 = vpop.f32.mrf.mxu0  ;;  %v3014_v4 = vpop.f32.mrf.mxu1 }
 0x85d   :  { %4270 = vpow2.f32 %v3770_v52  ;;  %v3771_v55 = vmul.f32 -1.442695, %v3104_v0  ;;  %v3772_v3 = vmul.f32 -1.442695, %v3106_v34  ;;  %v4038_v0 = vld [vmem:[#allocation14 + $0x38] sm:$0xff]   ;;  %v4039_v54 = vld [vmem:[#allocation14 + $0x30] sm:$0xff]  }
 0x85e   :  { %v2974_v56 = vpop.f32.mrf.mxu0  ;;  %v3015_v57 = vpop.f32.mrf.mxu1  ;;  %v4040_v4 = vld [vmem:[#allocation14 + $0x28] sm:$0xff]  }
 0x85f   :  { %4272 = vpow2.f32 %v3771_v55  ;;  %v4042_v55 = vld [vmem:[#allocation14 + $0x18] sm:$0xff]   ;;  %v4043_v56 = vld [vmem:[#allocation14 + $0x10] sm:$0xff]   ;;  %v4044_v57 = vld [vmem:[#allocation14 + $0x8] sm:$0xff]  }
 0x860   :  { %4274 = vtanh.f32 %v3105_v28 }
 0x861   :  { %4276 = vpow2.f32 %v3772_v3 }
 0x86a   :  { %v4271_v58 = vpop.eup %4270 }
 0x86b   :  { %v3118_v1 = vadd.f32 1.0, %v4271_v58 }
 0x86c   :  { %v4273_v62 = vpop.eup %4272 }
 0x86d   :  { %4278 = vrcp.f32 %v3118_v1  ;;  %v3124_v7 = vadd.f32 1.0, %v4273_v62  ;;  %v4275_v10 = vpop.eup %4274 }
 0x86e   :  { %v4277_v23 = vpop.eup %4276 }
 0x86f   :  { %4280 = vrcp.f32 %v3124_v7  ;;  %v3131_v43 = vadd.f32 1.0, %v4277_v23  ;;  %v4045_v23 = vld [vmem:[#allocation14] sm:$0xff]  }
 0x878   :  { %v3051_v60 = vpop.f32.mrf.mxu0  ;;  %v3092_v33 = vpop.f32.mrf.mxu1 }
 0x879   :  { %v3111_v17 = vadd.f32 %v3051_v60, %v6222_v48  ;;  %v3113_v21 = vadd.f32 %v3092_v33, %v6225_v26  ;;  %v3373_v33 = vld [vmem:[%s5873_s5] sm:$0xf] }
 0x87a   :  { %v4279_v11 = vpop.eup %4278  ;;  %v3053_v15 = vpop.f32.mrf.mxu0 }
 0x87b   :  { %v3094_v14 = vpop.f32.mrf.mxu1  ;;  %v3135_v39 = vmul.f32 %v4279_v11, %v4275_v10  ;;  %v3773_v24 = vmul.f32 -1.442695, %v3111_v17  ;;  %v3112_v41 = vadd.f32 %v3053_v15, %v6223_v38 }
 0x87c   :  { %v4281_v42 = vpop.eup %4280  ;;  %v3055_v44 = vpop.f32.mrf.mxu0  ;;  %v3114_v32 = vadd.f32 %v3094_v14, %v6224_v6 }
 0x87d   :  { %v3096_v47 = vpop.f32.mrf.mxu1  ;;  %v3134_v49 = vmul.f32 %v4281_v42, %v5798_v27  ;;  %4282 = vpow2.f32 %v3773_v24  ;;  %v3774_v45 = vmul.f32 -1.442695, %v3112_v41 }
 0x87e   :  { %v3056_v12 = vpop.f32.mrf.mxu0  ;;  %v3775_v46 = vmul.f32 -1.442695, %v3114_v32 }
 0x87f   :  { %v3097_v16 = vpop.f32.mrf.mxu1  ;;  %v3136_v13 = vadd.f32 %v3135_v39, %v3134_v49  ;;  %4284 = vpow2.f32 %v3774_v45 }
 0x880   :  { %4286 = vrcp.f32 %v3131_v43 }
 0x881   :  { %4288 = vtanh.f32 %v3136_v13 }
 0x882   :  { %4290 = vtanh.f32 %v3113_v21 }
 0x883   :  { %4292 = vpow2.f32 %v3775_v46 }
 0x88a   :  { %v4283_v29 = vpop.eup %4282 }
 0x88b   :  { %v3142_v36 = vadd.f32 1.0, %v4283_v29 }
 0x88c   :  { %v4285_v31 = vpop.eup %4284 }
 0x88d   :  { %v4287_v35 = vpop.eup %4286  ;;  %4294 = vrcp.f32 %v3142_v36  ;;  %v3148_v27 = vadd.f32 1.0, %v4285_v31 }
 0x88e   :  { %v4289_v19 = vpop.eup %4288 }
 0x88f   :  { %4296 = vrcp.f32 %v3148_v27  ;;  %v3138_v5 = vmul.f32 %v4289_v19, %v4287_v35  ;;  %v4291_v61 = vpop.eup %4290 }
 0x890   :  { %v4293_v59 = vpop.eup %4292 }
 0x891   :  { %v3163_v18 = vpack.c.bf16 %v3138_v5, %v3138_v5  ;;  %v3155_v22 = vadd.f32 1.0, %v4293_v59 }
 0x893   :  { %3870 = vmatmul.mubr.bf16.vlgmr.msra.gmra.mxu1 %v3163_v18  ;;  %4298 = vrcp.f32 %v3155_v22 }
 0x894   :  { %3895 = vmatprep.mubr.msk.bf16.mxu1 %vm4615_vm0, %v4614_v37  ;;  %3880 = vmatpush3.bf16.msra.mxu1 %v4038_v0 }
 0x895   :  { %3881 = vmatprep.subr.bf16.mxu1 %v4614_v37 }
 0x898   :  { %3882 = vmatpush3.bf16.msra.mxu1 %v4039_v54 }
 0x899   :  { %3883 = vmatprep.subr.bf16.mxu1 %v4614_v37 }
 0x89a   :  { %v4295_v25 = vpop.eup %4294 }
 0x89b   :  { %v3159_v63 = vmul.f32 %v4295_v25, %v4291_v61 }
 0x89c   :  { %v4297_v20 = vpop.eup %4296  ;;  %3884 = vmatpush3.bf16.msra.mxu1 %v4040_v4 }
 0x89d   :  { %v3158_v9 = vmul.f32 %v4297_v20, %v5806_v30  ;;  %v4041_v30 = vld [vmem:[#allocation14 + $0x20] sm:$0xff]   ;;  %3885 = vmatprep.subr.bf16.mxu1 %v4614_v37 }
 0x89f   :  { %v3160_v2 = vadd.f32 %v3159_v63, %v3158_v9 }
 0x8a0   :  { %v4299_v50 = vpop.eup %4298  ;;  %3886 = vmatpush3.bf16.msra.mxu1 %v4041_v30 }
 0x8a1   :  { %4300 = vtanh.f32 %v3160_v2  ;;  %3887 = vmatprep.subr.bf16.mxu1 %v4614_v37 }
 0x8a4   :  { %3888 = vmatpush3.bf16.msra.mxu1 %v4042_v55 }
 0x8a5   :  { %3889 = vmatprep.subr.bf16.mxu1 %v4614_v37 }
 0x8a8   :  { %3890 = vmatpush3.bf16.msra.mxu1 %v4043_v56 }
 0x8a9   :  { %3891 = vmatprep.subr.bf16.mxu1 %v4614_v37 }
 0x8ac   :  { %3892 = vmatpush3.bf16.msra.mxu1 %v4044_v57 }
 0x8ad   :  { %3893 = vmatprep.subr.bf16.mxu1 %v4614_v37 }
 0x8ae   :  { %v4301_v51 = vpop.eup %4300 }
 0x8af   :  { %v3162_v52 = vmul.f32 %v4301_v51, %v4299_v50 }
 0x8b0   :  { %3894 = vmatpush3.bf16.msra.mxu1 %v4045_v23 }
 0x8b1   :  { %v3164_v53 = vpack.c.bf16 %v3162_v52, %v3162_v52 }
 0x8b3   :  { %3850 = vmatmul.mubr.bf16.vlgmr.msra.gmra.mxu0 %v3164_v53 }
 0x8b4   :  { %3875 = vmatprep.mubr.msk.bf16.mxu0 %vm4615_vm0, %v4614_v37 }
 0x953   :  { %v3367_v40 = vpop.f32.mrf.mxu1 }
 0x955   :  { %v3871_v34 = vpop.f32.mrf.mxu1 }
 0x957   :  { %v3370_v8 = vpop.f32.mrf.mxu1 }
 0x959   :  { %v3872_v28 = vpop.f32.mrf.mxu1 }
 0x973   :  { %v3279_v3 = vpop.f32.mrf.mxu0 }
 0x974   :  { %v3368_v58 = vadd.f32 %v3367_v40, %v3279_v3 }
 0x975   :  { %v3851_v1 = vpop.f32.mrf.mxu0 }
 0x976   :  { %v3374_v62 = vpack.c.bf16 %v3368_v58, %v3368_v58 }
 0x977   :  { %v3282_v7 = vpop.f32.mrf.mxu0 }
 0x978   :  { %v3381_v10 = vsel %vm3379_vm1, %v3374_v62, 0 }
 0x979   :  { %v3852_v60 = vpop.f32.mrf.mxu0  ;;  %3874 = vmatpush3.bf16.msra.mxu0 %v3381_v10 }
 0x97a   :  { %3899 = vmatprep.subr.bf16.mxu0 %v4614_v37 }
 0x97c   :  { %3876 = vmatmul.mubr.msk.bf16.vlgmr.msra.gmra.mxu0 %vm3375_vm2, %v3373_v33 }
 0x97d   :  { %3901 = vmatprep.mubr.msk.bf16.mxu0 %vm4615_vm0, %v4614_v37  ;;  %v3529_v37 = vld [vmem:[%s5875_s7] sm:$0xf] }
 0xa3c   :  { %v3417_v48 = vpop.f32.mrf.mxu0 }
 0xa3d   :  { %v3423_v17 = vmax.f32 %v3417_v48, 0.0 }
 0xa3e   :  { %v3877_v11 = vpop.f32.mrf.mxu0 }
 0xa3f   :  { %v3424_v15 = vpack.c.bf16 %v3423_v17, %v3423_v17 }
 0xa40   :  { %v3420_v14 = vpop.f32.mrf.mxu0 }
 0xa41   :  { %3896 = vmatmul.mubr.bf16.vlgmr.msra.gmra.mxu1 %v3424_v15 }
 0xa42   :  { %v3878_v39 = vpop.f32.mrf.mxu0 }
 0xb01   :  { %v3523_v24 = vpop.f32.mrf.mxu1 }
 0xb02   :  { %v3530_v38 = vpack.c.bf16 %v3523_v24, %v3523_v24 }
 0xb03   :  { %v3897_v41 = vpop.f32.mrf.mxu1 }
 0xb04   :  { %v3535_v42 = vsel %vm3379_vm1, %v3530_v38, 0 }
 0xb05   :  { %v3526_v43 = vpop.f32.mrf.mxu1  ;;  %3900 = vmatpush3.bf16.msra.mxu0 %v3535_v42 }
 0xb07   :  { %v3898_v44 = vpop.f32.mrf.mxu1 }
 0xb08   :  { %3902 = vmatmul.mubr.msk.bf16.vlgmr.msra.gmra.mxu0 %vm3375_vm2, %v3529_v37 }
 0xbc8   :  { %v3571_v47 = vpop.f32.mrf.mxu0 }
 0xbc9   :  { %3577 = vst [vmem:[#allocation15] sm:$0xff] %v3571_v47 }
 0xbca   :  { %v3903_v49 = vpop.f32.mrf.mxu0 }
 0xbcb   :  { %4581 = shalt.err (!%p4578_p11)
}
 0xbcc   :  { %3587 = dma.vmem_to_hbm [thread:$0]  %s3585_s25, 128, %s5877_s9, [#allocation5]   ;;  %v3574_v45 = vpop.f32.mrf.mxu0 }
 0xbce   :  { %v3904_v12 = vpop.f32.mrf.mxu0 }
 0xbcf   :  { %4598 = dma.done.wait [#allocation5], 128  }
 0xbd0   :  { %4599 = vsyncadd [#allocation5], 4294967168 }
 0xbd1   :  { %3591 = vsyncpa [#allocation4], 1 }
 0xbd2   :  { %3592 = vsyncpa [#allocation7], 1 }
 0xbd3   :  { %3593 = vsyncpa [#allocation10], 1 }
 0xbd4   :  { %3594 = vsyncpa [#allocation13], 1 }
 0xbd5   :  { %3595 = vsyncpa [#allocation5], 1 }

</bundles_post_ra>
